<compile_context>
chip_gen: v7x
topology: tpu7x:2x2x1
jax: 0.10.0
libtpu: 0.0.40
codegen_flags: <defaults>
</compile_context>

<pallas_src>
import functools

import numpy as np
import jax
import jax.numpy as jnp
from jax.experimental import pallas as pl
from jax.experimental.pallas import tpu as pltpu

_LANE = 128


def _ceil_to(v, m):
    return ((v + m - 1) // m) * m


def _vech_index(i, j):
    # row-major lower-triangular vech: element (i, j), j <= i
    return i * (i + 1) // 2 + j


def _pick_tb(b):
    for tb in (256, 128, 64, 32, 16, 8):
        if b % tb == 0:
            return tb
    return b


# ----------------------------------------------------------------------------
# Kernel: one batch tile per grid step.
# ----------------------------------------------------------------------------
def vae_bkdg_kernel(
    # batch-tiled data
    x_ref, eps_ref,
    # resident structural constants (f32)
    mallf_ref, epsmap_ref, summat_ref, sc_ref, sck_ref, kronik_ref,
    vechi_ref, dsel_ref,
    # resident parameters (weights bf16 [in, out], biases f32 [1, out])
    w0_ref, b0_ref, w1_ref, b1_ref, wenc_ref, benc_ref,
    w2_ref, b2_ref, w3_ref, b3_ref, wdec_ref, bdec_ref,
    # outputs
    kldp_ref, nllp_ref, enc_mean_ref, enc_cov_ref, dec_mean_ref, dec_cov_ref,
    *, d_dim, z_pad, x_pad, dist):

    f32 = jnp.float32

    def linear(h, w_ref, b_ref):
        # bf16 MXU operands, f32 accumulation, f32 downstream elementwise.
        return jnp.dot(h.astype(w_ref.dtype), w_ref[...],
                       preferred_element_type=f32) + b_ref[...]

    x = x_ref[...]                                          # (TB, x_pad) f32

    # ------------------------------ encode -------------------------------
    h0 = jnp.maximum(linear(x, w0_ref, b0_ref), 0.0)        # relu(fc0)
    h1 = jnp.tanh(linear(h0, w1_ref, b1_ref))               # tanh(fc1)
    enc_head = linear(h1, wenc_ref, benc_ref)               # fused fc21|fc22
    enc_mean = enc_head[:, :z_pad]                          # (TB, z_pad)
    enc_cov = enc_head[:, z_pad:]                           # (TB, lt_pad)
    enc_mean_ref[...] = enc_mean
    enc_cov_ref[...] = enc_cov

    # ---------------- reparameterize_lt (training path) ------------------
    # A[b, j*z_pad + i*l + m] = L[b, i, j]   (L = bivech(enc_cov))
    # E[b, j*z_pad + i*l + m] = eps[b, j*l + m]
    # z = mu + sum_j A .* E   (sum over j done by a 0/1 matmul, no reshapes)
    a_full = jnp.dot(enc_cov, mallf_ref[...], preferred_element_type=f32)
    e_full = jnp.dot(eps_ref[...], epsmap_ref[...], preferred_element_type=f32)
    z = enc_mean + jnp.dot(a_full * e_full, summat_ref[...],
                           preferred_element_type=f32)

    # ------------------------------ decode -------------------------------
    h2 = jnp.tanh(linear(z, w2_ref, b2_ref))                # tanh(fc2)
    h3 = jnp.maximum(linear(h2, w3_ref, b3_ref), 0.0)       # relu(fc3)
    dec_head = linear(h3, wdec_ref, bdec_ref)               # fused fc41|fc42
    dec_mean = dec_head[:, :x_pad]
    dec_cov = dec_head[:, x_pad:]
    dec_mean_ref[...] = dec_mean
    dec_cov_ref[...] = dec_cov

    # ------------------- KLD (bkdg): per-tile partial ---------------------
    # tr = d * sum(iK .* (L L^T)) = d * sum(Lflat .* (Lflat @ kron(iK, I_t)))
    l_flat = jnp.dot(enc_cov, sc_ref[...], preferred_element_type=f32)
    l_flat_k = jnp.dot(enc_cov, sck_ref[...], preferred_element_type=f32)
    tr = float(d_dim) * jnp.sum(l_flat * l_flat_k, keepdims=True)      # (1,1)

    # quad = sum((iK @ (vechI - mu)) .* (vechI - mu))
    im = vechi_ref[...] - enc_mean                                      # (TB,z_pad)
    imk = jnp.dot(im, kronik_ref[...], preferred_element_type=f32)
    quad = jnp.sum(im * imk, keepdims=True)                             # (1,1)

    # ldet0 = 2 d * sum(log|diag(L)|)
    diag_vals = jnp.dot(enc_cov, dsel_ref[...], preferred_element_type=f32)
    ldet0 = 2.0 * float(d_dim) * jnp.sum(jnp.log(jnp.abs(diag_vals)),
                                         keepdims=True)                 # (1,1)

    kld_core = tr + quad - ldet0                                        # (1,1)
    kldp_ref[...] = jnp.broadcast_to(kld_core, kldp_ref.shape)

    # ----------------------- NLL: per-tile partial ------------------------
    if dist == "gauss":
        diff = x - dec_mean
        # padded columns contribute exactly 0 (dec_cov = 0, diff = 0 there);
        # the per-element log(2*pi) constant is added once in the wrapper.
        nll_core = jnp.sum(dec_cov + jnp.exp(-dec_cov) * diff * diff,
                           keepdims=True)
    else:  # "bce": clamp log terms at -100 like torch F.binary_cross_entropy
        p = dec_mean
        log_p = jnp.maximum(jnp.log(p), -100.0)
        log_1mp = jnp.maximum(jnp.log(1.0 - p), -100.0)
        nll_core = jnp.sum(-(x * log_p + (1.0 - x) * log_1mp), keepdims=True)
    nllp_ref[...] = jnp.broadcast_to(nll_core, nllp_ref.shape)


# ----------------------------------------------------------------------------
# Model construction (deterministic params + padded structural constants)
# ----------------------------------------------------------------------------
def make_vae_bkdg(x_dim, h_dim, t_dim, key, param_dtype=jnp.bfloat16):
    assert x_dim % t_dim == 0
    d_dim = x_dim // t_dim
    l_dim = d_dim * (d_dim + 1) // 2
    z_dim = t_dim * l_dim
    lt_dim = t_dim * (t_dim + 1) // 2
    tt_dim = t_dim * t_dim

    x_pad = _ceil_to(x_dim, _LANE)
    h_pad = _ceil_to(h_dim, _LANE)
    z_pad = _ceil_to(z_dim, _LANE)
    lt_pad = _ceil_to(lt_dim, _LANE)
    tt_pad = _ceil_to(tt_dim, _LANE)

    # GP prior constants (torch.potrf / torch.potri -> NumPy, done once)
    tlin = np.linspace(0.0, 2.0, t_dim + 1)[1:]
    K = np.exp(-((tlin[:, None] - tlin[None, :]) ** 2) / 2.0 / 2.0) \
        + 1e-4 * np.eye(t_dim)
    Kh = np.linalg.cholesky(K)              # diag matches potrf(upper) diag
    iK = np.linalg.inv(K)
    sum_log_diag_kh = float(np.sum(np.log(np.abs(np.diag(Kh)))))

    # ------------- structural constants (zero-padded, lane-dense) ---------
    SC = np.zeros((lt_pad, tt_pad), np.float32)       # vech -> L (t x t) flat
    DSEL = np.zeros((lt_pad, t_dim), np.float32)      # vech -> diag(L)
    for i in range(t_dim):
        for j in range(i + 1):
            SC[_vech_index(i, j), i * t_dim + j] = 1.0
        DSEL[_vech_index(i, i), i] = 1.0
    SCK = np.zeros((lt_pad, tt_pad), np.float32)
    SCK[:, :tt_dim] = SC[:, :tt_dim] @ np.kron(iK, np.eye(t_dim)).astype(np.float32)

    KRONIK = np.zeros((z_pad, z_pad), np.float32)
    KRONIK[:z_dim, :z_dim] = np.kron(iK, np.eye(l_dim))

    vech_id = np.zeros((l_dim,), np.float32)          # th_vech(eye(d))
    for i in range(d_dim):
        vech_id[_vech_index(i, i)] = 1.0
    VECHI = np.zeros((1, z_pad), np.float32)
    VECHI[0, :z_dim] = np.tile(vech_id, t_dim)

    # Fused scatter / tile / sum constants for reparameterize_lt.
    MALLF = np.zeros((lt_pad, t_dim * z_pad), np.float32)
    EPSMAP = np.zeros((z_pad, t_dim * z_pad), np.float32)
    SUMMAT = np.zeros((t_dim * z_pad, z_pad), np.float32)
    for j in range(t_dim):
        for i in range(t_dim):
            for m in range(l_dim):
                col = j * z_pad + i * l_dim + m
                if j <= i:
                    MALLF[_vech_index(i, j), col] = 1.0
                EPSMAP[j * l_dim + m, col] = 1.0
        SUMMAT[j * z_pad + np.arange(z_pad), np.arange(z_pad)] = 1.0

    consts = [jnp.asarray(MALLF), jnp.asarray(EPSMAP), jnp.asarray(SUMMAT),
              jnp.asarray(SC), jnp.asarray(SCK), jnp.asarray(KRONIK),
              jnp.asarray(VECHI), jnp.asarray(DSEL)]

    # ------------------- linear layers (PyTorch-style init) ---------------
    def init_linear(k, fan_in, fan_out, in_pad, out_pad):
        kw, kb = jax.random.split(k)
        bound = 1.0 / np.sqrt(fan_in)
        w = jax.random.uniform(kw, (fan_in, fan_out), jnp.float32, -bound, bound)
        b = jax.random.uniform(kb, (1, fan_out), jnp.float32, -bound, bound)
        wp = jnp.zeros((in_pad, out_pad), jnp.float32).at[:fan_in, :fan_out].set(w)
        bp = jnp.zeros((1, out_pad), jnp.float32).at[:, :fan_out].set(b)
        return wp, bp

    keys = jax.random.split(key, 8)
    w0, b0 = init_linear(keys[0], x_dim, h_dim, x_pad, h_pad)
    w1, b1 = init_linear(keys[1], h_dim, h_dim, h_pad, h_pad)
    w21, b21 = init_linear(keys[2], h_dim, z_dim, h_pad, z_pad)
    w22, b22 = init_linear(keys[3], h_dim, lt_dim, h_pad, lt_pad)
    w2, b2 = init_linear(keys[4], z_dim, h_dim, z_pad, h_pad)
    w3, b3 = init_linear(keys[5], h_dim, h_dim, h_pad, h_pad)
    w41, b41 = init_linear(keys[6], h_dim, x_dim, h_pad, x_pad)
    w42, b42 = init_linear(keys[7], h_dim, x_dim, h_pad, x_pad)

    # fuse the two encoder / decoder heads -> one lane-dense matmul each
    wenc = jnp.concatenate([w21, w22], axis=1)
    benc = jnp.concatenate([b21, b22], axis=1)
    wdec = jnp.concatenate([w41, w42], axis=1)
    bdec = jnp.concatenate([b41, b42], axis=1)

    weights = [w.astype(param_dtype) for w in (w0, w1, wenc, w2, w3, wdec)]
    biases = [b0, b1, benc, b2, b3, bdec]
    params = []
    for w, b in zip(weights, biases):
        params.extend([w, b])

    return dict(
        x_dim=x_dim, h_dim=h_dim, t_dim=t_dim, d_dim=d_dim, l_dim=l_dim,
        z_dim=z_dim, lt_dim=lt_dim,
        x_pad=x_pad, h_pad=h_pad, z_pad=z_pad, lt_pad=lt_pad,
        sum_log_diag_kh=sum_log_diag_kh,
        consts=consts, params=params,
    )


# ----------------------------------------------------------------------------
# Forward wrapper
# ----------------------------------------------------------------------------
def vae_bkdg_forward(model, x, eps, dist="gauss", tb=None):
    m = model
    x_dim, z_dim, lt_dim = m["x_dim"], m["z_dim"], m["lt_dim"]
    t_dim, d_dim, l_dim = m["t_dim"], m["d_dim"], m["l_dim"]
    x_pad, z_pad, lt_pad = m["x_pad"], m["z_pad"], m["lt_pad"]

    x = jnp.reshape(x, (-1, x_dim)).astype(jnp.float32)   # x.view(-1, x_dim)
    b_sz = x.shape[0]
    if tb is None:
        tb = _pick_tb(b_sz)
    assert b_sz % tb == 0, "batch must be divisible by the batch tile"
    n_tiles = b_sz // tb

    # zero-pad features to lane-dense widths (done once in XLA, tiny)
    x_p = jnp.zeros((b_sz, x_pad), jnp.float32).at[:, :x_dim].set(x)
    eps_p = jnp.zeros((b_sz, z_pad), jnp.float32).at[:, :z_dim].set(
        eps.astype(jnp.float32))

    kernel = functools.partial(
        vae_bkdg_kernel, d_dim=d_dim, z_pad=z_pad, x_pad=x_pad, dist=dist)

    consts = m["consts"]
    params = m["params"]

    def resident(arr):      # weights / constants: DMA once, stay resident
        return pl.BlockSpec(arr.shape, lambda i: (0, 0))

    in_specs = ([pl.BlockSpec((tb, x_pad), lambda i: (i, 0)),
                 pl.BlockSpec((tb, z_pad), lambda i: (i, 0))]
                + [resident(a) for a in consts]
                + [resident(a) for a in params])

    out_shape = (
        jax.ShapeDtypeStruct((n_tiles * 8, 128), jnp.float32),   # kld partials
        jax.ShapeDtypeStruct((n_tiles * 8, 128), jnp.float32),   # nll partials
        jax.ShapeDtypeStruct((b_sz, z_pad), jnp.float32),        # enc_mean
        jax.ShapeDtypeStruct((b_sz, lt_pad), jnp.float32),       # enc_cov
        jax.ShapeDtypeStruct((b_sz, x_pad), jnp.float32),        # dec_mean
        jax.ShapeDtypeStruct((b_sz, x_pad), jnp.float32),        # dec_cov
    )
    out_specs = (
        pl.BlockSpec((8, 128), lambda i: (i, 0)),
        pl.BlockSpec((8, 128), lambda i: (i, 0)),
        pl.BlockSpec((tb, z_pad), lambda i: (i, 0)),
        pl.BlockSpec((tb, lt_pad), lambda i: (i, 0)),
        pl.BlockSpec((tb, x_pad), lambda i: (i, 0)),
        pl.BlockSpec((tb, x_pad), lambda i: (i, 0)),
    )

    outs = pl.pallas_call(
        kernel,
        grid=(n_tiles,),
        in_specs=in_specs,
        out_specs=out_specs,
        out_shape=out_shape,
        compiler_params=pltpu.CompilerParams(
            dimension_semantics=("parallel",),
            vmem_limit_bytes=32 * 1024 * 1024),
    )(x_p, eps_p, *consts, *params)

    kld_part, nll_part, enc_mean_p, enc_cov_p, dec_mean_p, dec_cov_p = outs

    # each tile broadcast its scalar partial across an (8,128) slab
    kld_core = jnp.sum(kld_part[::8, 0])
    nll_core = jnp.sum(nll_part[::8, 0])

    # batch-independent KLD terms (ldet1, -b*t*l) and 1/b applied exactly once
    kld = 0.5 * (kld_core / b_sz - float(t_dim * l_dim)
                 + 2.0 * float(d_dim) * m["sum_log_diag_kh"])
    if dist == "gauss":
        nll = 0.5 * (nll_core / b_sz + x_dim * float(np.log(2.0 * np.pi)))
    else:
        # TODO(synk): as in the reference, 'bce' is only meaningful if
        # dec_mean is already a probability in [0, 1].
        nll = nll_core / float(b_sz * x_dim)

    enc = (enc_mean_p[:, :z_dim], enc_cov_p[:, :lt_dim])
    dec = (dec_mean_p[:, :x_dim], dec_cov_p[:, :x_dim])
    return kld, nll, enc, dec


# ----------------------------------------------------------------------------
if __name__ == "__main__":
    # small shapes consistent with the module: x_dim = t_dim * d_dim
    x_dim, h_dim, t_dim = 32, 32, 8       # -> d_dim=4, l_dim=10, z_dim=80
    batch = 32

    key = jax.random.PRNGKey(0)
    k_model, k_x, k_eps = jax.random.split(key, 3)

    model = make_vae_bkdg(x_dim, h_dim, t_dim, k_model)
    x = jax.random.uniform(k_x, (batch, x_dim), jnp.float32)
    eps = jax.random.normal(k_eps, (batch, model["z_dim"]), jnp.float32)

    # tb=16 -> grid=(2,) exercises the multi-tile / partial-loss path
    kld, nll, (enc_mean, enc_cov), (dec_mean, dec_cov) = vae_bkdg_forward(
        model, x, eps, dist="gauss", tb=16)

    jax.block_until_ready((kld, nll, enc_mean, enc_cov, dec_mean, dec_cov))
    print("KERNEL_OK")
</pallas_src>

<mosaic_0001>
module attributes {stable_mosaic.version = 11 : i64} {
  func.func @vae_bkdg_kernel(%arg0: i32, %arg1: memref<16x128xf32, #tpu.memory_space<vmem>>, %arg2: memref<16x128xf32, #tpu.memory_space<vmem>>, %arg3: memref<128x1024xf32, #tpu.memory_space<vmem>>, %arg4: memref<128x1024xf32, #tpu.memory_space<vmem>>, %arg5: memref<1024x128xf32, #tpu.memory_space<vmem>>, %arg6: memref<128x128xf32, #tpu.memory_space<vmem>>, %arg7: memref<128x128xf32, #tpu.memory_space<vmem>>, %arg8: memref<128x128xf32, #tpu.memory_space<vmem>>, %arg9: memref<1x128xf32, #tpu.memory_space<vmem>>, %arg10: memref<128x8xf32, #tpu.memory_space<vmem>>, %arg11: memref<128x128xbf16, #tpu.memory_space<vmem>>, %arg12: memref<1x128xf32, #tpu.memory_space<vmem>>, %arg13: memref<128x128xbf16, #tpu.memory_space<vmem>>, %arg14: memref<1x128xf32, #tpu.memory_space<vmem>>, %arg15: memref<128x256xbf16, #tpu.memory_space<vmem>>, %arg16: memref<1x256xf32, #tpu.memory_space<vmem>>, %arg17: memref<128x128xbf16, #tpu.memory_space<vmem>>, %arg18: memref<1x128xf32, #tpu.memory_space<vmem>>, %arg19: memref<128x128xbf16, #tpu.memory_space<vmem>>, %arg20: memref<1x128xf32, #tpu.memory_space<vmem>>, %arg21: memref<128x256xbf16, #tpu.memory_space<vmem>>, %arg22: memref<1x256xf32, #tpu.memory_space<vmem>>, %arg23: memref<8x128xf32, #tpu.memory_space<vmem>>, %arg24: memref<8x128xf32, #tpu.memory_space<vmem>>, %arg25: memref<16x128xf32, #tpu.memory_space<vmem>>, %arg26: memref<16x128xf32, #tpu.memory_space<vmem>>, %arg27: memref<16x128xf32, #tpu.memory_space<vmem>>, %arg28: memref<16x128xf32, #tpu.memory_space<vmem>>) attributes {dimension_semantics = [#tpu.dimension_semantics<parallel>], iteration_bounds = array<i64: 2>, scalar_prefetch = 0 : i64, scratch_operands = 0 : i64, tpu.core_type = #tpu.core_type<tc>, window_params = [{transform_indices = @transform_0, window_bounds = array<i64: 16, 128>}, {transform_indices = @transform_1, window_bounds = array<i64: 16, 128>}, {pipeline_mode = #tpu.pipeline_mode<synchronous>, transform_indices = @transform_2, window_bounds = array<i64: 128, 1024>}, {pipeline_mode = #tpu.pipeline_mode<synchronous>, transform_indices = @transform_3, window_bounds = array<i64: 128, 1024>}, {pipeline_mode = #tpu.pipeline_mode<synchronous>, transform_indices = @transform_4, window_bounds = array<i64: 1024, 128>}, {pipeline_mode = #tpu.pipeline_mode<synchronous>, transform_indices = @transform_5, window_bounds = array<i64: 128, 128>}, {pipeline_mode = #tpu.pipeline_mode<synchronous>, transform_indices = @transform_6, window_bounds = array<i64: 128, 128>}, {pipeline_mode = #tpu.pipeline_mode<synchronous>, transform_indices = @transform_7, window_bounds = array<i64: 128, 128>}, {pipeline_mode = #tpu.pipeline_mode<synchronous>, transform_indices = @transform_8, window_bounds = array<i64: 1, 128>}, {pipeline_mode = #tpu.pipeline_mode<synchronous>, transform_indices = @transform_9, window_bounds = array<i64: 128, 8>}, {pipeline_mode = #tpu.pipeline_mode<synchronous>, transform_indices = @transform_10, window_bounds = array<i64: 128, 128>}, {pipeline_mode = #tpu.pipeline_mode<synchronous>, transform_indices = @transform_11, window_bounds = array<i64: 1, 128>}, {pipeline_mode = #tpu.pipeline_mode<synchronous>, transform_indices = @transform_12, window_bounds = array<i64: 128, 128>}, {pipeline_mode = #tpu.pipeline_mode<synchronous>, transform_indices = @transform_13, window_bounds = array<i64: 1, 128>}, {pipeline_mode = #tpu.pipeline_mode<synchronous>, transform_indices = @transform_14, window_bounds = array<i64: 128, 256>}, {pipeline_mode = #tpu.pipeline_mode<synchronous>, transform_indices = @transform_15, window_bounds = array<i64: 1, 256>}, {pipeline_mode = #tpu.pipeline_mode<synchronous>, transform_indices = @transform_16, window_bounds = array<i64: 128, 128>}, {pipeline_mode = #tpu.pipeline_mode<synchronous>, transform_indices = @transform_17, window_bounds = array<i64: 1, 128>}, {pipeline_mode = #tpu.pipeline_mode<synchronous>, transform_indices = @transform_18, window_bounds = array<i64: 128, 128>}, {pipeline_mode = #tpu.pipeline_mode<synchronous>, transform_indices = @transform_19, window_bounds = array<i64: 1, 128>}, {pipeline_mode = #tpu.pipeline_mode<synchronous>, transform_indices = @transform_20, window_bounds = array<i64: 128, 256>}, {pipeline_mode = #tpu.pipeline_mode<synchronous>, transform_indices = @transform_21, window_bounds = array<i64: 1, 256>}, {transform_indices = @transform_22, window_bounds = array<i64: 8, 128>}, {transform_indices = @transform_23, window_bounds = array<i64: 8, 128>}, {transform_indices = @transform_24, window_bounds = array<i64: 16, 128>}, {transform_indices = @transform_25, window_bounds = array<i64: 16, 128>}, {transform_indices = @transform_26, window_bounds = array<i64: 16, 128>}, {transform_indices = @transform_27, window_bounds = array<i64: 16, 128>}]} {
    %c0 = arith.constant 0 : index
    %c0_0 = arith.constant 0 : index
    %0 = vector.load %arg1[%c0, %c0_0] : memref<16x128xf32, #tpu.memory_space<vmem>>, vector<16x128xf32>
    %1 = arith.truncf %0 : vector<16x128xf32> to vector<16x128xbf16>
    %c0_1 = arith.constant 0 : index
    %c0_2 = arith.constant 0 : index
    %2 = vector.load %arg11[%c0_1, %c0_2] : memref<128x128xbf16, #tpu.memory_space<vmem>>, vector<128x128xbf16>
    %cst = arith.constant dense<0.000000e+00> : vector<16x128xf32>
    %3 = tpu.matmul %1, %2, %cst {dimension_numbers = #tpu.dot_dimension_numbers<[1], [0], [0], [1], [0, 0, 1, 1], [], []>} : vector<16x128xbf16>, vector<128x128xbf16>, vector<16x128xf32> -> vector<16x128xf32>
    %c0_3 = arith.constant 0 : index
    %c0_4 = arith.constant 0 : index
    %4 = vector.load %arg12[%c0_3, %c0_4] : memref<1x128xf32, #tpu.memory_space<vmem>>, vector<1x128xf32>
    %5 = vector.broadcast %4 : vector<1x128xf32> to vector<16x128xf32>
    %6 = arith.addf %3, %5 : vector<16x128xf32>
    %cst_5 = arith.constant 0.000000e+00 : f32
    %7 = vector.broadcast %cst_5 : f32 to vector<16x128xf32>
    %8 = arith.maximumf %6, %7 : vector<16x128xf32>
    %9 = arith.truncf %8 : vector<16x128xf32> to vector<16x128xbf16>
    %c0_6 = arith.constant 0 : index
    %c0_7 = arith.constant 0 : index
    %10 = vector.load %arg13[%c0_6, %c0_7] : memref<128x128xbf16, #tpu.memory_space<vmem>>, vector<128x128xbf16>
    %cst_8 = arith.constant dense<0.000000e+00> : vector<16x128xf32>
    %11 = tpu.matmul %9, %10, %cst_8 {dimension_numbers = #tpu.dot_dimension_numbers<[1], [0], [0], [1], [0, 0, 1, 1], [], []>} : vector<16x128xbf16>, vector<128x128xbf16>, vector<16x128xf32> -> vector<16x128xf32>
    %c0_9 = arith.constant 0 : index
    %c0_10 = arith.constant 0 : index
    %12 = vector.load %arg14[%c0_9, %c0_10] : memref<1x128xf32, #tpu.memory_space<vmem>>, vector<1x128xf32>
    %13 = vector.broadcast %12 : vector<1x128xf32> to vector<16x128xf32>
    %14 = arith.addf %11, %13 : vector<16x128xf32>
    %15 = math.tanh %14 : vector<16x128xf32>
    %16 = arith.truncf %15 : vector<16x128xf32> to vector<16x128xbf16>
    %c0_11 = arith.constant 0 : index
    %c0_12 = arith.constant 0 : index
    %17 = vector.load %arg15[%c0_11, %c0_12] : memref<128x256xbf16, #tpu.memory_space<vmem>>, vector<128x256xbf16>
    %cst_13 = arith.constant dense<0.000000e+00> : vector<16x256xf32>
    %18 = tpu.matmul %16, %17, %cst_13 {dimension_numbers = #tpu.dot_dimension_numbers<[1], [0], [0], [1], [0, 0, 1, 1], [], []>} : vector<16x128xbf16>, vector<128x256xbf16>, vector<16x256xf32> -> vector<16x256xf32>
    %c0_14 = arith.constant 0 : index
    %c0_15 = arith.constant 0 : index
    %19 = vector.load %arg16[%c0_14, %c0_15] : memref<1x256xf32, #tpu.memory_space<vmem>>, vector<1x256xf32>
    %20 = vector.broadcast %19 : vector<1x256xf32> to vector<16x256xf32>
    %21 = arith.addf %18, %20 : vector<16x256xf32>
    %22 = vector.extract_strided_slice %21 {offsets = [0, 0], sizes = [16, 128], strides = [1, 1]} : vector<16x256xf32> to vector<16x128xf32>
    %23 = vector.extract_strided_slice %21 {offsets = [0, 128], sizes = [16, 128], strides = [1, 1]} : vector<16x256xf32> to vector<16x128xf32>
    %c0_16 = arith.constant 0 : index
    %c0_17 = arith.constant 0 : index
    %24 = vector.load %arg25[%c0_16, %c0_17] : memref<16x128xf32, #tpu.memory_space<vmem>>, vector<16x128xf32>
    tpu.vector_store %arg25[%c0_16, %c0_17], %22 {strides = array<i32>} : memref<16x128xf32, #tpu.memory_space<vmem>>, vector<16x128xf32>,
    %c0_18 = arith.constant 0 : index
    %c0_19 = arith.constant 0 : index
    %25 = vector.load %arg26[%c0_18, %c0_19] : memref<16x128xf32, #tpu.memory_space<vmem>>, vector<16x128xf32>
    tpu.vector_store %arg26[%c0_18, %c0_19], %23 {strides = array<i32>} : memref<16x128xf32, #tpu.memory_space<vmem>>, vector<16x128xf32>,
    %c0_20 = arith.constant 0 : index
    %c0_21 = arith.constant 0 : index
    %26 = vector.load %arg3[%c0_20, %c0_21] : memref<128x1024xf32, #tpu.memory_space<vmem>>, vector<128x1024xf32>
    %cst_22 = arith.constant dense<0.000000e+00> : vector<16x1024xf32>
    %27 = tpu.matmul %23, %26, %cst_22 {dimension_numbers = #tpu.dot_dimension_numbers<[1], [0], [0], [1], [0, 0, 1, 1], [], []>} : vector<16x128xf32>, vector<128x1024xf32>, vector<16x1024xf32> -> vector<16x1024xf32>
    %c0_23 = arith.constant 0 : index
    %c0_24 = arith.constant 0 : index
    %28 = vector.load %arg2[%c0_23, %c0_24] : memref<16x128xf32, #tpu.memory_space<vmem>>, vector<16x128xf32>
    %c0_25 = arith.constant 0 : index
    %c0_26 = arith.constant 0 : index
    %29 = vector.load %arg4[%c0_25, %c0_26] : memref<128x1024xf32, #tpu.memory_space<vmem>>, vector<128x1024xf32>
    %cst_27 = arith.constant dense<0.000000e+00> : vector<16x1024xf32>
    %30 = tpu.matmul %28, %29, %cst_27 {dimension_numbers = #tpu.dot_dimension_numbers<[1], [0], [0], [1], [0, 0, 1, 1], [], []>} : vector<16x128xf32>, vector<128x1024xf32>, vector<16x1024xf32> -> vector<16x1024xf32>
    %31 = arith.mulf %27, %30 : vector<16x1024xf32>
    %c0_28 = arith.constant 0 : index
    %c0_29 = arith.constant 0 : index
    %32 = vector.load %arg5[%c0_28, %c0_29] : memref<1024x128xf32, #tpu.memory_space<vmem>>, vector<1024x128xf32>
    %cst_30 = arith.constant dense<0.000000e+00> : vector<16x128xf32>
    %33 = tpu.matmul %31, %32, %cst_30 {dimension_numbers = #tpu.dot_dimension_numbers<[1], [0], [0], [1], [0, 0, 1, 1], [], []>} : vector<16x1024xf32>, vector<1024x128xf32>, vector<16x128xf32> -> vector<16x128xf32>
    %34 = arith.addf %22, %33 : vector<16x128xf32>
    %35 = arith.truncf %34 : vector<16x128xf32> to vector<16x128xbf16>
    %c0_31 = arith.constant 0 : index
    %c0_32 = arith.constant 0 : index
    %36 = vector.load %arg17[%c0_31, %c0_32] : memref<128x128xbf16, #tpu.memory_space<vmem>>, vector<128x128xbf16>
    %cst_33 = arith.constant dense<0.000000e+00> : vector<16x128xf32>
    %37 = tpu.matmul %35, %36, %cst_33 {dimension_numbers = #tpu.dot_dimension_numbers<[1], [0], [0], [1], [0, 0, 1, 1], [], []>} : vector<16x128xbf16>, vector<128x128xbf16>, vector<16x128xf32> -> vector<16x128xf32>
    %c0_34 = arith.constant 0 : index
    %c0_35 = arith.constant 0 : index
    %38 = vector.load %arg18[%c0_34, %c0_35] : memref<1x128xf32, #tpu.memory_space<vmem>>, vector<1x128xf32>
    %39 = vector.broadcast %38 : vector<1x128xf32> to vector<16x128xf32>
    %40 = arith.addf %37, %39 : vector<16x128xf32>
    %41 = math.tanh %40 : vector<16x128xf32>
    %42 = arith.truncf %41 : vector<16x128xf32> to vector<16x128xbf16>
    %c0_36 = arith.constant 0 : index
    %c0_37 = arith.constant 0 : index
    %43 = vector.load %arg19[%c0_36, %c0_37] : memref<128x128xbf16, #tpu.memory_space<vmem>>, vector<128x128xbf16>
    %cst_38 = arith.constant dense<0.000000e+00> : vector<16x128xf32>
    %44 = tpu.matmul %42, %43, %cst_38 {dimension_numbers = #tpu.dot_dimension_numbers<[1], [0], [0], [1], [0, 0, 1, 1], [], []>} : vector<16x128xbf16>, vector<128x128xbf16>, vector<16x128xf32> -> vector<16x128xf32>
    %c0_39 = arith.constant 0 : index
    %c0_40 = arith.constant 0 : index
    %45 = vector.load %arg20[%c0_39, %c0_40] : memref<1x128xf32, #tpu.memory_space<vmem>>, vector<1x128xf32>
    %46 = vector.broadcast %45 : vector<1x128xf32> to vector<16x128xf32>
    %47 = arith.addf %44, %46 : vector<16x128xf32>
    %cst_41 = arith.constant 0.000000e+00 : f32
    %48 = vector.broadcast %cst_41 : f32 to vector<16x128xf32>
    %49 = arith.maximumf %47, %48 : vector<16x128xf32>
    %50 = arith.truncf %49 : vector<16x128xf32> to vector<16x128xbf16>
    %c0_42 = arith.constant 0 : index
    %c0_43 = arith.constant 0 : index
    %51 = vector.load %arg21[%c0_42, %c0_43] : memref<128x256xbf16, #tpu.memory_space<vmem>>, vector<128x256xbf16>
    %cst_44 = arith.constant dense<0.000000e+00> : vector<16x256xf32>
    %52 = tpu.matmul %50, %51, %cst_44 {dimension_numbers = #tpu.dot_dimension_numbers<[1], [0], [0], [1], [0, 0, 1, 1], [], []>} : vector<16x128xbf16>, vector<128x256xbf16>, vector<16x256xf32> -> vector<16x256xf32>
    %c0_45 = arith.constant 0 : index
    %c0_46 = arith.constant 0 : index
    %53 = vector.load %arg22[%c0_45, %c0_46] : memref<1x256xf32, #tpu.memory_space<vmem>>, vector<1x256xf32>
    %54 = vector.broadcast %53 : vector<1x256xf32> to vector<16x256xf32>
    %55 = arith.addf %52, %54 : vector<16x256xf32>
    %56 = vector.extract_strided_slice %55 {offsets = [0, 0], sizes = [16, 128], strides = [1, 1]} : vector<16x256xf32> to vector<16x128xf32>
    %57 = vector.extract_strided_slice %55 {offsets = [0, 128], sizes = [16, 128], strides = [1, 1]} : vector<16x256xf32> to vector<16x128xf32>
    %c0_47 = arith.constant 0 : index
    %c0_48 = arith.constant 0 : index
    %58 = vector.load %arg27[%c0_47, %c0_48] : memref<16x128xf32, #tpu.memory_space<vmem>>, vector<16x128xf32>
    tpu.vector_store %arg27[%c0_47, %c0_48], %56 {strides = array<i32>} : memref<16x128xf32, #tpu.memory_space<vmem>>, vector<16x128xf32>,
    %c0_49 = arith.constant 0 : index
    %c0_50 = arith.constant 0 : index
    %59 = vector.load %arg28[%c0_49, %c0_50] : memref<16x128xf32, #tpu.memory_space<vmem>>, vector<16x128xf32>
    tpu.vector_store %arg28[%c0_49, %c0_50], %57 {strides = array<i32>} : memref<16x128xf32, #tpu.memory_space<vmem>>, vector<16x128xf32>,
    %c0_51 = arith.constant 0 : index
    %c0_52 = arith.constant 0 : index
    %60 = vector.load %arg6[%c0_51, %c0_52] : memref<128x128xf32, #tpu.memory_space<vmem>>, vector<128x128xf32>
    %cst_53 = arith.constant dense<0.000000e+00> : vector<16x128xf32>
    %61 = tpu.matmul %23, %60, %cst_53 {dimension_numbers = #tpu.dot_dimension_numbers<[1], [0], [0], [1], [0, 0, 1, 1], [], []>} : vector<16x128xf32>, vector<128x128xf32>, vector<16x128xf32> -> vector<16x128xf32>
    %c0_54 = arith.constant 0 : index
    %c0_55 = arith.constant 0 : index
    %62 = vector.load %arg7[%c0_54, %c0_55] : memref<128x128xf32, #tpu.memory_space<vmem>>, vector<128x128xf32>
    %cst_56 = arith.constant dense<0.000000e+00> : vector<16x128xf32>
    %63 = tpu.matmul %23, %62, %cst_56 {dimension_numbers = #tpu.dot_dimension_numbers<[1], [0], [0], [1], [0, 0, 1, 1], [], []>} : vector<16x128xf32>, vector<128x128xf32>, vector<16x128xf32> -> vector<16x128xf32>
    %64 = arith.mulf %61, %63 : vector<16x128xf32>
    %65 = vector.shape_cast %64 : vector<16x128xf32> to vector<1x16x128xf32>
    %cst_57 = arith.constant dense<0.000000e+00> : vector<1xf32>
    %66 = vector.multi_reduction <add>, %65, %cst_57 [1, 2] : vector<1x16x128xf32> to vector<1xf32>
    %67 = vector.shape_cast %66 : vector<1xf32> to vector<1x1x1xf32>
    %68 = vector.extract %67[0, 0, 0] : f32 from vector<1x1x1xf32>
    %69 = vector.broadcast %68 : f32 to vector<1x1xf32>
    %cst_58 = arith.constant 4.000000e+00 : f32
    %70 = vector.broadcast %cst_58 : f32 to vector<1x1xf32>
    %71 = arith.mulf %70, %69 : vector<1x1xf32>
    %c0_59 = arith.constant 0 : index
    %c0_60 = arith.constant 0 : index
    %72 = vector.load %arg9[%c0_59, %c0_60] : memref<1x128xf32, #tpu.memory_space<vmem>>, vector<1x128xf32>
    %73 = vector.broadcast %72 : vector<1x128xf32> to vector<16x128xf32>
    %74 = arith.subf %73, %22 : vector<16x128xf32>
    %c0_61 = arith.constant 0 : index
    %c0_62 = arith.constant 0 : index
    %75 = vector.load %arg8[%c0_61, %c0_62] : memref<128x128xf32, #tpu.memory_space<vmem>>, vector<128x128xf32>
    %cst_63 = arith.constant dense<0.000000e+00> : vector<16x128xf32>
    %76 = tpu.matmul %74, %75, %cst_63 {dimension_numbers = #tpu.dot_dimension_numbers<[1], [0], [0], [1], [0, 0, 1, 1], [], []>} : vector<16x128xf32>, vector<128x128xf32>, vector<16x128xf32> -> vector<16x128xf32>
    %77 = arith.mulf %74, %76 : vector<16x128xf32>
    %78 = vector.shape_cast %77 : vector<16x128xf32> to vector<1x16x128xf32>
    %cst_64 = arith.constant dense<0.000000e+00> : vector<1xf32>
    %79 = vector.multi_reduction <add>, %78, %cst_64 [1, 2] : vector<1x16x128xf32> to vector<1xf32>
    %80 = vector.shape_cast %79 : vector<1xf32> to vector<1x1x1xf32>
    %81 = vector.extract %80[0, 0, 0] : f32 from vector<1x1x1xf32>
    %82 = vector.broadcast %81 : f32 to vector<1x1xf32>
    %c0_65 = arith.constant 0 : index
    %c0_66 = arith.constant 0 : index
    %83 = vector.load %arg10[%c0_65, %c0_66] : memref<128x8xf32, #tpu.memory_space<vmem>>, vector<128x8xf32>
    %cst_67 = arith.constant dense<0.000000e+00> : vector<16x8xf32>
    %84 = tpu.matmul %23, %83, %cst_67 {dimension_numbers = #tpu.dot_dimension_numbers<[1], [0], [0], [1], [0, 0, 1, 1], [], []>} : vector<16x128xf32>, vector<128x8xf32>, vector<16x8xf32> -> vector<16x8xf32>
    %85 = math.absf %84 : vector<16x8xf32>
    %86 = math.log %85 : vector<16x8xf32>
    %87 = vector.shape_cast %86 : vector<16x8xf32> to vector<1x16x8xf32>
    %cst_68 = arith.constant dense<0.000000e+00> : vector<1xf32>
    %88 = vector.multi_reduction <add>, %87, %cst_68 [1, 2] : vector<1x16x8xf32> to vector<1xf32>
    %89 = vector.shape_cast %88 : vector<1xf32> to vector<1x1x1xf32>
    %90 = vector.extract %89[0, 0, 0] : f32 from vector<1x1x1xf32>
    %91 = vector.broadcast %90 : f32 to vector<1x1xf32>
    %cst_69 = arith.constant 8.000000e+00 : f32
    %92 = vector.broadcast %cst_69 : f32 to vector<1x1xf32>
    %93 = arith.mulf %92, %91 : vector<1x1xf32>
    %94 = arith.addf %71, %82 : vector<1x1xf32>
    %95 = arith.subf %94, %93 : vector<1x1xf32>
    %96 = vector.shape_cast %95 : vector<1x1xf32> to vector<1x1xf32>
    %97 = vector.broadcast %96 : vector<1x1xf32> to vector<8x128xf32>
    %c0_70 = arith.constant 0 : index
    %c0_71 = arith.constant 0 : index
    %98 = vector.load %arg23[%c0_70, %c0_71] : memref<8x128xf32, #tpu.memory_space<vmem>>, vector<8x128xf32>
    tpu.vector_store %arg23[%c0_70, %c0_71], %97 {strides = array<i32>} : memref<8x128xf32, #tpu.memory_space<vmem>>, vector<8x128xf32>,
    %99 = arith.subf %0, %56 : vector<16x128xf32>
    %cst_72 = arith.constant 0.000000e+00 : f32
    %100 = vector.broadcast %cst_72 : f32 to vector<16x128xf32>
    %101 = arith.subf %100, %57 : vector<16x128xf32>
    %102 = math.exp %101 : vector<16x128xf32>
    %103 = arith.mulf %102, %99 : vector<16x128xf32>
    %104 = arith.mulf %103, %99 : vector<16x128xf32>
    %105 = arith.addf %57, %104 : vector<16x128xf32>
    %106 = vector.shape_cast %105 : vector<16x128xf32> to vector<1x16x128xf32>
    %cst_73 = arith.constant dense<0.000000e+00> : vector<1xf32>
    %107 = vector.multi_reduction <add>, %106, %cst_73 [1, 2] : vector<1x16x128xf32> to vector<1xf32>
    %108 = vector.shape_cast %107 : vector<1xf32> to vector<1x1x1xf32>
    %109 = vector.extract %108[0, 0, 0] : f32 from vector<1x1x1xf32>
    %110 = vector.broadcast %109 : f32 to vector<1x1xf32>
    %111 = vector.shape_cast %110 : vector<1x1xf32> to vector<1x1xf32>
    %112 = vector.broadcast %111 : vector<1x1xf32> to vector<8x128xf32>
    %c0_74 = arith.constant 0 : index
    %c0_75 = arith.constant 0 : index
    %113 = vector.load %arg24[%c0_74, %c0_75] : memref<8x128xf32, #tpu.memory_space<vmem>>, vector<8x128xf32>
    tpu.vector_store %arg24[%c0_74, %c0_75], %112 {strides = array<i32>} : memref<8x128xf32, #tpu.memory_space<vmem>>, vector<8x128xf32>,
    return
  }
  func.func @transform_0(%arg0: i32) -> (i32, i32) {
    %c0_i32 = arith.constant 0 : i32
    %c0_i32_0 = arith.constant 0 : i32
    return %arg0, %c0_i32 : i32, i32
  }
  func.func @transform_1(%arg0: i32) -> (i32, i32) {
    %c0_i32 = arith.constant 0 : i32
    %c0_i32_0 = arith.constant 0 : i32
    return %arg0, %c0_i32 : i32, i32
  }
  func.func @transform_2(%arg0: i32) -> (i32, i32) {
    %c0_i32 = arith.constant 0 : i32
    %c0_i32_0 = arith.constant 0 : i32
    %c0_i32_1 = arith.constant 0 : i32
    return %c0_i32, %c0_i32_0 : i32, i32
  }
  func.func @transform_3(%arg0: i32) -> (i32, i32) {
    %c0_i32 = arith.constant 0 : i32
    %c0_i32_0 = arith.constant 0 : i32
    %c0_i32_1 = arith.constant 0 : i32
    return %c0_i32, %c0_i32_0 : i32, i32
  }
  func.func @transform_4(%arg0: i32) -> (i32, i32) {
    %c0_i32 = arith.constant 0 : i32
    %c0_i32_0 = arith.constant 0 : i32
    %c0_i32_1 = arith.constant 0 : i32
    return %c0_i32, %c0_i32_0 : i32, i32
  }
  func.func @transform_5(%arg0: i32) -> (i32, i32) {
    %c0_i32 = arith.constant 0 : i32
    %c0_i32_0 = arith.constant 0 : i32
    %c0_i32_1 = arith.constant 0 : i32
    return %c0_i32, %c0_i32_0 : i32, i32
  }
  func.func @transform_6(%arg0: i32) -> (i32, i32) {
    %c0_i32 = arith.constant 0 : i32
    %c0_i32_0 = arith.constant 0 : i32
    %c0_i32_1 = arith.constant 0 : i32
    return %c0_i32, %c0_i32_0 : i32, i32
  }
  func.func @transform_7(%arg0: i32) -> (i32, i32) {
    %c0_i32 = arith.constant 0 : i32
    %c0_i32_0 = arith.constant 0 : i32
    %c0_i32_1 = arith.constant 0 : i32
    return %c0_i32, %c0_i32_0 : i32, i32
  }
  func.func @transform_8(%arg0: i32) -> (i32, i32) {
    %c0_i32 = arith.constant 0 : i32
    %c0_i32_0 = arith.constant 0 : i32
    %c0_i32_1 = arith.constant 0 : i32
    return %c0_i32, %c0_i32_0 : i32, i32
  }
  func.func @transform_9(%arg0: i32) -> (i32, i32) {
    %c0_i32 = arith.constant 0 : i32
    %c0_i32_0 = arith.constant 0 : i32
    %c0_i32_1 = arith.constant 0 : i32
    return %c0_i32, %c0_i32_0 : i32, i32
  }
  func.func @transform_10(%arg0: i32) -> (i32, i32) {
    %c0_i32 = arith.constant 0 : i32
    %c0_i32_0 = arith.constant 0 : i32
    %c0_i32_1 = arith.constant 0 : i32
    return %c0_i32, %c0_i32_0 : i32, i32
  }
  func.func @transform_11(%arg0: i32) -> (i32, i32) {
    %c0_i32 = arith.constant 0 : i32
    %c0_i32_0 = arith.constant 0 : i32
    %c0_i32_1 = arith.constant 0 : i32
    return %c0_i32, %c0_i32_0 : i32, i32
  }
  func.func @transform_12(%arg0: i32) -> (i32, i32) {
    %c0_i32 = arith.constant 0 : i32
    %c0_i32_0 = arith.constant 0 : i32
    %c0_i32_1 = arith.constant 0 : i32
    return %c0_i32, %c0_i32_0 : i32, i32
  }
  func.func @transform_13(%arg0: i32) -> (i32, i32) {
    %c0_i32 = arith.constant 0 : i32
    %c0_i32_0 = arith.constant 0 : i32
    %c0_i32_1 = arith.constant 0 : i32
    return %c0_i32, %c0_i32_0 : i32, i32
  }
  func.func @transform_14(%arg0: i32) -> (i32, i32) {
    %c0_i32 = arith.constant 0 : i32
    %c0_i32_0 = arith.constant 0 : i32
    %c0_i32_1 = arith.constant 0 : i32
    return %c0_i32, %c0_i32_0 : i32, i32
  }
  func.func @transform_15(%arg0: i32) -> (i32, i32) {
    %c0_i32 = arith.constant 0 : i32
    %c0_i32_0 = arith.constant 0 : i32
    %c0_i32_1 = arith.constant 0 : i32
    return %c0_i32, %c0_i32_0 : i32, i32
  }
  func.func @transform_16(%arg0: i32) -> (i32, i32) {
    %c0_i32 = arith.constant 0 : i32
    %c0_i32_0 = arith.constant 0 : i32
    %c0_i32_1 = arith.constant 0 : i32
    return %c0_i32, %c0_i32_0 : i32, i32
  }
  func.func @transform_17(%arg0: i32) -> (i32, i32) {
    %c0_i32 = arith.constant 0 : i32
    %c0_i32_0 = arith.constant 0 : i32
    %c0_i32_1 = arith.constant 0 : i32
    return %c0_i32, %c0_i32_0 : i32, i32
  }
  func.func @transform_18(%arg0: i32) -> (i32, i32) {
    %c0_i32 = arith.constant 0 : i32
    %c0_i32_0 = arith.constant 0 : i32
    %c0_i32_1 = arith.constant 0 : i32
    return %c0_i32, %c0_i32_0 : i32, i32
  }
  func.func @transform_19(%arg0: i32) -> (i32, i32) {
    %c0_i32 = arith.constant 0 : i32
    %c0_i32_0 = arith.constant 0 : i32
    %c0_i32_1 = arith.constant 0 : i32
    return %c0_i32, %c0_i32_0 : i32, i32
  }
  func.func @transform_20(%arg0: i32) -> (i32, i32) {
    %c0_i32 = arith.constant 0 : i32
    %c0_i32_0 = arith.constant 0 : i32
    %c0_i32_1 = arith.constant 0 : i32
    return %c0_i32, %c0_i32_0 : i32, i32
  }
  func.func @transform_21(%arg0: i32) -> (i32, i32) {
    %c0_i32 = arith.constant 0 : i32
    %c0_i32_0 = arith.constant 0 : i32
    %c0_i32_1 = arith.constant 0 : i32
    return %c0_i32, %c0_i32_0 : i32, i32
  }
  func.func @transform_22(%arg0: i32) -> (i32, i32) {
    %c0_i32 = arith.constant 0 : i32
    %c0_i32_0 = arith.constant 0 : i32
    return %arg0, %c0_i32 : i32, i32
  }
  func.func @transform_23(%arg0: i32) -> (i32, i32) {
    %c0_i32 = arith.constant 0 : i32
    %c0_i32_0 = arith.constant 0 : i32
    return %arg0, %c0_i32 : i32, i32
  }
  func.func @transform_24(%arg0: i32) -> (i32, i32) {
    %c0_i32 = arith.constant 0 : i32
    %c0_i32_0 = arith.constant 0 : i32
    return %arg0, %c0_i32 : i32, i32
  }
  func.func @transform_25(%arg0: i32) -> (i32, i32) {
    %c0_i32 = arith.constant 0 : i32
    %c0_i32_0 = arith.constant 0 : i32
    return %arg0, %c0_i32 : i32, i32
  }
  func.func @transform_26(%arg0: i32) -> (i32, i32) {
    %c0_i32 = arith.constant 0 : i32
    %c0_i32_0 = arith.constant 0 : i32
    return %arg0, %c0_i32 : i32, i32
  }
  func.func @transform_27(%arg0: i32) -> (i32, i32) {
    %c0_i32 = arith.constant 0 : i32
    %c0_i32_0 = arith.constant 0 : i32
    return %arg0, %c0_i32 : i32, i32
  }
}

</mosaic_0001>

<bundles_post_ra>
// kernel: tpu_custom_call.1
= control target key start
LH: loop header
LB: loop body
LE: loop exit
PB: predicated region body
PF: predicated region fallthrough
CT: control target
= control target key end

     0   :  { %s7569_s0 = inlined_call_operand.hbm [shape: f32[32,128], index: 0, kind: input, shape index: {}]   ;;  %s7570_s1 = inlined_call_operand.hbm [shape: f32[32,128], index: 1, kind: input, shape index: {}]   ;;  %s7571_s2 = inlined_call_operand.hbm [shape: f32[128,1024], index: 2, kind: input, shape index: {}]   ;;  %s7572_s3 = inlined_call_operand.hbm [shape: f32[128,1024], index: 3, kind: input, shape index: {}]   ;;  %s7573_s4 = inlined_call_operand.hbm [shape: f32[1024,128], index: 4, kind: input, shape index: {}]   ;;  %s7574_s5 = inlined_call_operand.vmem [shape: f32[128,128], index: 5, kind: input, shape index: {}]   ;;  %s7575_s6 = inlined_call_operand.hbm [shape: f32[128,128], index: 6, kind: input, shape index: {}]   ;;  %s7576_s7 = inlined_call_operand.hbm [shape: f32[128,128], index: 7, kind: input, shape index: {}]   ;;  %s7577_s8 = inlined_call_operand.hbm [shape: f32[1,128], index: 8, kind: input, shape index: {}]   ;;  %s7578_s9 = inlined_call_operand.vmem [shape: f32[128,8], index: 9, kind: input, shape index: {}]   ;;  %s7579_s10 = inlined_call_operand.hbm [shape: bf16[128,128], index: 10, kind: input, shape index: {}]   ;;  %s7580_s11 = inlined_call_operand.hbm [shape: f32[1,128], index: 11, kind: input, shape index: {}]   ;;  %s7581_s12 = inlined_call_operand.hbm [shape: bf16[128,128], index: 12, kind: input, shape index: {}]   ;;  %s7582_s13 = inlined_call_operand.hbm [shape: f32[1,128], index: 13, kind: input, shape index: {}]   ;;  %s7583_s14 = inlined_call_operand.hbm [shape: bf16[128,256], index: 14, kind: input, shape index: {}]   ;;  %s7584_s15 = inlined_call_operand.hbm [shape: f32[1,256], index: 15, kind: input, shape index: {}]   ;;  %s7585_s16 = inlined_call_operand.vmem [shape: bf16[128,128], index: 16, kind: input, shape index: {}]   ;;  %s7586_s17 = inlined_call_operand.vmem [shape: f32[1,128], index: 17, kind: input, shape index: {}]   ;;  %s7587_s18 = inlined_call_operand.hbm [shape: bf16[128,128], index: 18, kind: input, shape index: {}]   ;;  %s7588_s19 = inlined_call_operand.vmem [shape: f32[1,128], index: 19, kind: input, shape index: {}]   ;;  %s7589_s20 = inlined_call_operand.hbm [shape: bf16[128,256], index: 20, kind: input, shape index: {}]   ;;  %s7590_s21 = inlined_call_operand.vmem [shape: f32[1,256], index: 21, kind: input, shape index: {}]   ;;  %s7591_s22 = inlined_call_operand.hbm [shape: f32[16,128], index: 22, kind: output, shape index: {0}]   ;;  %s7592_s23 = inlined_call_operand.hbm [shape: f32[16,128], index: 23, kind: output, shape index: {1}]   ;;  %s7593_s24 = inlined_call_operand.hbm [shape: f32[32,128], index: 24, kind: output, shape index: {2}]   ;;  %s7594_s25 = inlined_call_operand.hbm [shape: f32[32,128], index: 25, kind: output, shape index: {3}]   ;;  %s7595_s26 = inlined_call_operand.hbm [shape: f32[32,128], index: 26, kind: output, shape index: {4}]   ;;  %s7596_s27 = inlined_call_operand.hbm [shape: f32[32,128], index: 27, kind: output, shape index: {5}]  }
   0x1   :  { %7645 = sst [smem:[#allocation52_spill]] %s7569_s0 }
   0x2   :  { %7646 = sst [smem:[#allocation53_spill]] %s7570_s1 }
   0x3   :  { %7647 = sst [smem:[#allocation54_spill]] %s7571_s2 }
   0x4   :  { %7648 = sst [smem:[#allocation55_spill]] %s7572_s3 }
   0x5   :  { %7649 = sst [smem:[#allocation56_spill]] %s7573_s4 }
   0x6   :  { %7650 = sst [smem:[#allocation57_spill]] %s7574_s5 }
   0x7   :  { %7651 = sst [smem:[#allocation58_spill]] %s7575_s6 }
   0x8   :  { %7652 = sst [smem:[#allocation59_spill]] %s7576_s7 }
   0x9   :  { %7653 = sst [smem:[#allocation60_spill]] %s7577_s8 }
   0xa   :  { %7654 = sst [smem:[#allocation61_spill]] %s7578_s9 }
   0xb   :  { %7655 = sst [smem:[#allocation62_spill]] %s7579_s10 }
   0xc   :  { %7656 = sst [smem:[#allocation63_spill]] %s7580_s11 }
   0xd   :  { %7657 = sst [smem:[#allocation64_spill]] %s7581_s12 }
   0xe   :  { %7658 = sst [smem:[#allocation65_spill]] %s7582_s13 }
   0xf   :  { %7659 = sst [smem:[#allocation66_spill]] %s7583_s14 }
  0x10   :  { %7660 = sst [smem:[#allocation67_spill]] %s7584_s15 }
  0x11   :  { %7661 = sst [smem:[#allocation68_spill]] %s7585_s16 }
  0x12   :  { %7662 = sst [smem:[#allocation69_spill]] %s7586_s17 }
  0x13   :  { %7663 = sst [smem:[#allocation70_spill]] %s7587_s18 }
  0x14   :  { %7664 = sst [smem:[#allocation71_spill]] %s7588_s19 }
  0x15   :  { %7665 = sst [smem:[#allocation72_spill]] %s7589_s20 }
  0x16   :  { %7666 = sst [smem:[#allocation73_spill]] %s7590_s21 }
  0x17   :  { %7667 = sst [smem:[#allocation74_spill]] %s7591_s22 }
  0x18   :  { %7668 = sst [smem:[#allocation75_spill]] %s7592_s23 }
  0x19   :  { %7669 = sst [smem:[#allocation76_spill]] %s7593_s24 }
  0x1a   :  { %7670 = sst [smem:[#allocation77_spill]] %s7594_s25 }
  0x1b   :  { %7671 = sst [smem:[#allocation78_spill]] %s7595_s26 }
  0x1c   :  { %7672 = sst [smem:[#allocation79_spill]] %s7596_s27 }
  0x1d   :  { %33 = vsyncpa [#allocation3], 0 }
  0x1e   :  { %35 = vsyncpa [#allocation3 + $0x1], 0 }
  0x1f   :  { %36 = vsyncpa [#allocation6], 0 }
  0x20   :  { %38 = vsyncpa [#allocation6 + $0x1], 0 }
  0x21   :  { %39 = vsyncpa [#allocation9], 0 }
  0x22   :  { %40 = vsyncpa [#allocation12], 0 }
  0x23   :  { %41 = vsyncpa [#allocation15], 0 }
  0x24   :  { %42 = vsyncpa [#allocation18], 0 }
  0x25   :  { %43 = vsyncpa [#allocation21], 0 }
  0x26   :  { %44 = vsyncpa [#allocation24], 0 }
  0x27   :  { %45 = vsyncpa [#allocation27], 0 }
  0x28   :  { %46 = vsyncpa [#allocation4], 0 }
  0x29   :  { %48 = vsyncpa [#allocation4 + $0x1], 0 }
  0x2a   :  { %49 = vsyncpa [#allocation30], 0 }
  0x2b   :  { %51 = vsyncpa [#allocation30 + $0x1], 0 }
  0x2c   :  { %52 = vsyncpa [#allocation33], 0 }
  0x2d   :  { %54 = vsyncpa [#allocation33 + $0x1], 0 }
  0x2e   :  { %55 = vsyncpa [#allocation36], 0 }
  0x2f   :  { %57 = vsyncpa [#allocation36 + $0x1], 0  ;;  %s6512_s7 = smov 0   ;;  %s6514_s4 = smov 0  }
  0x30   :  { %s6516_s8 = smov 0   ;;  %s6518_s30 = smov 0  }
  0x31 LB: > { %s6340_s9 = smov [#allocation7]   ;;  %s6533_s28 = sadd.s32 4294967295, %s6338_s30   ;;  %s6338_s30 = sphi %s6518_s30, %s7744_s30   ;;  %s6334_s8 = sphi %s6516_s8, %s7743_s8   ;;  %s6330_s4 = sphi %s6514_s4, %s7742_s4   ;;  %s6326_s7 = sphi %s6512_s7, %s7741_s7  }
  0x32   : > { %s708_s5 = sshll.u32 %s6340_s9, 4  ;;  %p4165_p0 = scmp.ge.s32.totalorder %s6338_s30, 1  ;;  %s6538_s5 = int_to_ptr.vmem [resolvable:$true] %s708_s5 }
  0x33   : > { %p7615_p1 = scmp.eq.s32.totalorder %s6533_s28, 0  ;;  %p696_p2 = scmp.lt.s32.totalorder %s6338_s30, 3 }
  0x34   : > { %s6341_s10 = smov [#allocation8]   ;;  %s6342_s6 = smov [#allocation11]  }
  0x35   : > { %p6540_p3 = pnand %p4165_p0, %p696_p2  ;;  %s721_s29 = sshll.u32 %s6341_s10, 4  ;;  %s6553_s29 = int_to_ptr.vmem [resolvable:$true] %s721_s29 }
  0x36   : > { %s6555_s11 = sshll.u32 %s6342_s6, 4  ;;  %s7676_s9 = sld [smem:[#allocation54_spill]]  ;;  %s751_s11 = int_to_ptr.vmem [resolvable:$true] %s6555_s11 }
  0x37   : > { %s7673_s0 = scalar_select %p6540_p3, 1, 0 }
  0x38   : > { %p5375_p5 = pneg %p6540_p3 }
  0x39   : > { %7674 = sst [smem:[#allocation51_spill]] %s7673_s0 }
  0x3a   : > { %p6549_p6 = pnand %p5375_p5, %p7615_p1 }
  0x3c   : > { %s5632_s24 = scalar_lea.hbm %s7676_s9, 16384  ;;  %p6565_p8 = pneg %p6549_p6 }
  0x3d   : > { %p5633_p7 = scmp.ne.s32.totalorder %s7676_s9, %s5632_s24  ;;  %p5639_p11 = scmp.lt.u32.totalorder %s5632_s24, %s7676_s9 }
  0x3f   : > { %p5635_p9 = pnand %p6565_p8, %p5633_p7 }
  0x41   : > { %p5636_p10 = pneg %p5635_p9 }
  0x43   : > { %p5641_p12 = pnand %p5639_p11, %p5636_p10 }
  0x45   : > { %5644 = shalt.err (!%p5641_p12)
}
  0x46   : > { %s5645_s22 = scalar_lea.vmem %s6538_s5, 16384  ;;  %p5653_p5 = scmp.lt.s32.totalorder %s6538_s5, %s6538_s5 }
  0x47   : > { %p5646_p13 = scmp.ne.s32.totalorder %s6538_s5, %s5645_s22  ;;  %p5654_p4 = scmp.lt.s32.totalorder %s5645_s22, %s5645_s22 }
  0x49   : > { %p5648_p0 = pnand %p5646_p13, %p6565_p8  ;;  %p5655_p7 = por %p5654_p4, %p5653_p5 }
  0x4b   : > { %p5649_p2 = pneg %p5648_p0 }
  0x4d   : > { %p5656_p9 = pnand %p5655_p7, %p5649_p2 }
  0x4f   : > { %5659 = shalt.err (!%p5656_p9)
}
  0x50   : > { %s6343_s23 = smov 1024   ;;  %s7617_s24 = smov 64  }
  0x51   : > { %5378 = dma.hbm_to_vmem [thread:$0]  (!%p6549_p6), %s7676_s9, 16384, %s6538_s5, [#allocation6], %s6343_s23, %s6343_s23, %s7617_s24  }
  0x52   : > { %s7678_s26 = sld [smem:[#allocation55_spill]] }
  0x58   : > { %s5660_s25 = scalar_lea.hbm %s7678_s26, 16384 }
  0x59   : > { %p5661_p4 = scmp.ne.s32.totalorder %s7678_s26, %s5660_s25  ;;  %p5667_p12 = scmp.lt.u32.totalorder %s5660_s25, %s7678_s26 }
  0x5b   : > { %p5663_p10 = pnand %p5661_p4, %p6565_p8 }
  0x5d   : > { %p5664_p11 = pneg %p5663_p10 }
  0x5f   : > { %p5669_p13 = pnand %p5667_p12, %p5664_p11 }
  0x61   : > { %5672 = shalt.err (!%p5669_p13)
}
  0x62   : > { %s5673_s5 = scalar_lea.vmem %s6553_s29, 16384  ;;  %p5681_p7 = scmp.lt.s32.totalorder %s6553_s29, %s6553_s29 }
  0x63   : > { %p5674_p0 = scmp.ne.s32.totalorder %s6553_s29, %s5673_s5  ;;  %p5682_p9 = scmp.lt.s32.totalorder %s5673_s5, %s5673_s5 }
  0x65   : > { %p5676_p2 = pnand %p5674_p0, %p6565_p8  ;;  %p5683_p4 = por %p5682_p9, %p5681_p7 }
  0x67   : > { %p5677_p5 = pneg %p5676_p2 }
  0x69   : > { %p5684_p10 = pnand %p5683_p4, %p5677_p5 }
  0x6b   : > { %5687 = shalt.err (!%p5684_p10)
}
  0x6c   : > { %5381 = dma.hbm_to_vmem [thread:$0]  (!%p6549_p6), %s7678_s26, 16384, %s6553_s29, [#allocation9], %s6343_s23, %s6343_s23, %s7617_s24  }
  0x6d   : > { %s7679_s27 = sld [smem:[#allocation58_spill]] }
  0x73   : > { %s5688_s2 = scalar_lea.hbm %s7679_s27, 2048 }
  0x74   : > { %p5689_p11 = scmp.ne.s32.totalorder %s7679_s27, %s5688_s2  ;;  %p5695_p0 = scmp.lt.u32.totalorder %s5688_s2, %s7679_s27 }
  0x76   : > { %p5691_p12 = pnand %p5689_p11, %p6565_p8 }
  0x78   : > { %p5692_p13 = pneg %p5691_p12 }
  0x7a   : > { %p5697_p2 = pnand %p5695_p0, %p5692_p13 }
  0x7c   : > { %5700 = shalt.err (!%p5697_p2)
}
  0x7d   : > { %s5701_s17 = scalar_lea.vmem %s751_s11, 2048  ;;  %p5709_p4 = scmp.lt.s32.totalorder %s751_s11, %s751_s11 }
  0x7e   : > { %p5702_p5 = scmp.ne.s32.totalorder %s751_s11, %s5701_s17  ;;  %p5710_p10 = scmp.lt.s32.totalorder %s5701_s17, %s5701_s17 }
  0x80   : > { %p5704_p7 = pnand %p5702_p5, %p6565_p8  ;;  %p5711_p1 = por %p5710_p10, %p5709_p4 }
  0x82   : > { %p5705_p9 = pneg %p5704_p7 }
  0x84   : > { %p5712_p3 = pnand %p5711_p1, %p5705_p9 }
  0x86   : > { %5715 = shalt.err (!%p5712_p3)
}
  0x87   : > { %s7623_s29 = smov 128   ;;  %s7626_s23 = smov 8  }
  0x88   : > { %5387 = dma.hbm_to_vmem [thread:$0]  (!%p6549_p6), %s7679_s27, 2048, %s751_s11, [#allocation12], %s7623_s29, %s7623_s29, %s7626_s23  }
  0x89   : > { %s6347_s25 = smov [#allocation14]   ;;  %s6348_s3 = smov [#allocation17]  }
  0x8a   : > { %s777_s2 = sshll.u32 %s6347_s25, 4  ;;  %s804_s6 = sshll.u32 %s6348_s3, 4  ;;  %s778_s2 = int_to_ptr.vmem [resolvable:$true] %s777_s2  ;;  %s805_s6 = int_to_ptr.vmem [resolvable:$true] %s804_s6 }
  0x8b   : > { %s7680_s17 = sld [smem:[#allocation60_spill]] }
  0x91   : > { %s5716_s24 = scalar_lea.hbm %s7680_s17, 16 }
  0x92   : > { %p5717_p1 = scmp.ne.s32.totalorder %s7680_s17, %s5716_s24  ;;  %p5723_p12 = scmp.lt.u32.totalorder %s5716_s24, %s7680_s17 }
  0x94   : > { %p5719_p3 = pnand %p5717_p1, %p6565_p8 }
  0x96   : > { %p5720_p11 = pneg %p5719_p3 }
  0x98   : > { %p5725_p13 = pnand %p5723_p12, %p5720_p11 }
  0x9a   : > { %5728 = shalt.err (!%p5725_p13)
}
  0x9b   : > { %s5729_s11 = scalar_lea.vmem %s778_s2, 16  ;;  %s5736_s19 = scalar_lea.vmem %s778_s2, 32 }
  0x9c   : > { %p5730_p0 = scmp.ne.s32.totalorder %s778_s2, %s5729_s11  ;;  %p5737_p7 = scmp.lt.s32.totalorder %s778_s2, %s778_s2 }
  0x9d   : > { %p5738_p9 = scmp.lt.s32.totalorder %s5736_s19, %s5729_s11 }
  0x9e   : > { %p5732_p2 = pnand %p5730_p0, %p6565_p8 }
  0x9f   : > { %p5739_p4 = por %p5738_p9, %p5737_p7 }
  0xa0   : > { %p5733_p5 = pneg %p5732_p2 }
  0xa2   : > { %p5740_p10 = pnand %p5739_p4, %p5733_p5 }
  0xa4   : > { %5743 = shalt.err (!%p5740_p10)
}
  0xa5   : > { %5393 = dma.hbm_to_vmem [thread:$0]  (!%p6549_p6), %s7680_s17, 16, %s778_s2, [#allocation15]  }
  0xa6   : > { %s7681_s24 = sld [smem:[#allocation63_spill]] }
  0xac   : > { %s5744_s21 = scalar_lea.hbm %s7681_s24, 16 }
  0xad   : > { %p5745_p1 = scmp.ne.s32.totalorder %s7681_s24, %s5744_s21  ;;  %p5751_p12 = scmp.lt.u32.totalorder %s5744_s21, %s7681_s24 }
  0xaf   : > { %p5747_p3 = pnand %p5745_p1, %p6565_p8 }
  0xb1   : > { %p5748_p11 = pneg %p5747_p3 }
  0xb3   : > { %p5753_p13 = pnand %p5751_p12, %p5748_p11 }
  0xb5   : > { %5756 = shalt.err (!%p5753_p13)
}
  0xb6   : > { %s5757_s11 = scalar_lea.vmem %s805_s6, 16  ;;  %s5764_s2 = scalar_lea.vmem %s805_s6, 32 }
  0xb7   : > { %p5758_p0 = scmp.ne.s32.totalorder %s805_s6, %s5757_s11  ;;  %p5765_p7 = scmp.lt.s32.totalorder %s805_s6, %s805_s6 }
  0xb8   : > { %p5766_p9 = scmp.lt.s32.totalorder %s5764_s2, %s5757_s11 }
  0xb9   : > { %p5760_p2 = pnand %p5758_p0, %p6565_p8 }
  0xba   : > { %p5767_p4 = por %p5766_p9, %p5765_p7 }
  0xbb   : > { %p5761_p5 = pneg %p5760_p2 }
  0xbd   : > { %p5768_p10 = pnand %p5767_p4, %p5761_p5 }
  0xbf   : > { %5771 = shalt.err (!%p5768_p10)
}
  0xc0   : > { %5399 = dma.hbm_to_vmem [thread:$0]  (!%p6549_p6), %s7681_s24, 16, %s805_s6, [#allocation18]  }
  0xc1   : > { %s6349_s9 = smov [#allocation20]   ;;  %s6350_s0 = smov [#allocation23]  }
  0xc2   : > { %s828_s16 = sshll.u32 %s6349_s9, 4  ;;  %s852_s21 = sshll.u32 %s6350_s0, 4  ;;  %s829_s16 = int_to_ptr.vmem [resolvable:$true] %s828_s16  ;;  %s853_s21 = int_to_ptr.vmem [resolvable:$true] %s852_s21 }
  0xc3   : > { %s7682_s13 = sld [smem:[#allocation65_spill]] }
  0xc9   : > { %s5772_s22 = scalar_lea.hbm %s7682_s13, 16 }
  0xca   : > { %p5773_p1 = scmp.ne.s32.totalorder %s7682_s13, %s5772_s22  ;;  %p5779_p12 = scmp.lt.u32.totalorder %s5772_s22, %s7682_s13 }
  0xcc   : > { %p5775_p3 = pnand %p5773_p1, %p6565_p8 }
  0xce   : > { %p5776_p11 = pneg %p5775_p3 }
  0xd0   : > { %p5781_p13 = pnand %p5779_p12, %p5776_p11 }
  0xd2   : > { %5784 = shalt.err (!%p5781_p13)
}
  0xd3   : > { %s5785_s6 = scalar_lea.vmem %s829_s16, 16  ;;  %s5792_s26 = scalar_lea.vmem %s829_s16, 32 }
  0xd4   : > { %p5786_p0 = scmp.ne.s32.totalorder %s829_s16, %s5785_s6  ;;  %p5793_p7 = scmp.lt.s32.totalorder %s829_s16, %s829_s16 }
  0xd5   : > { %p5794_p9 = scmp.lt.s32.totalorder %s5792_s26, %s5785_s6 }
  0xd6   : > { %p5788_p2 = pnand %p5786_p0, %p6565_p8 }
  0xd7   : > { %p5795_p4 = por %p5794_p9, %p5793_p7 }
  0xd8   : > { %p5789_p5 = pneg %p5788_p2 }
  0xda   : > { %p5796_p10 = pnand %p5795_p4, %p5789_p5 }
  0xdc   : > { %5799 = shalt.err (!%p5796_p10)
}
  0xdd   : > { %5405 = dma.hbm_to_vmem [thread:$0]  (!%p6549_p6), %s7682_s13, 16, %s829_s16, [#allocation21]  }
  0xde   : > { %s7683_s15 = sld [smem:[#allocation67_spill]] }
  0xe4   : > { %s5800_s22 = scalar_lea.hbm %s7683_s15, 32 }
  0xe5   : > { %p5801_p1 = scmp.ne.s32.totalorder %s7683_s15, %s5800_s22  ;;  %p5807_p12 = scmp.lt.u32.totalorder %s5800_s22, %s7683_s15 }
  0xe7   : > { %p5803_p3 = pnand %p5801_p1, %p6565_p8 }
  0xe9   : > { %p5804_p11 = pneg %p5803_p3 }
  0xeb   : > { %p5809_p13 = pnand %p5807_p12, %p5804_p11 }
  0xed   : > { %5812 = shalt.err (!%p5809_p13)
}
  0xee   : > { %s5813_s6 = scalar_lea.vmem %s853_s21, 32  ;;  %p5821_p7 = scmp.lt.s32.totalorder %s853_s21, %s853_s21 }
  0xef   : > { %p5814_p0 = scmp.ne.s32.totalorder %s853_s21, %s5813_s6  ;;  %p5822_p9 = scmp.lt.s32.totalorder %s5813_s6, %s5813_s6 }
  0xf1   : > { %p5816_p2 = pnand %p5814_p0, %p6565_p8  ;;  %p5823_p4 = por %p5822_p9, %p5821_p7 }
  0xf3   : > { %p5817_p5 = pneg %p5816_p2 }
  0xf5   : > { %p5824_p10 = pnand %p5823_p4, %p5817_p5 }
  0xf7   : > { %5827 = shalt.err (!%p5824_p10)
}
  0xf8   : > { %5411 = dma.hbm_to_vmem [thread:$0]  (!%p6549_p6), %s7683_s15, 32, %s853_s21, [#allocation24]  }
  0xf9   : > { %s6351_s9 = smov [#allocation10]   ;;  %s6352_s25 = smov [#allocation13]  }
  0xfa   : > { %s734_s0 = sshll.u32 %s6351_s9, 4  ;;  %s763_s3 = sshll.u32 %s6352_s25, 4  ;;  %s735_s0 = int_to_ptr.vmem [resolvable:$true] %s734_s0  ;;  %s764_s3 = int_to_ptr.vmem [resolvable:$true] %s763_s3 }
  0xfb   : > { %s7684_s11 = sld [smem:[#allocation56_spill]] }
 0x101   : > { %s5828_s2 = scalar_lea.hbm %s7684_s11, 16384 }
 0x102   : > { %p5829_p1 = scmp.ne.s32.totalorder %s7684_s11, %s5828_s2  ;;  %p5835_p12 = scmp.lt.u32.totalorder %s5828_s2, %s7684_s11 }
 0x104   : > { %p5831_p3 = pnand %p5829_p1, %p6565_p8 }
 0x106   : > { %p5832_p11 = pneg %p5831_p3 }
 0x108   : > { %p5837_p13 = pnand %p5835_p12, %p5832_p11 }
 0x10a   : > { %5840 = shalt.err (!%p5837_p13)
}
 0x10b   : > { %s5841_s21 = scalar_lea.vmem %s735_s0, 16384  ;;  %p5849_p7 = scmp.lt.s32.totalorder %s735_s0, %s735_s0 }
 0x10c   : > { %p5842_p0 = scmp.ne.s32.totalorder %s735_s0, %s5841_s21  ;;  %p5850_p9 = scmp.lt.s32.totalorder %s5841_s21, %s5841_s21 }
 0x10e   : > { %p5844_p2 = pnand %p5842_p0, %p6565_p8  ;;  %p5851_p4 = por %p5850_p9, %p5849_p7 }
 0x110   : > { %p5845_p5 = pneg %p5844_p2 }
 0x112   : > { %p5852_p10 = pnand %p5851_p4, %p5845_p5 }
 0x114   : > { %5855 = shalt.err (!%p5852_p10)
}
 0x115   : > { %s7685_s26 = smov 128   ;;  %s7686_s5 = sld [smem:[#allocation59_spill]] }
 0x116   : > { %5384 = dma.hbm_to_vmem [thread:$0]  (!%p6549_p6), %s7684_s11, 16384, %s735_s0, [#allocation9], %s7685_s26, %s7685_s26, %s7626_s23  }
 0x11b   : > { %s5856_s2 = scalar_lea.hbm %s7686_s5, 2048 }
 0x11c   : > { %p5857_p1 = scmp.ne.s32.totalorder %s7686_s5, %s5856_s2  ;;  %p5863_p12 = scmp.lt.u32.totalorder %s5856_s2, %s7686_s5 }
 0x11e   : > { %p5859_p3 = pnand %p5857_p1, %p6565_p8 }
 0x120   : > { %p5860_p11 = pneg %p5859_p3 }
 0x122   : > { %p5865_p13 = pnand %p5863_p12, %p5860_p11 }
 0x124   : > { %5868 = shalt.err (!%p5865_p13)
}
 0x125   : > { %s5869_s29 = scalar_lea.vmem %s764_s3, 2048  ;;  %p5877_p7 = scmp.lt.s32.totalorder %s764_s3, %s764_s3 }
 0x126   : > { %p5870_p0 = scmp.ne.s32.totalorder %s764_s3, %s5869_s29  ;;  %p5878_p9 = scmp.lt.s32.totalorder %s5869_s29, %s5869_s29 }
 0x128   : > { %p5872_p2 = pnand %p5870_p0, %p6565_p8  ;;  %p5879_p4 = por %p5878_p9, %p5877_p7 }
 0x12a   : > { %p5873_p5 = pneg %p5872_p2 }
 0x12c   : > { %p5880_p10 = pnand %p5879_p4, %p5873_p5 }
 0x12e   : > { %5883 = shalt.err (!%p5880_p10)
}
 0x12f   : > { %5390 = dma.hbm_to_vmem [thread:$0]  (!%p6549_p6), %s7686_s5, 2048, %s764_s3, [#allocation12], %s7685_s26, %s7685_s26, %s7626_s23  }
 0x130   : > { %s6353_s25 = smov [#allocation16]   ;;  %s7687_s6 = sld [smem:[#allocation62_spill]] }
 0x131   : > { %s790_s22 = sshll.u32 %s6353_s25, 4  ;;  %s791_s22 = int_to_ptr.vmem [resolvable:$true] %s790_s22 }
 0x136   : > { %s5884_s16 = scalar_lea.hbm %s7687_s6, 1024 }
 0x137   : > { %p5885_p1 = scmp.ne.s32.totalorder %s7687_s6, %s5884_s16  ;;  %p5891_p12 = scmp.lt.u32.totalorder %s5884_s16, %s7687_s6 }
 0x139   : > { %p5887_p3 = pnand %p5885_p1, %p6565_p8 }
 0x13b   : > { %p5888_p11 = pneg %p5887_p3 }
 0x13d   : > { %p5893_p13 = pnand %p5891_p12, %p5888_p11 }
 0x13f   : > { %5896 = shalt.err (!%p5893_p13)
}
 0x140   : > { %s5897_s3 = scalar_lea.vmem %s791_s22, 1024  ;;  %p5905_p7 = scmp.lt.s32.totalorder %s791_s22, %s791_s22 }
 0x141   : > { %p5898_p0 = scmp.ne.s32.totalorder %s791_s22, %s5897_s3  ;;  %p5906_p9 = scmp.lt.s32.totalorder %s5897_s3, %s5897_s3 }
 0x143   : > { %p5900_p2 = pnand %p5898_p0, %p6565_p8  ;;  %p5907_p4 = por %p5906_p9, %p5905_p7 }
 0x145   : > { %p5901_p5 = pneg %p5900_p2 }
 0x147   : > { %p5908_p10 = pnand %p5907_p4, %p5901_p5 }
 0x149   : > { %5911 = shalt.err (!%p5908_p10)
}
 0x14a   : > { %s7629_s0 = smov 4   ;;  %s7688_s9 = smov 64  }
 0x14b   : > { %5396 = dma.hbm_to_vmem [thread:$0]  (!%p6549_p6), %s7687_s6, 1024, %s791_s22, [#allocation15], %s7688_s9, %s7688_s9, %s7629_s0  }
 0x14c   : > { %s6355_s25 = smov [#allocation19]   ;;  %s6356_s19 = smov [#allocation22]  }
 0x14d   : > { %s814_s2 = sshll.u32 %s6355_s25, 4  ;;  %s838_s16 = sshll.u32 %s6356_s19, 4  ;;  %s815_s2 = int_to_ptr.vmem [resolvable:$true] %s814_s2  ;;  %s839_s16 = int_to_ptr.vmem [resolvable:$true] %s838_s16 }
 0x14e   : > { %s7689_s12 = sld [smem:[#allocation64_spill]] }
 0x154   : > { %s5912_s3 = scalar_lea.hbm %s7689_s12, 1024 }
 0x155   : > { %p5913_p1 = scmp.ne.s32.totalorder %s7689_s12, %s5912_s3  ;;  %p5919_p12 = scmp.lt.u32.totalorder %s5912_s3, %s7689_s12 }
 0x157   : > { %p5915_p3 = pnand %p5913_p1, %p6565_p8 }
 0x159   : > { %p5916_p11 = pneg %p5915_p3 }
 0x15b   : > { %p5921_p13 = pnand %p5919_p12, %p5916_p11 }
 0x15d   : > { %5924 = shalt.err (!%p5921_p13)
}
 0x15e   : > { %s5925_s22 = scalar_lea.vmem %s815_s2, 1024  ;;  %p5933_p7 = scmp.lt.s32.totalorder %s815_s2, %s815_s2 }
 0x15f   : > { %p5926_p0 = scmp.ne.s32.totalorder %s815_s2, %s5925_s22  ;;  %p5934_p9 = scmp.lt.s32.totalorder %s5925_s22, %s5925_s22 }
 0x161   : > { %p5928_p2 = pnand %p5926_p0, %p6565_p8  ;;  %p5935_p4 = por %p5934_p9, %p5933_p7 }
 0x163   : > { %p5929_p5 = pneg %p5928_p2 }
 0x165   : > { %p5936_p10 = pnand %p5935_p4, %p5929_p5 }
 0x167   : > { %5939 = shalt.err (!%p5936_p10)
}
 0x168   : > { %5402 = dma.hbm_to_vmem [thread:$0]  (!%p6549_p6), %s7689_s12, 1024, %s815_s2, [#allocation18], %s7688_s9, %s7688_s9, %s7629_s0  }
 0x169   : > { %s7690_s14 = sld [smem:[#allocation66_spill]] }
 0x16f   : > { %s5940_s25 = scalar_lea.hbm %s7690_s14, 2048 }
 0x170   : > { %p5941_p1 = scmp.ne.s32.totalorder %s7690_s14, %s5940_s25  ;;  %p5947_p12 = scmp.lt.u32.totalorder %s5940_s25, %s7690_s14 }
 0x172   : > { %p5943_p3 = pnand %p5941_p1, %p6565_p8 }
 0x174   : > { %p5944_p11 = pneg %p5943_p3 }
 0x176   : > { %p5949_p13 = pnand %p5947_p12, %p5944_p11 }
 0x178   : > { %5952 = shalt.err (!%p5949_p13)
}
 0x179   : > { %s5953_s13 = scalar_lea.vmem %s839_s16, 2048  ;;  %p5961_p7 = scmp.lt.s32.totalorder %s839_s16, %s839_s16 }
 0x17a   : > { %p5954_p0 = scmp.ne.s32.totalorder %s839_s16, %s5953_s13  ;;  %p5962_p9 = scmp.lt.s32.totalorder %s5953_s13, %s5953_s13 }
 0x17c   : > { %p5956_p2 = pnand %p5954_p0, %p6565_p8  ;;  %p5963_p4 = por %p5962_p9, %p5961_p7 }
 0x17e   : > { %p5957_p5 = pneg %p5956_p2 }
 0x180   : > { %p5964_p10 = pnand %p5963_p4, %p5957_p5 }
 0x182   : > { %5967 = shalt.err (!%p5964_p10)
}
 0x183   : > { %s7691_s2 = smov 8   ;;  %s6357_s23 = smov [#allocation25]  }
 0x184   : > { %5408 = dma.hbm_to_vmem [thread:$0]  (!%p6549_p6), %s7690_s14, 2048, %s839_s16, [#allocation21], %s7685_s26, %s7685_s26, %s7691_s2  }
 0x185   : > { %s868_s5 = sshll.u32 %s6357_s23, 4  ;;  %s6358_s11 = smov [#allocation26]   ;;  %s869_s5 = int_to_ptr.vmem [resolvable:$true] %s868_s5 }
 0x186   : > { %s884_s25 = sshll.u32 %s6358_s11, 4  ;;  %s7692_s18 = sld [smem:[#allocation70_spill]]  ;;  %s885_s25 = int_to_ptr.vmem [resolvable:$true] %s884_s25 }
 0x18c   : > { %s5968_s29 = scalar_lea.hbm %s7692_s18, 1024 }
 0x18d   : > { %p5969_p1 = scmp.ne.s32.totalorder %s7692_s18, %s5968_s29  ;;  %p5975_p12 = scmp.lt.u32.totalorder %s5968_s29, %s7692_s18 }
 0x18f   : > { %p5971_p3 = pnand %p5969_p1, %p6565_p8 }
 0x191   : > { %p5972_p11 = pneg %p5971_p3 }
 0x193   : > { %p5977_p13 = pnand %p5975_p12, %p5972_p11 }
 0x195   : > { %5980 = shalt.err (!%p5977_p13)
}
 0x196   : > { %s5981_s16 = scalar_lea.vmem %s869_s5, 1024  ;;  %p5989_p7 = scmp.lt.s32.totalorder %s869_s5, %s869_s5 }
 0x197   : > { %p5982_p0 = scmp.ne.s32.totalorder %s869_s5, %s5981_s16  ;;  %p5990_p9 = scmp.lt.s32.totalorder %s5981_s16, %s5981_s16 }
 0x199   : > { %p5984_p2 = pnand %p5982_p0, %p6565_p8  ;;  %p5991_p4 = por %p5990_p9, %p5989_p7 }
 0x19b   : > { %p5985_p5 = pneg %p5984_p2 }
 0x19d   : > { %p5992_p10 = pnand %p5991_p4, %p5985_p5 }
 0x19f   : > { %5995 = shalt.err (!%p5992_p10)
}
 0x1a0   : > { %s7693_s15 = smov 4   ;;  %s7694_s20 = sld [smem:[#allocation72_spill]] }
 0x1a1   : > { %5414 = dma.hbm_to_vmem [thread:$0]  (!%p6549_p6), %s7692_s18, 1024, %s869_s5, [#allocation24], %s7688_s9, %s7688_s9, %s7693_s15  }
 0x1a6   : > { %s5996_s21 = scalar_lea.hbm %s7694_s20, 2048 }
 0x1a7   : > { %p5997_p1 = scmp.ne.s32.totalorder %s7694_s20, %s5996_s21  ;;  %p6003_p12 = scmp.lt.u32.totalorder %s5996_s21, %s7694_s20 }
 0x1a9   : > { %p5999_p3 = pnand %p5997_p1, %p6565_p8 }
 0x1ab   : > { %p6000_p11 = pneg %p5999_p3 }
 0x1ad   : > { %p6005_p13 = pnand %p6003_p12, %p6000_p11 }
 0x1af   : > { %6008 = shalt.err (!%p6005_p13)
}
 0x1b0   : > { %s6009_s16 = scalar_lea.vmem %s885_s25, 2048  ;;  %p6017_p7 = scmp.lt.s32.totalorder %s885_s25, %s885_s25 }
 0x1b1   : > { %p6010_p0 = scmp.ne.s32.totalorder %s885_s25, %s6009_s16  ;;  %p6018_p9 = scmp.lt.s32.totalorder %s6009_s16, %s6009_s16 }
 0x1b3   : > { %p6012_p2 = pnand %p6010_p0, %p6565_p8  ;;  %p6019_p4 = por %p6018_p9, %p6017_p7 }
 0x1b5   : > { %p6013_p5 = pneg %p6012_p2 }
 0x1b7   : > { %p6020_p10 = pnand %p6019_p4, %p6013_p5 }
 0x1b9   : > { %6023 = shalt.err (!%p6020_p10)
}
 0x1ba   : > { %5417 = dma.hbm_to_vmem [thread:$0]  (!%p6549_p6), %s7694_s20, 2048, %s885_s25, [#allocation27], %s7685_s26, %s7685_s26, %s7691_s2  }
 0x1bb   : > { %s7630_s1 = sadd.s32 4294967294, %s6338_s30   ;;  %s6854_s10 = sadd.s32 1, %s6338_s30  }
 0x1bc   : > { %s70_s15 = sadd.s32 1, %s6334_s8  ;;  %s67_s0 = ssub.s32 %s6338_s30, %s6854_s10 }
 0x1bd   : > { %p77_p8 = scmp.ne.s32.totalorder %s6334_s8, %s6330_s4  ;;  %p68_p1 = scmp.eq.s32.totalorder %s67_s0, 0 }
 0x1be   : > { %p78_p3 = scmp.eq.s32.totalorder %s6338_s30, 0  ;;  %p83_p11 = scmp.ne.s32.totalorder %s6330_s4, %s6326_s7 }
 0x1bf   : > { %p553_p12 = scmp.eq.s32.totalorder %s6533_s28, 1  ;;  %p7695_p0 = scmp.eq.s32.totalorder %s6533_s28, 0 }
 0x1c0   : > { %s6866_s23 = scalar_select %p68_p1, %s6334_s8, %s70_s15  }
 0x1c1   : > { %p79_p13 = por %p78_p3, %p77_p8  ;;  %p6870_p2 = por %p7695_p0, %p83_p11 }
 0x1c2   : > { %p6874_p6 = por %p553_p12, %p77_p8  ;;  %p559_p5 = scmp.eq.s32.totalorder %s7630_s1, 1 }
 0x1c3   : > { %p5458_p7 = scmp.lt.s32.totalorder %s6338_s30, 2  ;;  %s901_s19 = sand.u32 1, %s6334_s8  }
 0x1c4   : > { %s7697_s25 = scalar_select %p6874_p6, 1, 0 }
 0x1c5   : > { %p6882_p9 = por %p559_p5, %p83_p11  ;;  %s6886_s29 = sshll.u32 %s901_s19, 4 }
 0x1c6   : > { %s4297_s3 = sshll.u32 %s6338_s30, 8  ;;  %s7699_s16 = sld [smem:[#allocation52_spill]] }
 0x1c7   : > { %s7698_s21 = scalar_select %p6882_p9, 1, 0 }
 0x1c8   : > { %s905_s5 = scalar_lea.vmem [#allocation2], %s6886_s29  ;;  %p6895_p4 = pnand %p5458_p7, %p79_p13 }
 0x1c9   : > { %s912_s15 = sshll.u32 %s905_s5, 4  ;;  %s7701_s12 = sld [smem:[#allocation53_spill]]  ;;  %s6899_s15 = int_to_ptr.vmem [resolvable:$true] %s912_s15 }
 0x1ca   : > { %s6906_s22 = scalar_lea.sflag [#allocation3], %s901_s19  ;;  %p6026_p8 = pneg %p6895_p4 }
 0x1cc   : > { %s6892_s9 = scalar_lea.hbm %s7699_s16, %s4297_s3  ;;  %s6029_s18 = scalar_lea.hbm %s7699_s16, 512 }
 0x1cd   : > { %s6024_s14 = scalar_lea.hbm %s6892_s9, 256  ;;  %p6030_p11 = scmp.lt.u32.totalorder %s6892_s9, %s7699_s16 }
 0x1ce   : > { %p6025_p10 = scmp.ne.s32.totalorder %s6892_s9, %s6024_s14  ;;  %p6031_p12 = scmp.lt.u32.totalorder %s6029_s18, %s6024_s14 }
 0x1cf   : > { %s6904_s13 = scalar_lea.hbm %s7701_s12, %s4297_s3  ;;  %p6033_p0 = scmp.lt.u32.totalorder %s6024_s14, %s6892_s9 }
 0x1d0   : > { %p6027_p1 = pnand %p6026_p8, %p6025_p10  ;;  %p6032_p13 = por %p6031_p12, %p6030_p11 }
 0x1d2   : > { %p6028_p3 = pneg %p6027_p1  ;;  %p6034_p5 = por %p6033_p0, %p6032_p13 }
 0x1d4   : > { %p6035_p7 = pnand %p6034_p5, %p6028_p3 }
 0x1d6   : > { %6038 = shalt.err (!%p6035_p7)
}
 0x1d7   : > { %s6039_s6 = scalar_lea.vmem %s6899_s15, 256  ;;  %s6359_s17 = smov [#allocation2]  }
 0x1d8   : > { %p6040_p10 = scmp.ne.s32.totalorder %s6899_s15, %s6039_s6  ;;  %s6044_s1 = sshll.u32 %s6359_s17, 4  ;;  %s6045_s1 = int_to_ptr.vmem [resolvable:$false] %s6044_s1 }
 0x1d9   : > { %s6046_s20 = scalar_lea.vmem %s6045_s1, 512  ;;  %p6047_p6 = scmp.lt.s32.totalorder %s6899_s15, %s6045_s1 }
 0x1da   : > { %p6042_p1 = pnand %p6040_p10, %p6026_p8  ;;  %p6048_p11 = scmp.lt.s32.totalorder %s6046_s20, %s6039_s6 }
 0x1dc   : > { %p6043_p9 = pneg %p6042_p1  ;;  %p6049_p12 = por %p6048_p11, %p6047_p6 }
 0x1de   : > { %p6050_p13 = pnand %p6049_p12, %p6043_p9 }
 0x1e0   : > { %6053 = shalt.err (!%p6050_p13)
}
 0x1e1   : > { %5421 = dma.hbm_to_vmem [thread:$0]  (!%p6895_p4), %s6892_s9, 256, %s6899_s15, %s6906_s22, %s7685_s26, %s7685_s26, %s7691_s2  }
 0x1e2   : > { %s926_s14 = scalar_lea.vmem [#allocation5], %s6886_s29  ;;  %s922_s24 = sand.u32 1, %s6338_s30  }
 0x1e3   : > { %s933_s18 = sshll.u32 %s926_s14, 4  ;;  %s6941_s19 = scalar_lea.sflag [#allocation6], %s922_s24  ;;  %s6939_s18 = int_to_ptr.vmem [resolvable:$true] %s933_s18 }
 0x1e4   : > { %s6054_s3 = scalar_lea.hbm %s6904_s13, 256  ;;  %s6059_s17 = scalar_lea.hbm %s7701_s12, 512 }
 0x1e5   : > { %p6055_p6 = scmp.ne.s32.totalorder %s6904_s13, %s6054_s3  ;;  %p6060_p0 = scmp.lt.u32.totalorder %s6904_s13, %s7701_s12 }
 0x1e6   : > { %p6061_p5 = scmp.lt.u32.totalorder %s6059_s17, %s6054_s3  ;;  %p6063_p10 = scmp.lt.u32.totalorder %s6054_s3, %s6904_s13 }
 0x1e7   : > { %p6057_p9 = pnand %p6055_p6, %p6026_p8 }
 0x1e8   : > { %p6062_p7 = por %p6061_p5, %p6060_p0 }
 0x1e9   : > { %p6058_p3 = pneg %p6057_p9 }
 0x1ea   : > { %p6064_p1 = por %p6063_p10, %p6062_p7 }
 0x1ec   : > { %p6065_p11 = pnand %p6064_p1, %p6058_p3 }
 0x1ee   : > { %6068 = shalt.err (!%p6065_p11)
}
 0x1ef   : > { %s6069_s29 = scalar_lea.vmem %s6939_s18, 256  ;;  %s6360_s9 = smov [#allocation5]  }
 0x1f0   : > { %p6070_p12 = scmp.ne.s32.totalorder %s6939_s18, %s6069_s29  ;;  %s6074_s15 = sshll.u32 %s6360_s9, 4  ;;  %s6075_s15 = int_to_ptr.vmem [resolvable:$false] %s6074_s15 }
 0x1f1   : > { %s6076_s22 = scalar_lea.vmem %s6075_s15, 512  ;;  %p6077_p9 = scmp.lt.s32.totalorder %s6939_s18, %s6075_s15 }
 0x1f2   : > { %p6072_p13 = pnand %p6070_p12, %p6026_p8  ;;  %p6078_p0 = scmp.lt.s32.totalorder %s6076_s22, %s6069_s29 }
 0x1f4   : > { %p6073_p6 = pneg %p6072_p13  ;;  %p6079_p5 = por %p6078_p0, %p6077_p9 }
 0x1f6   : > { %p6080_p7 = pnand %p6079_p5, %p6073_p6 }
 0x1f8   : > { %6083 = shalt.err (!%p6080_p7)
}
 0x1f9   : > { %5424 = dma.hbm_to_vmem [thread:$0]  (!%p6895_p4), %s6904_s13, 256, %s6939_s18, %s6941_s19, %s7685_s26, %s7685_s26, %s7691_s2  }
 0x1fa   : > { %s7702_s14 = sld [smem:[#allocation51_spill]] }
 0x200   : > { %p7703_p8 = scmp.ne.s32.totalorder %s7702_s14, 0 }
 0x201   : > { %s6973_s24 = sand.u32 (!%p7703_p8), 1, %s6330_s4  }
 0x202   : > { %945 = sbr.rel (%p7703_p8) target bundleno = 2807 (0xaf7), region = 108  ;;  %s6976_s3 = sshll.u32 (!%p7703_p8), %s6973_s24, 4 }
 0x203   : > { %s948_s0 = scalar_lea.sflag (!%p7703_p8), [#allocation3], %s6973_s24  ;;  %s6980_s5 = scalar_lea.vmem (!%p7703_p8), [#allocation2], %s6976_s3 }
 0x209   : > { %6269 = dma.done.wait (%p6870_p2), %s948_s0, 256  }
 0x20a   : > { %6271 = vsyncadd (%p6870_p2), %s948_s0, 4294967040  ;;  %s6987_s26 = sand.u32 1, %s6533_s28   ;;  %s960_s13 = scalar_lea.vmem [#allocation5], %s6976_s3 }
 0x20b   : > { %s957_s2 = scalar_lea.sflag [#allocation6], %s6987_s26 }
 0x20c   : > { %6273 = dma.done.wait (%p6870_p2), %s957_s2, 256  }
 0x20d   : > { %6275 = vsyncadd (%p6870_p2), %s957_s2, 4294967040  ;;  %p7704_p4 = scmp.eq.s32.totalorder %s6533_s28, 0 }
 0x20f   : > { %6277 = dma.done.wait (%p7704_p4), [#allocation6], 16384   ;;  %p7705_p3 = pmov %p7704_p4 }
 0x211   : > { %6279 = vsyncadd (%p7705_p3), [#allocation6], 4294950912  ;;  %p7706_p10 = pmov %p7705_p3 }
 0x212   : > { %p7707_p1 = pmov %p7705_p3 }
 0x213   : > { %6281 = dma.done.wait (%p7706_p10), [#allocation9], 32768  }
 0x214   : > { %6283 = vsyncadd (%p7707_p1), [#allocation9], 4294934528  ;;  %p7708_p11 = pmov %p7707_p1 }
 0x215   : > { %p7709_p12 = pmov %p7707_p1 }
 0x216   : > { %6285 = dma.done.wait (%p7708_p11), [#allocation12], 4096  }
 0x217   : > { %6287 = vsyncadd (%p7709_p12), [#allocation12], 4294963200  ;;  %p7710_p2 = pmov %p7707_p1 }
 0x218   : > { %p7711_p13 = pmov %p7707_p1 }
 0x219   : > { %6289 = dma.done.wait (%p7710_p2), [#allocation15], 1040  }
 0x21a   : > { %6291 = vsyncadd (%p7711_p13), [#allocation15], 4294966256  ;;  %p7712_p6 = pmov %p7707_p1 }
 0x21b   : > { %p7713_p9 = pmov %p7707_p1 }
 0x21c   : > { %6293 = dma.done.wait (%p7712_p6), [#allocation18], 1040  }
 0x21d   : > { %6295 = vsyncadd (%p7713_p9), [#allocation18], 4294966256  ;;  %p7714_p0 = pmov %p7707_p1 }
 0x21f   : > { %6297 = dma.done.wait (%p7714_p0), [#allocation21], 2064   ;;  %p7715_p5 = pmov %p7714_p0 }
 0x220   : > { %p7716_p7 = pmov %p7714_p0 }
 0x221   : > { %6299 = vsyncadd (%p7715_p5), [#allocation21], 4294965232 }
 0x222   : > { %6301 = dma.done.wait (%p7716_p7), [#allocation24], 1056   ;;  %p7717_p8 = pmov %p7714_p0 }
 0x223   : > { %p7718_p4 = pmov %p7714_p0 }
 0x224   : > { %6303 = vsyncadd (%p7717_p8), [#allocation24], 4294966240 }
 0x225   : > { %6305 = dma.done.wait (%p7718_p4), [#allocation27], 2048   ;;  %p7719_p3 = pmov %p7714_p0 }
 0x226   : > { %v6361_v0 = vmov 0.0   ;;  %vm6362_vm0 = vmmov 0   ;;  %v5530_v1 = vld [vmem:[#allocation16] sm:$0xff]   ;;  %v5531_v2 = vld [vmem:[#allocation16 + $0x8] sm:$0xff]   ;;  %v5532_v3 = vld [vmem:[#allocation16 + $0x10] sm:$0xff]   ;;  %v6363_v44 = vmov 0  }
 0x227   : > { %6307 = vsyncadd (%p7719_p3), [#allocation27], 4294965248  ;;  %4563 = vmatprep.subr.bf16.mxu0 %v6361_v0  ;;  %4579 = vmatprep.mubr.msk.bf16.mxu0 %vm6362_vm0, %v6361_v0  ;;  %v5538_v4 = vld [vmem:[#allocation19] sm:$0xff]   ;;  %v5533_v5 = vld [vmem:[#allocation16 + $0x18] sm:$0xff]   ;;  %s7063_s11 = scalar_lea.vmem [#allocation31], %s6976_s3  ;;  %s7071_s18 = scalar_lea.vmem [#allocation32], %s6976_s3 }
 0x228   : > { %4583 = vmatprep.subr.bf16.mxu1 %v6361_v0  ;;  %4599 = vmatprep.mubr.msk.bf16.mxu1 %vm6362_vm0, %v6361_v0  ;;  %v5539_v6 = vld [vmem:[#allocation19 + $0x8] sm:$0xff]   ;;  %v5534_v7 = vld [vmem:[#allocation16 + $0x20] sm:$0xff]   ;;  %v5540_v8 = vld [vmem:[#allocation19 + $0x10] sm:$0xff]   ;;  %s7720_s17 = sld [smem:[#allocation68_spill]]  ;;  %s7721_s15 = sld [smem:[#allocation57_spill]]  ;;  %vm3624_vm1 = vcmask 64512  }
 0x229   : > { %4564 = vmatpush3.bf16.msra.mxu0 %v5530_v1  ;;  %4584 = vmatpush3.bf16.msra.mxu1 %v5538_v4  ;;  %v5535_v9 = vld [vmem:[#allocation16 + $0x28] sm:$0xff]   ;;  %v5541_v10 = vld [vmem:[#allocation19 + $0x18] sm:$0xff]   ;;  %v5536_v11 = vld [vmem:[#allocation16 + $0x30] sm:$0xff]   ;;  %s7723_s0 = sld [smem:[#allocation71_spill]]  ;;  %s7724_s19 = sld [smem:[#allocation61_spill]] }
 0x22a   : > { %4565 = vmatprep.subr.bf16.mxu0 %v6361_v0  ;;  %4585 = vmatprep.subr.bf16.mxu1 %v6361_v0  ;;  %v5542_v12 = vld [vmem:[#allocation19 + $0x20] sm:$0xff]   ;;  %v5537_v13 = vld [vmem:[#allocation16 + $0x38] sm:$0xff]   ;;  %v5543_v16 = vld [vmem:[#allocation19 + $0x28] sm:$0xff]   ;;  %s7725_s20 = sld [smem:[#allocation73_spill]]  ;;  %s7327_s29 = scalar_lea.vmem [#allocation34], %s6976_s3 }
 0x22b   : > { %v1124_v14 = vld [vmem:[%s6980_s5] sm:$0xff]  ;;  %v1125_v15 = vld [vmem:[%s6980_s5 + $0x8] sm:$0xff]  ;;  %s7331_s9 = scalar_lea.vmem [#allocation35], %s6976_s3  ;;  %s3765_s3 = sshll.u32 %s7327_s29, 4  ;;  %s7350_s3 = int_to_ptr.vmem [resolvable:$true] %s3765_s3 }
 0x22c   : > { %v1126_v17 = vpack.c.bf16 %v1125_v15, %v1124_v14  ;;  %v5544_v18 = vld [vmem:[#allocation19 + $0x30] sm:$0xff]   ;;  %v5545_v19 = vld [vmem:[#allocation19 + $0x38] sm:$0xff]   ;;  %v5546_v20 = vld [vmem:[#allocation22] ss:$8 sps:$4 sm:$0xff]   ;;  %p7727_p1 = scmp.ne.s32.totalorder %s7697_s25, 0 }
 0x22d   : > { %4566 = vmatpush3.bf16.msra.mxu0 %v5531_v2  ;;  %4586 = vmatpush3.bf16.msra.mxu1 %v5539_v6  ;;  %v5548_v21 = vld [vmem:[#allocation22 + $0x4] ss:$8 sps:$4 sm:$0xff]   ;;  %v5551_v22 = vld [vmem:[#allocation22 + $0x14] ss:$8 sps:$4 sm:$0xff]   ;;  %v5549_v23 = vld [vmem:[#allocation22 + $0x10] ss:$8 sps:$4 sm:$0xff]  }
 0x22e   : > { %4567 = vmatprep.subr.bf16.mxu0 %v6361_v0  ;;  %4587 = vmatprep.subr.bf16.mxu1 %v6361_v0  ;;  %v5554_v24 = vld [vmem:[#allocation22 + $0x24] ss:$8 sps:$4 sm:$0xff]   ;;  %v5552_v25 = vld [vmem:[#allocation22 + $0x20] ss:$8 sps:$4 sm:$0xff]   ;;  %v5557_v26 = vld [vmem:[#allocation22 + $0x34] ss:$8 sps:$4 sm:$0xff]  }
 0x22f   : > { %v5555_v27 = vld [vmem:[#allocation22 + $0x30] ss:$8 sps:$4 sm:$0xff]   ;;  %v4210_v28 = vld [vmem:[#allocation17] ss:$0 sm:$0xff]  ;;  %v5560_v38 = vld [vmem:[#allocation22 + $0x44] ss:$8 sps:$4 sm:$0xff]  }
 0x230   : > { %v5558_v39 = vld [vmem:[#allocation22 + $0x40] ss:$8 sps:$4 sm:$0xff]   ;;  %v5563_v40 = vld [vmem:[#allocation22 + $0x54] ss:$8 sps:$4 sm:$0xff]   ;;  %v5561_v41 = vld [vmem:[#allocation22 + $0x50] ss:$8 sps:$4 sm:$0xff]  }
 0x231   : > { %4568 = vmatpush3.bf16.msra.mxu0 %v5532_v3  ;;  %4588 = vmatpush3.bf16.msra.mxu1 %v5540_v8  ;;  %v5566_v42 = vld [vmem:[#allocation22 + $0x64] ss:$8 sps:$4 sm:$0xff]   ;;  %v5564_v43 = vld [vmem:[#allocation22 + $0x60] ss:$8 sps:$4 sm:$0xff]   ;;  %v5569_v45 = vld [vmem:[#allocation22 + $0x74] ss:$8 sps:$4 sm:$0xff]  }
 0x232   : > { %4569 = vmatprep.subr.bf16.mxu0 %v6361_v0  ;;  %4589 = vmatprep.subr.bf16.mxu1 %v6361_v0  ;;  %v5567_v46 = vld [vmem:[#allocation22 + $0x70] ss:$8 sps:$4 sm:$0xff]   ;;  %v1513_v47 = vld [vmem:[#allocation7 + $0x8] sm:$0xff] }
 0x233   : > { %v1521_v48 = vld [vmem:[#allocation7 + $0x48] sm:$0xff]  ;;  %v1515_v49 = vld [vmem:[#allocation7 + $0x18] sm:$0xff]  ;;  %v1512_v52 = vld [vmem:[#allocation7] sm:$0xff] }
 0x234   : > { %v4783_v50 = vpack.c.bf16 %v1521_v48, %v1513_v47  ;;  %v1523_v51 = vld [vmem:[#allocation7 + $0x58] sm:$0xff]  ;;  %v1520_v53 = vld [vmem:[#allocation7 + $0x40] sm:$0xff]  ;;  %v1529_v56 = vld [vmem:[#allocation7 + $0x88] sm:$0xff] }
 0x235   : > { %4570 = vmatpush3.bf16.msra.mxu0 %v5533_v5  ;;  %4590 = vmatpush3.bf16.msra.mxu1 %v5541_v10  ;;  %v4815_v54 = vpack.c.bf16 %v1523_v51, %v1515_v49  ;;  %v4785_v55 = vpack.c.bf16 %v1520_v53, %v1512_v52  ;;  %v1537_v57 = vld [vmem:[#allocation7 + $0xc8] sm:$0xff]  ;;  %v1528_v59 = vld [vmem:[#allocation7 + $0x80] sm:$0xff]  ;;  %v1530_v49 = vld [vmem:[#allocation7 + $0x90] sm:$0xff] }
 0x236   : > { %4571 = vmatprep.subr.bf16.mxu0 %v6361_v0  ;;  %4591 = vmatprep.subr.bf16.mxu1 %v6361_v0  ;;  %v4787_v58 = vpack.c.bf16 %v1537_v57, %v1529_v56  ;;  %v1536_v60 = vld [vmem:[#allocation7 + $0xc0] sm:$0xff]  ;;  %v1545_v62 = vld [vmem:[#allocation7 + $0x108] sm:$0xff]  ;;  %v1547_v51 = vld [vmem:[#allocation7 + $0x118] sm:$0xff] }
 0x237   : > { %v4789_v61 = vpack.c.bf16 %v1536_v60, %v1528_v59  ;;  %v1553_v63 = vld [vmem:[#allocation7 + $0x148] sm:$0xff]  ;;  %v1544_v2 = vld [vmem:[#allocation7 + $0x100] sm:$0xff]  ;;  %v1555_v52 = vld [vmem:[#allocation7 + $0x158] sm:$0xff] }
 0x238   : > { %v4791_v1 = vpack.c.bf16 %v1553_v63, %v1545_v62  ;;  %v1552_v3 = vld [vmem:[#allocation7 + $0x140] sm:$0xff]  ;;  %v1561_v5 = vld [vmem:[#allocation7 + $0x188] sm:$0xff]  ;;  %v1554_v56 = vld [vmem:[#allocation7 + $0x150] sm:$0xff] }
 0x239   : > { %4572 = vmatpush3.bf16.msra.mxu0 %v5534_v7  ;;  %4592 = vmatpush3.bf16.msra.mxu1 %v5542_v12  ;;  %v4793_v4 = vpack.c.bf16 %v1552_v3, %v1544_v2  ;;  %v1569_v6 = vld [vmem:[#allocation7 + $0x1c8] sm:$0xff]  ;;  %v1560_v8 = vld [vmem:[#allocation7 + $0x180] sm:$0xff]  ;;  %v1563_v57 = vld [vmem:[#allocation7 + $0x198] sm:$0xff] }
 0x23a   : > { %4573 = vmatprep.subr.bf16.mxu0 %v6361_v0  ;;  %4593 = vmatprep.subr.bf16.mxu1 %v6361_v0  ;;  %v4795_v7 = vpack.c.bf16 %v1569_v6, %v1561_v5  ;;  %v1585_v12 = vld [vmem:[#allocation7 + $0x248] sm:$0xff]  ;;  %v1576_v14 = vld [vmem:[#allocation7 + $0x200] sm:$0xff]  ;;  %v1570_v62 = vld [vmem:[#allocation7 + $0x1d0] sm:$0xff] }
 0x23b   : > { %v1584_v15 = vld [vmem:[#allocation7 + $0x240] sm:$0xff]  ;;  %v1579_v63 = vld [vmem:[#allocation7 + $0x218] sm:$0xff]  ;;  %v1586_v5 = vld [vmem:[#allocation7 + $0x250] sm:$0xff] }
 0x23c   : > { %v1595_v6 = vld [vmem:[#allocation7 + $0x298] sm:$0xff] }
 0x23d   : > { %4574 = vmatpush3.bf16.msra.mxu0 %v5535_v9  ;;  %4594 = vmatpush3.bf16.msra.mxu1 %v5543_v16  ;;  %v1568_v9 = vld [vmem:[#allocation7 + $0x1c0] sm:$0xff]  ;;  %v4801_v16 = vpack.c.bf16 %v1584_v15, %v1576_v14 }
 0x23e   : > { %4575 = vmatprep.subr.bf16.mxu0 %v6361_v0  ;;  %4595 = vmatprep.subr.bf16.mxu1 %v6361_v0  ;;  %v4797_v10 = vpack.c.bf16 %v1568_v9, %v1560_v8 }
 0x241   : > { %4576 = vmatpush3.bf16.msra.mxu0 %v5536_v11  ;;  %4596 = vmatpush3.bf16.msra.mxu1 %v5544_v18  ;;  %v1577_v11 = vld [vmem:[#allocation7 + $0x208] sm:$0xff] }
 0x242   : > { %4577 = vmatprep.subr.bf16.mxu0 %v6361_v0  ;;  %4597 = vmatprep.subr.bf16.mxu1 %v6361_v0  ;;  %v1601_v18 = vld [vmem:[#allocation7 + $0x2c8] sm:$0xff] }
 0x245   : > { %4578 = vmatpush3.bf16.msra.mxu0 %v5537_v13  ;;  %4598 = vmatpush3.bf16.msra.mxu1 %v5545_v19  ;;  %v4799_v13 = vpack.c.bf16 %v1585_v12, %v1577_v11  ;;  %v1602_v11 = vld [vmem:[#allocation7 + $0x2d0] sm:$0xff]  ;;  %v1611_v12 = vld [vmem:[#allocation7 + $0x318] sm:$0xff] }
 0x246   : > { %1465 = vmatprep.subr.bf16.mxu0 %v5548_v21  ;;  %4784 = vmatprep.subr.bf16.mxu1 %v4783_v50  ;;  %v1600_v21 = vld [vmem:[#allocation7 + $0x2c0] sm:$0xff]  ;;  %v1538_v50 = vld [vmem:[#allocation7 + $0xd0] sm:$0xff] }
 0x247   : > { %v4821_v53 = vpack.c.bf16 %v1538_v50, %v1530_v49  ;;  %v1535_v49 = vld [vmem:[#allocation7 + $0xb8] sm:$0xff] }
 0x248   : > { %4580 = vmatmul.mubr.bf16.vlgmr.msra.gmra.mrb[0].mxu0 %v1126_v17  ;;  %v1593_v17 = vld [vmem:[#allocation7 + $0x288] sm:$0xff]  ;;  %v1543_v50 = vld [vmem:[#allocation7 + $0xf8] sm:$0xff] }
 0x249   : > { %1466 = vmatpush1.bf16.msra.mxu0 %v5546_v20  ;;  %1497 = vmatprep.mubr.bf16.mxu0 %v6363_v44  ;;  %v4803_v19 = vpack.c.bf16 %v1601_v18, %v1593_v17  ;;  %v1592_v20 = vld [vmem:[#allocation7 + $0x280] sm:$0xff]  ;;  %v1618_v17 = vld [vmem:[#allocation7 + $0x350] sm:$0xff]  ;;  %v1627_v18 = vld [vmem:[#allocation7 + $0x398] sm:$0xff] }
 0x24a   : > { %1467 = vmatprep.subr.bf16.mxu0 %v5551_v22  ;;  %v4805_v22 = vpack.c.bf16 %v1600_v21, %v1592_v20 }
 0x24d   : > { %1468 = vmatpush1.bf16.msra.mxu0 %v5549_v23  ;;  %v1609_v23 = vld [vmem:[#allocation7 + $0x308] sm:$0xff] }
 0x24e   : > { %1469 = vmatprep.subr.bf16.mxu0 %v5554_v24  ;;  %v1617_v24 = vld [vmem:[#allocation7 + $0x348] sm:$0xff] }
 0x251   : > { %1470 = vmatpush1.bf16.msra.mxu0 %v5552_v25  ;;  %v4807_v25 = vpack.c.bf16 %v1617_v24, %v1609_v23  ;;  %v1632_v23 = vld [vmem:[#allocation7 + $0x3c0] sm:$0xff]  ;;  %v1626_v24 = vld [vmem:[#allocation7 + $0x390] sm:$0xff] }
 0x252   : > { %1471 = vmatprep.subr.bf16.mxu0 %v5557_v26  ;;  %v1608_v26 = vld [vmem:[#allocation7 + $0x300] sm:$0xff] }
 0x255   : > { %1472 = vmatpush1.bf16.msra.mxu0 %v5555_v27  ;;  %v1616_v27 = vld [vmem:[#allocation7 + $0x340] sm:$0xff] }
 0x256   : > { %1473 = vmatprep.subr.bf16.mxu0 %v5560_v38 }
 0x259   : > { %1474 = vmatpush1.bf16.msra.mxu0 %v5558_v39  ;;  %v1514_v39 = vld [vmem:[#allocation7 + $0x10] sm:$0xff] }
 0x25a   : > { %1475 = vmatprep.subr.bf16.mxu0 %v5563_v40  ;;  %v1522_v40 = vld [vmem:[#allocation7 + $0x50] sm:$0xff] }
 0x25d   : > { %1476 = vmatpush1.bf16.msra.mxu0 %v5561_v41  ;;  %v1531_v41 = vld [vmem:[#allocation7 + $0x98] sm:$0xff] }
 0x25e   : > { %1477 = vmatprep.subr.bf16.mxu0 %v5566_v42  ;;  %v1539_v42 = vld [vmem:[#allocation7 + $0xd8] sm:$0xff] }
 0x25f   : > { %v4819_v48 = vpack.c.bf16 %v1539_v42, %v1531_v41  ;;  %v1524_v42 = vld [vmem:[#allocation7 + $0x60] sm:$0xff] }
 0x261   : > { %1478 = vmatpush1.bf16.msra.mxu0 %v5564_v43 }
 0x262   : > { %1479 = vmatprep.subr.bf16.mxu0 %v5569_v45 }
 0x265   : > { %1480 = vmatpush1.bf16.msra.mxu0 %v5567_v46  ;;  %v4817_v46 = vpack.c.bf16 %v1522_v40, %v1514_v39  ;;  %v1516_v40 = vld [vmem:[#allocation7 + $0x20] sm:$0xff] }
 0x266   : > { %4816 = vmatprep.subr.bf16.mxu0 %v4815_v54  ;;  %v4823_v54 = vpack.c.bf16 %v1555_v52, %v1547_v51 }
 0x31b   : > { %v1232_v29 = vpop.f32.mrb[0].mxu0 }
 0x31c   : > { %v1233_v30 = vadd.f32 %v4210_v28, %v1232_v29  ;;  %v4581_v31 = vpop.f32.mrb[1].mxu0  ;;  %v1625_v29 = vld [vmem:[#allocation7 + $0x388] sm:$0xff] }
 0x31d   : > { %v1235_v32 = vpop.f32.mrb[2].mxu0 }
 0x31e   : > { %v1236_v33 = vadd.f32 %v4210_v28, %v1235_v32  ;;  %v4582_v34 = vpop.f32.mrb[3].mxu0  ;;  %v1239_v35 = vmax.f32 %v1233_v30, 0.0  ;;  %v4809_v28 = vpack.c.bf16 %v1616_v27, %v1608_v26  ;;  %v1633_v30 = vld [vmem:[#allocation7 + $0x3c8] sm:$0xff]  ;;  %v4219_v32 = vld [vmem:[#allocation20] ss:$0 sm:$0xff]  ;;  %v1634_v26 = vld [vmem:[#allocation7 + $0x3d0] sm:$0xff] }
 0x31f   : > { %v4811_v31 = vpack.c.bf16 %v1633_v30, %v1625_v29  ;;  %v4845_v27 = vpack.c.bf16 %v1634_v26, %v1626_v24  ;;  %v1525_v29 = vld [vmem:[#allocation7 + $0x68] sm:$0xff]  ;;  %v1519_v30 = vld [vmem:[#allocation7 + $0x38] sm:$0xff]  ;;  %v1574_v26 = vld [vmem:[#allocation7 + $0x1f0] sm:$0xff] }
 0x320   : > { %v1240_v36 = vmax.f32 %v1236_v33, 0.0 }
 0x322   : > { %v1241_v37 = vpack.c.bf16 %v1240_v36, %v1239_v35 }
 0x324   : > { %4600 = vmatmul.mubr.bf16.vlgmr.msra.gmra.mrb[0].mxu1 %v1241_v37 }
 0x325   : > { %1704 = vmatprep.mubr.f32.mxu1 %v6361_v0  ;;  %4786 = vmatpush1.bf16.msra.mxu1 %v4785_v55  ;;  %v1546_v55 = vld [vmem:[#allocation7 + $0x110] sm:$0xff] }
 0x326   : > { %4788 = vmatprep.subr.bf16.mxu1 %v4787_v58  ;;  %v1571_v58 = vld [vmem:[#allocation7 + $0x1d8] sm:$0xff]  ;;  %v4825_v59 = vpack.c.bf16 %v1554_v56, %v1546_v55  ;;  %v1532_v55 = vld [vmem:[#allocation7 + $0xa0] sm:$0xff] }
 0x327   : > { %v4827_v60 = vpack.c.bf16 %v1571_v58, %v1563_v57  ;;  %v1540_v56 = vld [vmem:[#allocation7 + $0xe0] sm:$0xff] }
 0x329   : > { %4790 = vmatpush1.bf16.msra.mxu1 %v4789_v61  ;;  %v1562_v61 = vld [vmem:[#allocation7 + $0x190] sm:$0xff] }
 0x32a   : > { %4792 = vmatprep.subr.bf16.mxu1 %v4791_v1  ;;  %v1587_v1 = vld [vmem:[#allocation7 + $0x258] sm:$0xff]  ;;  %v4829_v2 = vpack.c.bf16 %v1570_v62, %v1562_v61  ;;  %v1549_v61 = vld [vmem:[#allocation7 + $0x128] sm:$0xff] }
 0x32b   : > { %v4831_v3 = vpack.c.bf16 %v1587_v1, %v1579_v63 }
 0x32d   : > { %4794 = vmatpush1.bf16.msra.mxu1 %v4793_v4  ;;  %v1578_v4 = vld [vmem:[#allocation7 + $0x210] sm:$0xff] }
 0x32e   : > { %4796 = vmatprep.subr.bf16.mxu1 %v4795_v7  ;;  %v1603_v7 = vld [vmem:[#allocation7 + $0x2d8] sm:$0xff]  ;;  %v4833_v8 = vpack.c.bf16 %v1586_v5, %v1578_v4 }
 0x32f   : > { %v4835_v9 = vpack.c.bf16 %v1603_v7, %v1595_v6  ;;  %v1551_v4 = vld [vmem:[#allocation7 + $0x138] sm:$0xff]  ;;  %v4853_v7 = vpack.c.bf16 %v1540_v56, %v1532_v55  ;;  %v1613_v55 = vld [vmem:[#allocation7 + $0x328] sm:$0xff] }
 0x330   : > { %v1559_v5 = vld [vmem:[#allocation7 + $0x178] sm:$0xff]  ;;  %v1621_v56 = vld [vmem:[#allocation7 + $0x368] sm:$0xff] }
 0x331   : > { %4798 = vmatpush1.bf16.msra.mxu1 %v4797_v10  ;;  %v1594_v10 = vld [vmem:[#allocation7 + $0x290] sm:$0xff] }
 0x332   : > { %4800 = vmatprep.subr.bf16.mxu1 %v4799_v13  ;;  %v1619_v13 = vld [vmem:[#allocation7 + $0x358] sm:$0xff]  ;;  %v4837_v14 = vpack.c.bf16 %v1602_v11, %v1594_v10  ;;  %v1556_v10 = vld [vmem:[#allocation7 + $0x160] sm:$0xff] }
 0x333   : > { %v4839_v15 = vpack.c.bf16 %v1619_v13, %v1611_v12  ;;  %v4887_v12 = vpack.c.bf16 %v1559_v5, %v1551_v4  ;;  %v1550_v13 = vld [vmem:[#allocation7 + $0x130] sm:$0xff]  ;;  %v1629_v5 = vld [vmem:[#allocation7 + $0x3a8] sm:$0xff] }
 0x334   : > { %v1622_v4 = vld [vmem:[#allocation7 + $0x370] sm:$0xff] }
 0x335   : > { %4802 = vmatpush1.bf16.msra.mxu1 %v4801_v16  ;;  %v1610_v16 = vld [vmem:[#allocation7 + $0x310] sm:$0xff] }
 0x336   : > { %4804 = vmatprep.subr.bf16.mxu1 %v4803_v19  ;;  %v1635_v19 = vld [vmem:[#allocation7 + $0x3d8] sm:$0xff]  ;;  %v4841_v20 = vpack.c.bf16 %v1618_v17, %v1610_v16  ;;  %v1573_v16 = vld [vmem:[#allocation7 + $0x1e8] sm:$0xff] }
 0x337   : > { %v4843_v21 = vpack.c.bf16 %v1635_v19, %v1627_v18  ;;  %v1567_v17 = vld [vmem:[#allocation7 + $0x1b8] sm:$0xff] }
 0x338   : > { %v1575_v18 = vld [vmem:[#allocation7 + $0x1f8] sm:$0xff] }
 0x339   : > { %4806 = vmatpush1.bf16.msra.mxu1 %v4805_v22  ;;  %v1624_v22 = vld [vmem:[#allocation7 + $0x380] sm:$0xff]  ;;  %v4891_v24 = vpack.c.bf16 %v1575_v18, %v1567_v17  ;;  %v1638_v17 = vld [vmem:[#allocation7 + $0x3f0] sm:$0xff]  ;;  %v1951_v18 = vld [vmem:[#allocation8 + $0x8] sm:$0xff] }
 0x33a   : > { %4808 = vmatprep.subr.bf16.mxu1 %v4807_v25  ;;  %v4813_v25 = vpack.c.bf16 %v1632_v23, %v1624_v22  ;;  %v1572_v22 = vld [vmem:[#allocation7 + $0x1e0] sm:$0xff] }
 0x33d   : > { %4810 = vmatpush1.bf16.msra.mxu1 %v4809_v28  ;;  %v1517_v28 = vld [vmem:[#allocation7 + $0x28] sm:$0xff] }
 0x33e   : > { %4812 = vmatprep.subr.bf16.mxu1 %v4811_v31  ;;  %v4847_v31 = vpack.c.bf16 %v1525_v29, %v1517_v28  ;;  %v1589_v28 = vld [vmem:[#allocation7 + $0x268] sm:$0xff]  ;;  %v1583_v29 = vld [vmem:[#allocation7 + $0x238] sm:$0xff] }
 0x341   : > { %4814 = vmatpush1.bf16.msra.mxu1 %v4813_v25  ;;  %v1566_v25 = vld [vmem:[#allocation7 + $0x1b0] sm:$0xff] }
 0x342   : > { %4848 = vmatprep.subr.bf16.mxu1 %v4847_v31 }
 0x3f7   : > { %v1347_v33 = vpop.f32.mrb[0].mxu1 }
 0x3f8   : > { %v1348_v34 = vadd.f32 %v4219_v32, %v1347_v33  ;;  %v4601_v35 = vpop.f32.mrb[1].mxu1 }
 0x3f9   : > { %v1350_v36 = vpop.f32.mrb[2].mxu1 }
 0x3fa   : > { %v1351_v37 = vadd.f32 %v4219_v32, %v1350_v36  ;;  %v4602_v38 = vpop.f32.mrb[3].mxu1  ;;  %5610 = vtanh.f32 %v1348_v34  ;;  %v1527_v32 = vld [vmem:[#allocation7 + $0x78] sm:$0xff]  ;;  %v1375_v34 = vlaneseq }
 0x3fb   : > { %v4879_v33 = vpack.c.bf16 %v1527_v32, %v1519_v30  ;;  %v1591_v30 = vld [vmem:[#allocation7 + $0x278] sm:$0xff]  ;;  %v4893_v32 = vpack.c.bf16 %v1574_v26, %v1566_v25 }
 0x3fc   : > { %5612 = vtanh.f32 %v1351_v37  ;;  %v7052_v35 = vshrl.u32 %v1375_v34, 7  ;;  %v1373_v37 = vld [vmem:[#allocation23] sm:$0x3] }
 0x3fd   : > { %v1588_v34 = vld [vmem:[#allocation7 + $0x260] sm:$0xff] }
 0x3fe   : > { %v1377_v36 = vsub.s32 0, %v7052_v35  ;;  %v1381_v38 = vsub.s32 1, %v7052_v35 }
 0x400   : > { %v1378_v39 = vrot.slane %v1373_v37, %v1377_v36  ;;  %v1382_v41 = vrot.slane %v1373_v37, %v1381_v38 }
 0x404   : > { %v5611_v43 = vpop.eup %5610 }
 0x406   : > { %v5613_v45 = vpop.eup %5612 }
 0x407   : > { %v1356_v47 = vpack.c.bf16 %v5613_v45, %v5611_v43  ;;  %v1518_v43 = vld [vmem:[#allocation7 + $0x30] sm:$0xff] }
 0x408   : > { %v1526_v45 = vld [vmem:[#allocation7 + $0x70] sm:$0xff] }
 0x409   : > { %1498 = vmatmul.mubr.bf16.vlgmr.msra.gmra.mrb[4].mxu0 %v1356_v47 }
 0x40a   : > { %4818 = vmatpush1.bf16.msra.mxu0 %v4817_v46  ;;  %1781 = vmatprep.mubr.f32.mxu0 %v6361_v0  ;;  %v1533_v46 = vld [vmem:[#allocation7 + $0xa8] sm:$0xff] }
 0x40b   : > { %4820 = vmatprep.subr.bf16.mxu0 %v4819_v48  ;;  %v1541_v48 = vld [vmem:[#allocation7 + $0xe8] sm:$0xff] }
 0x40c   : > { %v4851_v1 = vpack.c.bf16 %v1541_v48, %v1533_v46  ;;  %v1607_v46 = vld [vmem:[#allocation7 + $0x2f8] sm:$0xff] }
 0x40e   : > { %4822 = vmatpush1.bf16.msra.mxu0 %v4821_v53  ;;  %v4849_v53 = vpack.c.bf16 %v1524_v42, %v1516_v40  ;;  %v1582_v40 = vld [vmem:[#allocation7 + $0x230] sm:$0xff]  ;;  %v1597_v42 = vld [vmem:[#allocation7 + $0x2a8] sm:$0xff] }
 0x40f   : > { %4824 = vmatprep.subr.bf16.mxu0 %v4823_v54  ;;  %v4881_v54 = vpack.c.bf16 %v1526_v45, %v1518_v43  ;;  %v1605_v43 = vld [vmem:[#allocation7 + $0x2e8] sm:$0xff]  ;;  %v1599_v45 = vld [vmem:[#allocation7 + $0x2b8] sm:$0xff] }
 0x412   : > { %4826 = vmatpush1.bf16.msra.mxu0 %v4825_v59  ;;  %v1534_v59 = vld [vmem:[#allocation7 + $0xb0] sm:$0xff] }
 0x413   : > { %4828 = vmatprep.subr.bf16.mxu0 %v4827_v60  ;;  %v1542_v60 = vld [vmem:[#allocation7 + $0xf0] sm:$0xff] }
 0x416   : > { %4830 = vmatpush1.bf16.msra.mxu0 %v4829_v2  ;;  %v4883_v2 = vpack.c.bf16 %v1543_v50, %v1535_v49  ;;  %v1596_v49 = vld [vmem:[#allocation7 + $0x2a0] sm:$0xff] }
 0x417   : > { %4832 = vmatprep.subr.bf16.mxu0 %v4831_v3  ;;  %v1557_v3 = vld [vmem:[#allocation7 + $0x168] sm:$0xff]  ;;  %v1604_v50 = vld [vmem:[#allocation7 + $0x2e0] sm:$0xff] }
 0x418   : > { %v4855_v11 = vpack.c.bf16 %v1557_v3, %v1549_v61  ;;  %v1614_v3 = vld [vmem:[#allocation7 + $0x330] sm:$0xff] }
 0x41a   : > { %4834 = vmatpush1.bf16.msra.mxu0 %v4833_v8  ;;  %v4885_v8 = vpack.c.bf16 %v1542_v60, %v1534_v59  ;;  %v1623_v59 = vld [vmem:[#allocation7 + $0x378] sm:$0xff]  ;;  %v4869_v60 = vpack.c.bf16 %v1604_v50, %v1596_v49 }
 0x41b   : > { %4836 = vmatprep.subr.bf16.mxu0 %v4835_v9  ;;  %v1548_v9 = vld [vmem:[#allocation7 + $0x120] sm:$0xff]  ;;  %v1993_v49 = vld [vmem:[#allocation8 + $0x158] sm:$0xff] }
 0x41c   : > { %v4857_v19 = vpack.c.bf16 %v1556_v10, %v1548_v9  ;;  %v1639_v9 = vld [vmem:[#allocation7 + $0x3f8] sm:$0xff] }
 0x41e   : > { %4838 = vmatpush1.bf16.msra.mxu0 %v4837_v14  ;;  %v1558_v14 = vld [vmem:[#allocation7 + $0x170] sm:$0xff] }
 0x41f   : > { %4840 = vmatprep.subr.bf16.mxu0 %v4839_v15  ;;  %v1565_v15 = vld [vmem:[#allocation7 + $0x1a8] sm:$0xff] }
 0x420   : > { %v4859_v23 = vpack.c.bf16 %v1573_v16, %v1565_v15  ;;  %v1630_v16 = vld [vmem:[#allocation7 + $0x3b0] sm:$0xff] }
 0x422   : > { %4842 = vmatpush1.bf16.msra.mxu0 %v4841_v20  ;;  %v4889_v20 = vpack.c.bf16 %v1558_v14, %v1550_v13  ;;  %v1636_v13 = vld [vmem:[#allocation7 + $0x3e0] sm:$0xff] }
 0x423   : > { %4844 = vmatprep.subr.bf16.mxu0 %v4843_v21  ;;  %v1564_v21 = vld [vmem:[#allocation7 + $0x1a0] sm:$0xff] }
 0x424   : > { %v4861_v31 = vpack.c.bf16 %v1572_v22, %v1564_v21  ;;  %v1961_v21 = vld [vmem:[#allocation8 + $0x58] sm:$0xff] }
 0x426   : > { %4846 = vmatpush1.bf16.msra.mxu0 %v4845_v27  ;;  %v1581_v27 = vld [vmem:[#allocation7 + $0x228] sm:$0xff] }
 0x427   : > { %4880 = vmatprep.subr.bf16.mxu0 %v4879_v33  ;;  %v1580_v33 = vld [vmem:[#allocation7 + $0x220] sm:$0xff]  ;;  %v4863_v37 = vpack.c.bf16 %v1589_v28, %v1581_v27  ;;  %v1952_v28 = vld [vmem:[#allocation8 + $0x10] sm:$0xff] }
 0x428   : > { %v1958_v27 = vld [vmem:[#allocation8 + $0x40] sm:$0xff] }
 0x4dc   : > { %v1499_v47 = vpop.f32.mrb[4].mxu0 }
 0x4dd   : > { %v1500_v51 = vadd.f32 %v1499_v47, %v1378_v39  ;;  %v1501_v52 = vpop.f32.mrb[5].mxu0  ;;  %v4865_v47 = vpack.c.bf16 %v1588_v34, %v1580_v33  ;;  %v1977_v33 = vld [vmem:[#allocation8 + $0xd8] sm:$0xff] }
 0x4de   : > { %v7060_v57 = vadd.f32 %v1501_v52, %v1382_v41  ;;  %v1503_v58 = vpop.f32.mrb[6].mxu0  ;;  %v4899_v52 = vpack.c.bf16 %v1607_v46, %v1599_v45 }
 0x4df   : > { %1508 = vst [vmem:[%s7063_s11] sm:$0xff] %v1500_v51  ;;  %v1504_v62 = vadd.f32 %v1503_v58, %v1378_v39  ;;  %v1505_v63 = vpop.f32.mrb[7].mxu0  ;;  %v4895_v39 = vpack.c.bf16 %v1591_v30, %v1583_v29  ;;  %v4867_v51 = vpack.c.bf16 %v1605_v43, %v1597_v42  ;;  %v1615_v58 = vld [vmem:[#allocation7 + $0x338] sm:$0xff]  ;;  %v1960_v29 = vld [vmem:[#allocation8 + $0x50] sm:$0xff]  ;;  %v1967_v30 = vld [vmem:[#allocation8 + $0x88] sm:$0xff] }
 0x4e0   : > { %v7066_v6 = vadd.f32 %v1505_v63, %v1382_v41  ;;  %1705 = vmatmul.mubr.f32.vlgmr.msra.gmra.mrb[4].mxu1 %v7060_v57  ;;  %1782 = vmatmul.mubr.f32.vlgmr.msra.gmra.mrb[8].mxu0 %v7060_v57  ;;  %1510 = vst [vmem:[%s7071_s18] sm:$0xff] %v7060_v57  ;;  %v1590_v41 = vld [vmem:[#allocation7 + $0x270] sm:$0xff]  ;;  %v1620_v63 = vld [vmem:[#allocation7 + $0x360] sm:$0xff]  ;;  %v1983_v43 = vld [vmem:[#allocation8 + $0x108] sm:$0xff] }
 0x4e1   : > { %1509 = vst [vmem:[%s7063_s11 + $0x8] sm:$0xff] %v1504_v62  ;;  %4850 = vmatpush1.bf16.msra.mxu1 %v4849_v53  ;;  %4882 = vmatpush1.bf16.msra.mxu0 %v4881_v54  ;;  %v4897_v48 = vpack.c.bf16 %v1590_v41, %v1582_v40  ;;  %v1598_v53 = vld [vmem:[#allocation7 + $0x2b0] sm:$0xff]  ;;  %v1612_v62 = vld [vmem:[#allocation7 + $0x320] sm:$0xff] }
 0x4e2   : > { %1710 = vmatprep.mubr.f32.mxu1 %v6361_v0  ;;  %1787 = vmatprep.mubr.f32.mxu0 %v6361_v0  ;;  %1511 = vst [vmem:[%s7071_s18 + $0x8] sm:$0xff] %v7066_v6  ;;  %v1606_v54 = vld [vmem:[#allocation7 + $0x2f0] sm:$0xff]  ;;  %v4873_v10 = vpack.c.bf16 %v1620_v63, %v1612_v62  ;;  %v1974_v40 = vld [vmem:[#allocation8 + $0xc0] sm:$0xff] }
 0x4e3   : > { %4852 = vmatprep.subr.bf16.mxu1 %v4851_v1  ;;  %4884 = vmatprep.subr.bf16.mxu0 %v4883_v2  ;;  %v4901_v61 = vpack.c.bf16 %v1606_v54, %v1598_v53  ;;  %v4871_v1 = vpack.c.bf16 %v1621_v56, %v1613_v55  ;;  %v4903_v2 = vpack.c.bf16 %v1623_v59, %v1615_v58  ;;  %v1968_v41 = vld [vmem:[#allocation8 + $0x90] sm:$0xff]  ;;  %v1990_v53 = vld [vmem:[#allocation8 + $0x140] sm:$0xff]  ;;  %v1999_v59 = vld [vmem:[#allocation8 + $0x188] sm:$0xff] }
 0x4e4   : > { %1711 = vmatmul.mubr.f32.gmra.mrb[6].mxu1 %v7066_v6  ;;  %1788 = vmatmul.mubr.f32.gmra.mrb[10].mxu0 %v7066_v6  ;;  %v1976_v42 = vld [vmem:[#allocation8 + $0xd0] sm:$0xff] }
 0x4e5   : > { %4854 = vmatpush1.bf16.msra.mxu1 %v4853_v7  ;;  %4886 = vmatpush1.bf16.msra.mxu0 %v4885_v8  ;;  %v1637_v7 = vld [vmem:[#allocation7 + $0x3e8] sm:$0xff]  ;;  %v1631_v8 = vld [vmem:[#allocation7 + $0x3b8] sm:$0xff]  ;;  %v1984_v56 = vld [vmem:[#allocation8 + $0x110] sm:$0xff] }
 0x4e6   : > { %4856 = vmatprep.subr.bf16.mxu1 %v4855_v11  ;;  %4888 = vmatprep.subr.bf16.mxu0 %v4887_v12  ;;  %v4905_v11 = vpack.c.bf16 %v1622_v4, %v1614_v3  ;;  %v1628_v12 = vld [vmem:[#allocation7 + $0x3a0] sm:$0xff]  ;;  %v4875_v14 = vpack.c.bf16 %v1637_v7, %v1629_v5  ;;  %v4907_v15 = vpack.c.bf16 %v1639_v9, %v1631_v8  ;;  %v1992_v58 = vld [vmem:[#allocation8 + $0x150] sm:$0xff]  ;;  %v2015_v8 = vld [vmem:[#allocation8 + $0x208] sm:$0xff] }
 0x4e7   : > { %1858 = vmatprep.mubr.f32.mxu1 %v6361_v0  ;;  %1935 = vmatprep.mubr.f32.mxu0 %v6361_v0  ;;  %v4877_v22 = vpack.c.bf16 %v1636_v13, %v1628_v12  ;;  %v4953_v63 = vpack.c.bf16 %v1992_v58, %v1984_v56  ;;  %v2000_v5 = vld [vmem:[#allocation8 + $0x190] sm:$0xff]  ;;  %v2023_v9 = vld [vmem:[#allocation8 + $0x248] sm:$0xff]  ;;  %v2014_v13 = vld [vmem:[#allocation8 + $0x200] sm:$0xff] }
 0x4e8   : > { %v2008_v7 = vld [vmem:[#allocation8 + $0x1d0] sm:$0xff] }
 0x4e9   : > { %4858 = vmatpush1.bf16.msra.mxu1 %v4857_v19  ;;  %4890 = vmatpush1.bf16.msra.mxu0 %v4889_v20  ;;  %v1959_v19 = vld [vmem:[#allocation8 + $0x48] sm:$0xff]  ;;  %v1953_v20 = vld [vmem:[#allocation8 + $0x18] sm:$0xff]  ;;  %v4957_v12 = vpack.c.bf16 %v2008_v7, %v2000_v5  ;;  %v2064_v58 = vld [vmem:[#allocation8 + $0x390] sm:$0xff] }
 0x4ea   : > { %4860 = vmatprep.subr.bf16.mxu1 %v4859_v23  ;;  %4892 = vmatprep.subr.bf16.mxu0 %v4891_v24  ;;  %v4909_v23 = vpack.c.bf16 %v1638_v17, %v1630_v16  ;;  %v1950_v24 = vld [vmem:[#allocation8] sm:$0xff]  ;;  %v4911_v25 = vpack.c.bf16 %v1959_v19, %v1951_v18  ;;  %v4943_v26 = vpack.c.bf16 %v1961_v21, %v1953_v20  ;;  %v2016_v17 = vld [vmem:[#allocation8 + $0x210] sm:$0xff]  ;;  %v2031_v19 = vld [vmem:[#allocation8 + $0x288] sm:$0xff] }
 0x4eb   : > { %v4913_v34 = vpack.c.bf16 %v1958_v27, %v1950_v24  ;;  %v2024_v18 = vld [vmem:[#allocation8 + $0x250] sm:$0xff]  ;;  %v2039_v20 = vld [vmem:[#allocation8 + $0x2c8] sm:$0xff]  ;;  %v2033_v21 = vld [vmem:[#allocation8 + $0x298] sm:$0xff] }
 0x4ec   : > { %v4961_v24 = vpack.c.bf16 %v2024_v18, %v2016_v17  ;;  %v4931_v27 = vpack.c.bf16 %v2039_v20, %v2031_v19  ;;  %v1962_v5 = vld [vmem:[#allocation8 + $0x60] sm:$0xff]  ;;  %v1956_v7 = vld [vmem:[#allocation8 + $0x30] sm:$0xff]  ;;  %v1987_v19 = vld [vmem:[#allocation8 + $0x128] sm:$0xff] }
 0x4ed   : > { %4862 = vmatpush1.bf16.msra.mxu1 %v4861_v31  ;;  %4894 = vmatpush1.bf16.msra.mxu0 %v4893_v32  ;;  %v1975_v31 = vld [vmem:[#allocation8 + $0xc8] sm:$0xff]  ;;  %v1969_v32 = vld [vmem:[#allocation8 + $0x98] sm:$0xff]  ;;  %v1972_v17 = vld [vmem:[#allocation8 + $0xb0] sm:$0xff] }
 0x4ee   : > { %4864 = vmatprep.subr.bf16.mxu1 %v4863_v37  ;;  %4896 = vmatprep.subr.bf16.mxu0 %v4895_v39  ;;  %v4945_v37 = vpack.c.bf16 %v1960_v29, %v1952_v28  ;;  %v1966_v39 = vld [vmem:[#allocation8 + $0x80] sm:$0xff]  ;;  %v4915_v45 = vpack.c.bf16 %v1975_v31, %v1967_v30  ;;  %v4947_v46 = vpack.c.bf16 %v1977_v33, %v1969_v32  ;;  %v2032_v29 = vld [vmem:[#allocation8 + $0x290] sm:$0xff]  ;;  %v2047_v31 = vld [vmem:[#allocation8 + $0x308] sm:$0xff] }
 0x4ef   : > { %v4917_v50 = vpack.c.bf16 %v1974_v40, %v1966_v39  ;;  %v2040_v30 = vld [vmem:[#allocation8 + $0x2d0] sm:$0xff]  ;;  %v2055_v32 = vld [vmem:[#allocation8 + $0x348] sm:$0xff]  ;;  %v2049_v33 = vld [vmem:[#allocation8 + $0x318] sm:$0xff] }
 0x4f0   : > { %v4965_v39 = vpack.c.bf16 %v2040_v30, %v2032_v29  ;;  %v2046_v40 = vld [vmem:[#allocation8 + $0x300] sm:$0xff]  ;;  %v1980_v18 = vld [vmem:[#allocation8 + $0xf0] sm:$0xff] }
 0x4f1   : > { %4866 = vmatpush1.bf16.msra.mxu1 %v4865_v47  ;;  %4898 = vmatpush1.bf16.msra.mxu0 %v4897_v48  ;;  %v1991_v47 = vld [vmem:[#allocation8 + $0x148] sm:$0xff]  ;;  %v1985_v48 = vld [vmem:[#allocation8 + $0x118] sm:$0xff]  ;;  %v1994_v29 = vld [vmem:[#allocation8 + $0x160] sm:$0xff] }
 0x4f2   : > { %4868 = vmatprep.subr.bf16.mxu1 %v4867_v51  ;;  %4900 = vmatprep.subr.bf16.mxu0 %v4899_v52  ;;  %v4949_v51 = vpack.c.bf16 %v1976_v42, %v1968_v41  ;;  %v1982_v52 = vld [vmem:[#allocation8 + $0x100] sm:$0xff]  ;;  %v4919_v54 = vpack.c.bf16 %v1991_v47, %v1983_v43  ;;  %v4951_v55 = vpack.c.bf16 %v1993_v49, %v1985_v48  ;;  %v2063_v47 = vld [vmem:[#allocation8 + $0x388] sm:$0xff]  ;;  %v2065_v49 = vld [vmem:[#allocation8 + $0x398] sm:$0xff] }
 0x4f3   : > { %v4921_v62 = vpack.c.bf16 %v1990_v53, %v1982_v52  ;;  %v2054_v41 = vld [vmem:[#allocation8 + $0x340] sm:$0xff]  ;;  %v4935_v42 = vpack.c.bf16 %v2055_v32, %v2047_v31  ;;  %v2071_v48 = vld [vmem:[#allocation8 + $0x3c8] sm:$0xff]  ;;  %v1988_v32 = vld [vmem:[#allocation8 + $0x130] sm:$0xff] }
 0x4f4   : > { %v2062_v53 = vld [vmem:[#allocation8 + $0x380] sm:$0xff] }
 0x4f5   : > { %4870 = vmatpush1.bf16.msra.mxu1 %v4869_v60  ;;  %4902 = vmatpush1.bf16.msra.mxu0 %v4901_v61  ;;  %v2007_v60 = vld [vmem:[#allocation8 + $0x1c8] sm:$0xff]  ;;  %v2001_v61 = vld [vmem:[#allocation8 + $0x198] sm:$0xff] }
 0x4f6   : > { %4872 = vmatprep.subr.bf16.mxu1 %v4871_v1  ;;  %4904 = vmatprep.subr.bf16.mxu0 %v4903_v2  ;;  %v1998_v1 = vld [vmem:[#allocation8 + $0x180] sm:$0xff]  ;;  %v4923_v3 = vpack.c.bf16 %v2007_v60, %v1999_v59  ;;  %v2072_v59 = vld [vmem:[#allocation8 + $0x3d0] sm:$0xff]  ;;  %v1955_v60 = vld [vmem:[#allocation8 + $0x28] sm:$0xff] }
 0x4f7   : > { %v2006_v2 = vld [vmem:[#allocation8 + $0x1c0] sm:$0xff] }
 0x4f9   : > { %4874 = vmatpush1.bf16.msra.mxu1 %v4873_v10  ;;  %4906 = vmatpush1.bf16.msra.mxu0 %v4905_v11  ;;  %v2017_v10 = vld [vmem:[#allocation8 + $0x218] sm:$0xff] }
 0x4fa   : > { %4876 = vmatprep.subr.bf16.mxu1 %v4875_v14  ;;  %4908 = vmatprep.subr.bf16.mxu0 %v4907_v15  ;;  %v2025_v11 = vld [vmem:[#allocation8 + $0x258] sm:$0xff]  ;;  %v2022_v14 = vld [vmem:[#allocation8 + $0x240] sm:$0xff]  ;;  %v4927_v15 = vpack.c.bf16 %v2023_v9, %v2015_v8  ;;  %v1964_v8 = vld [vmem:[#allocation8 + $0x70] sm:$0xff] }
 0x4fb   : > { %v4959_v16 = vpack.c.bf16 %v2025_v11, %v2017_v10  ;;  %v1971_v9 = vld [vmem:[#allocation8 + $0xa8] sm:$0xff]  ;;  %v1973_v11 = vld [vmem:[#allocation8 + $0xb8] sm:$0xff] }
 0x4fc   : > { %v1979_v10 = vld [vmem:[#allocation8 + $0xe8] sm:$0xff] }
 0x4fd   : > { %4878 = vmatpush1.bf16.msra.mxu1 %v4877_v22  ;;  %4910 = vmatpush1.bf16.msra.mxu0 %v4909_v23  ;;  %v2041_v22 = vld [vmem:[#allocation8 + $0x2d8] sm:$0xff]  ;;  %v4929_v23 = vpack.c.bf16 %v2022_v14, %v2014_v13  ;;  %v5009_v14 = vpack.c.bf16 %v1964_v8, %v1956_v7  ;;  %v4979_v20 = vpack.c.bf16 %v1979_v10, %v1971_v9  ;;  %v2042_v7 = vld [vmem:[#allocation8 + $0x2e0] sm:$0xff]  ;;  %v2036_v10 = vld [vmem:[#allocation8 + $0x2b0] sm:$0xff] }
 0x4fe   : > { %4912 = vmatprep.subr.bf16.mxu1 %v4911_v25  ;;  %4944 = vmatprep.subr.bf16.mxu0 %v4943_v26  ;;  %v2030_v25 = vld [vmem:[#allocation8 + $0x280] sm:$0xff]  ;;  %v4963_v28 = vpack.c.bf16 %v2041_v22, %v2033_v21  ;;  %v1995_v22 = vld [vmem:[#allocation8 + $0x168] sm:$0xff] }
 0x4ff   : > { %v2038_v26 = vld [vmem:[#allocation8 + $0x2c0] sm:$0xff]  ;;  %v4983_v30 = vpack.c.bf16 %v1995_v22, %v1987_v19  ;;  %v2052_v22 = vld [vmem:[#allocation8 + $0x330] sm:$0xff] }
 0x500   : > { %1859 = vmatmul.mubr.f32.vlgmr.msra.gmra.mrb[8].mxu1 %v7060_v57  ;;  %1936 = vmatmul.mubr.f32.vlgmr.msra.gmra.mrb[12].mxu0 %v7060_v57  ;;  %v2009_v57 = vld [vmem:[#allocation8 + $0x1d8] sm:$0xff]  ;;  %v2058_v19 = vld [vmem:[#allocation8 + $0x360] sm:$0xff] }
 0x501   : > { %4914 = vmatpush1.bf16.msra.mxu1 %v4913_v34  ;;  %4946 = vmatpush1.bf16.msra.mxu0 %v4945_v37  ;;  %v4955_v4 = vpack.c.bf16 %v2009_v57, %v2001_v61  ;;  %v2057_v34 = vld [vmem:[#allocation8 + $0x358] sm:$0xff]  ;;  %v4933_v37 = vpack.c.bf16 %v2038_v26, %v2030_v25  ;;  %v1963_v61 = vld [vmem:[#allocation8 + $0x68] sm:$0xff] }
 0x502   : > { %1864 = vmatprep.mubr.f32.mxu1 %v6361_v0  ;;  %1941 = vmatprep.mubr.f32.mxu0 %v6361_v0  ;;  %v4967_v43 = vpack.c.bf16 %v2057_v34, %v2049_v33  ;;  %v1957_v57 = vld [vmem:[#allocation8 + $0x38] sm:$0xff]  ;;  %v1996_v33 = vld [vmem:[#allocation8 + $0x170] sm:$0xff]  ;;  %v2003_v34 = vld [vmem:[#allocation8 + $0x1a8] sm:$0xff] }
 0x503   : > { %4916 = vmatprep.subr.bf16.mxu1 %v4915_v45  ;;  %4948 = vmatprep.subr.bf16.mxu0 %v4947_v46  ;;  %v2048_v45 = vld [vmem:[#allocation8 + $0x310] sm:$0xff]  ;;  %v7100_v25 = vld [vmem:[%s960_s13 + $0x8] sm:$0xff] }
 0x504   : > { %1865 = vmatmul.mubr.f32.gmra.mrb[10].mxu1 %v7066_v6  ;;  %1942 = vmatmul.mubr.f32.gmra.mrb[14].mxu0 %v7066_v6  ;;  %v4925_v6 = vpack.c.bf16 %v2006_v2, %v1998_v1  ;;  %v2056_v46 = vld [vmem:[#allocation8 + $0x350] sm:$0xff]  ;;  %v4973_v1 = vpack.c.bf16 %v2072_v59, %v2064_v58  ;;  %v1954_v2 = vld [vmem:[#allocation8 + $0x20] sm:$0xff] }
 0x505   : > { %4918 = vmatpush1.bf16.msra.mxu1 %v4917_v50  ;;  %4950 = vmatpush1.bf16.msra.mxu0 %v4949_v51  ;;  %v2073_v50 = vld [vmem:[#allocation8 + $0x3d8] sm:$0xff]  ;;  %v4937_v51 = vpack.c.bf16 %v2054_v41, %v2046_v40  ;;  %v4969_v52 = vpack.c.bf16 %v2056_v46, %v2048_v45  ;;  %v4977_v13 = vpack.c.bf16 %v1962_v5, %v1954_v2  ;;  %v2010_v45 = vld [vmem:[#allocation8 + $0x1e0] sm:$0xff] }
 0x506   : > { %4920 = vmatprep.subr.bf16.mxu1 %v4919_v54  ;;  %4952 = vmatprep.subr.bf16.mxu0 %v4951_v55  ;;  %v2070_v54 = vld [vmem:[#allocation8 + $0x3c0] sm:$0xff]  ;;  %v4939_v55 = vpack.c.bf16 %v2071_v48, %v2063_v47  ;;  %v4971_v56 = vpack.c.bf16 %v2073_v50, %v2065_v49  ;;  %v2013_v40 = vld [vmem:[#allocation8 + $0x1f8] sm:$0xff]  ;;  %v2004_v48 = vld [vmem:[#allocation8 + $0x1b0] sm:$0xff] }
 0x507   : > { %2142 = vmatprep.mubr.f32.mxu1 %v6361_v0  ;;  %2219 = vmatprep.mubr.f32.mxu0 %v6361_v0  ;;  %v2012_v49 = vld [vmem:[#allocation8 + $0x1f0] sm:$0xff]  ;;  %v2019_v50 = vld [vmem:[#allocation8 + $0x228] sm:$0xff]  ;;  %v2026_v58 = vld [vmem:[#allocation8 + $0x260] sm:$0xff] }
 0x508   : > { %v2045_v2 = vld [vmem:[#allocation8 + $0x2f8] sm:$0xff]  ;;  %v2034_v5 = vld [vmem:[#allocation8 + $0x2a0] sm:$0xff] }
 0x509   : > { %4922 = vmatpush1.bf16.msra.mxu1 %v4921_v62  ;;  %4954 = vmatpush1.bf16.msra.mxu0 %v4953_v63  ;;  %v1965_v62 = vld [vmem:[#allocation8 + $0x78] sm:$0xff]  ;;  %v4941_v63 = vpack.c.bf16 %v2070_v54, %v2062_v53 }
 0x50a   : > { %4924 = vmatprep.subr.bf16.mxu1 %v4923_v3  ;;  %4956 = vmatprep.subr.bf16.mxu0 %v4955_v4  ;;  %v4975_v3 = vpack.c.bf16 %v1963_v61, %v1955_v60  ;;  %v5007_v4 = vpack.c.bf16 %v1965_v62, %v1957_v57  ;;  %v2029_v53 = vld [vmem:[#allocation8 + $0x278] sm:$0xff]  ;;  %v2020_v61 = vld [vmem:[#allocation8 + $0x230] sm:$0xff]  ;;  %v2035_v62 = vld [vmem:[#allocation8 + $0x2a8] sm:$0xff] }
 0x50b   : > { %v2028_v57 = vld [vmem:[#allocation8 + $0x270] sm:$0xff] }
 0x50d   : > { %4926 = vmatpush1.bf16.msra.mxu1 %v4925_v6  ;;  %4958 = vmatpush1.bf16.msra.mxu0 %v4957_v12  ;;  %v1981_v6 = vld [vmem:[#allocation8 + $0xf8] sm:$0xff]  ;;  %v7094_v12 = vld [vmem:[%s960_s13] sm:$0xff]  ;;  %s7722_s13 = sld [smem:[#allocation69_spill]] }
 0x50e   : > { %4928 = vmatprep.subr.bf16.mxu1 %v4927_v15  ;;  %4960 = vmatprep.subr.bf16.mxu0 %v4959_v16  ;;  %v1970_v15 = vld [vmem:[#allocation8 + $0xa0] sm:$0xff]  ;;  %v5011_v21 = vpack.c.bf16 %v1981_v6, %v1973_v11  ;;  %v2044_v11 = vld [vmem:[#allocation8 + $0x2f0] sm:$0xff]  ;;  %v2051_v6 = vld [vmem:[#allocation8 + $0x328] sm:$0xff] }
 0x50f   : > { %v1978_v16 = vld [vmem:[#allocation8 + $0xe0] sm:$0xff] }
 0x510   : > { %v4981_v26 = vpack.c.bf16 %v1978_v16, %v1970_v15  ;;  %v2061_v15 = vld [vmem:[#allocation8 + $0x378] sm:$0xff]  ;;  %v4997_v16 = vpack.c.bf16 %v2042_v7, %v2034_v5  ;;  %v2455_v5 = vld [vmem:[#allocation10 + $0x1a8] sm:$0xff] }
 0x511   : > { %4930 = vmatpush1.bf16.msra.mxu1 %v4929_v23  ;;  %4962 = vmatpush1.bf16.msra.mxu0 %v4961_v24  ;;  %v1989_v23 = vld [vmem:[#allocation8 + $0x138] sm:$0xff] }
 0x512   : > { %4932 = vmatprep.subr.bf16.mxu1 %v4931_v27  ;;  %4964 = vmatprep.subr.bf16.mxu0 %v4963_v28  ;;  %v1997_v24 = vld [vmem:[#allocation8 + $0x178] sm:$0xff]  ;;  %v5013_v27 = vpack.c.bf16 %v1980_v18, %v1972_v17  ;;  %v1986_v28 = vld [vmem:[#allocation8 + $0x120] sm:$0xff]  ;;  %v5029_v17 = vpack.c.bf16 %v2044_v11, %v2036_v10  ;;  %v2407_v10 = vld [vmem:[#allocation10 + $0x28] sm:$0xff] }
 0x513   : > { %v5015_v31 = vpack.c.bf16 %v1997_v24, %v1989_v23  ;;  %v4985_v41 = vpack.c.bf16 %v1994_v29, %v1986_v28  ;;  %v2050_v18 = vld [vmem:[#allocation8 + $0x320] sm:$0xff]  ;;  %v2060_v23 = vld [vmem:[#allocation8 + $0x370] sm:$0xff]  ;;  %v2067_v24 = vld [vmem:[#allocation8 + $0x3a8] sm:$0xff] }
 0x514   : > { %v2077_v28 = vld [vmem:[#allocation8 + $0x3f8] sm:$0xff]  ;;  %v5001_v29 = vpack.c.bf16 %v2058_v19, %v2050_v18  ;;  %v2438_v11 = vld [vmem:[#allocation10 + $0x120] sm:$0xff]  ;;  %v2456_v18 = vld [vmem:[#allocation10 + $0x1b0] sm:$0xff] }
 0x515   : > { %4934 = vmatpush1.bf16.msra.mxu1 %v4933_v37  ;;  %4966 = vmatpush1.bf16.msra.mxu0 %v4965_v39  ;;  %v2011_v37 = vld [vmem:[#allocation8 + $0x1e8] sm:$0xff]  ;;  %v2005_v39 = vld [vmem:[#allocation8 + $0x1b8] sm:$0xff] }
 0x516   : > { %4936 = vmatprep.subr.bf16.mxu1 %v4935_v42  ;;  %4968 = vmatprep.subr.bf16.mxu0 %v4967_v43  ;;  %v5017_v42 = vpack.c.bf16 %v1996_v33, %v1988_v32  ;;  %v2002_v43 = vld [vmem:[#allocation8 + $0x1a0] sm:$0xff]  ;;  %v4987_v46 = vpack.c.bf16 %v2011_v37, %v2003_v34  ;;  %v5019_v47 = vpack.c.bf16 %v2013_v40, %v2005_v39  ;;  %v2068_v37 = vld [vmem:[#allocation8 + $0x3b0] sm:$0xff]  ;;  %v2457_v19 = vld [vmem:[#allocation10 + $0x1b8] sm:$0xff] }
 0x517   : > { %v4989_v54 = vpack.c.bf16 %v2010_v45, %v2002_v43  ;;  %v2074_v34 = vld [vmem:[#allocation8 + $0x3e0] sm:$0xff]  ;;  %v2076_v39 = vld [vmem:[#allocation8 + $0x3f0] sm:$0xff]  ;;  %v2419_v43 = vld [vmem:[#allocation10 + $0x88] sm:$0xff] }
 0x518   : > { %v2450_v45 = vld [vmem:[#allocation10 + $0x180] sm:$0xff] }
 0x519   : > { %4938 = vmatpush1.bf16.msra.mxu1 %v4937_v51  ;;  %4970 = vmatpush1.bf16.msra.mxu0 %v4969_v52  ;;  %v2027_v51 = vld [vmem:[#allocation8 + $0x268] sm:$0xff]  ;;  %v2021_v52 = vld [vmem:[#allocation8 + $0x238] sm:$0xff] }
 0x51a   : > { %4940 = vmatprep.subr.bf16.mxu1 %v4939_v55  ;;  %4972 = vmatprep.subr.bf16.mxu0 %v4971_v56  ;;  %v5021_v55 = vpack.c.bf16 %v2012_v49, %v2004_v48  ;;  %v2018_v56 = vld [vmem:[#allocation8 + $0x220] sm:$0xff]  ;;  %v4991_v59 = vpack.c.bf16 %v2027_v51, %v2019_v50  ;;  %v5023_v60 = vpack.c.bf16 %v2029_v53, %v2021_v52  ;;  %v2403_v49 = vld [vmem:[#allocation10 + $0x8] sm:$0xff] }
 0x51b   : > { %v2402_v48 = vld [vmem:[#allocation10] sm:$0xff]  ;;  %v2435_v53 = vld [vmem:[#allocation10 + $0x108] sm:$0xff] }
 0x51c   : > { %v5041_v51 = vpack.c.bf16 %v2403_v49, %v2402_v48  ;;  %v2434_v52 = vld [vmem:[#allocation10 + $0x100] sm:$0xff]  ;;  %v2412_v49 = vld [vmem:[#allocation10 + $0x50] sm:$0xff] }
 0x51d   : > { %4942 = vmatpush1.bf16.msra.mxu1 %v4941_v63  ;;  %4974 = vmatpush1.bf16.msra.mxu0 %v4973_v1  ;;  %v2043_v63 = vld [vmem:[#allocation8 + $0x2e8] sm:$0xff]  ;;  %v2037_v1 = vld [vmem:[#allocation8 + $0x2b8] sm:$0xff] }
 0x51e   : > { %4976 = vmatprep.subr.bf16.mxu1 %v4975_v3  ;;  %5008 = vmatprep.subr.bf16.mxu0 %v5007_v4  ;;  %v4993_v3 = vpack.c.bf16 %v2026_v58, %v2018_v56  ;;  %v5025_v4 = vpack.c.bf16 %v2028_v57, %v2020_v61  ;;  %v4995_v8 = vpack.c.bf16 %v2043_v63, %v2035_v62  ;;  %v2452_v56 = vld [vmem:[#allocation10 + $0x190] sm:$0xff]  ;;  %v2437_v63 = vld [vmem:[#allocation10 + $0x118] sm:$0xff] }
 0x51f   : > { %v5027_v9 = vpack.c.bf16 %v2045_v2, %v2037_v1  ;;  %v2436_v62 = vld [vmem:[#allocation10 + $0x110] sm:$0xff]  ;;  %v2422_v1 = vld [vmem:[#allocation10 + $0xa0] sm:$0xff] }
 0x520   : > { %2143 = vmatmul.mubr.f32.vlgmr.msra.gmra.mrb[12].mxu1 %v7094_v12  ;;  %2220 = vmatmul.mubr.f32.vlgmr.msra.gmra.mrb[16].mxu0 %v7094_v12  ;;  %v5077_v2 = vpack.c.bf16 %v2437_v63, %v2436_v62  ;;  %v2446_v62 = vld [vmem:[#allocation10 + $0x160] sm:$0xff]  ;;  %v2447_v63 = vld [vmem:[#allocation10 + $0x168] sm:$0xff] }
 0x521   : > { %4978 = vmatpush1.bf16.msra.mxu1 %v4977_v13  ;;  %5010 = vmatpush1.bf16.msra.mxu0 %v5009_v14  ;;  %v2059_v13 = vld [vmem:[#allocation8 + $0x368] sm:$0xff]  ;;  %v2053_v14 = vld [vmem:[#allocation8 + $0x338] sm:$0xff] }
 0x522   : > { %2148 = vmatprep.mubr.f32.mxu1 %v6361_v0  ;;  %2225 = vmatprep.mubr.f32.mxu0 %v6361_v0 }
 0x523   : > { %4980 = vmatprep.subr.bf16.mxu1 %v4979_v20  ;;  %5012 = vmatprep.subr.bf16.mxu0 %v5011_v21  ;;  %v4999_v20 = vpack.c.bf16 %v2059_v13, %v2051_v6  ;;  %v5031_v21 = vpack.c.bf16 %v2061_v15, %v2053_v14  ;;  %v2439_v13 = vld [vmem:[#allocation10 + $0x128] sm:$0xff]  ;;  %v2424_v14 = vld [vmem:[#allocation10 + $0xb0] sm:$0xff]  ;;  %v2425_v15 = vld [vmem:[#allocation10 + $0xb8] sm:$0xff] }
 0x524   : > { %2149 = vmatmul.mubr.f32.gmra.mrb[14].mxu1 %v7100_v25  ;;  %2226 = vmatmul.mubr.f32.gmra.mrb[18].mxu0 %v7100_v25 }
 0x525   : > { %4982 = vmatpush1.bf16.msra.mxu1 %v4981_v26  ;;  %5014 = vmatpush1.bf16.msra.mxu0 %v5013_v27  ;;  %v2075_v26 = vld [vmem:[#allocation8 + $0x3e8] sm:$0xff]  ;;  %v2069_v27 = vld [vmem:[#allocation8 + $0x3b8] sm:$0xff] }
 0x526   : > { %4984 = vmatprep.subr.bf16.mxu1 %v4983_v30  ;;  %5016 = vmatprep.subr.bf16.mxu0 %v5015_v31  ;;  %v5033_v30 = vpack.c.bf16 %v2060_v23, %v2052_v22  ;;  %v2066_v31 = vld [vmem:[#allocation8 + $0x3a0] sm:$0xff]  ;;  %v5003_v32 = vpack.c.bf16 %v2075_v26, %v2067_v24  ;;  %v5035_v33 = vpack.c.bf16 %v2077_v28, %v2069_v27  ;;  %v2409_v22 = vld [vmem:[#allocation10 + $0x38] sm:$0xff]  ;;  %v2440_v23 = vld [vmem:[#allocation10 + $0x130] sm:$0xff] }
 0x527   : > { %2296 = vmatprep.mubr.f32.mxu1 %v6361_v0  ;;  %2373 = vmatprep.mubr.f32.mxu0 %v6361_v0  ;;  %v5005_v40 = vpack.c.bf16 %v2074_v34, %v2066_v31  ;;  %v2441_v24 = vld [vmem:[#allocation10 + $0x138] sm:$0xff]  ;;  %v2426_v26 = vld [vmem:[#allocation10 + $0xc0] sm:$0xff]  ;;  %v2427_v27 = vld [vmem:[#allocation10 + $0xc8] sm:$0xff] }
 0x528   : > { %v2458_v28 = vld [vmem:[#allocation10 + $0x1c0] sm:$0xff]  ;;  %v5085_v31 = vpack.c.bf16 %v2441_v24, %v2440_v23  ;;  %v2411_v34 = vld [vmem:[#allocation10 + $0x48] sm:$0xff] }
 0x529   : > { %4986 = vmatpush1.bf16.msra.mxu1 %v4985_v41  ;;  %5018 = vmatpush1.bf16.msra.mxu0 %v5017_v42  ;;  %v5037_v41 = vpack.c.bf16 %v2076_v39, %v2068_v37  ;;  %v2418_v42 = vld [vmem:[#allocation10 + $0x80] sm:$0xff] }
 0x52a   : > { %4988 = vmatprep.subr.bf16.mxu1 %v4987_v46  ;;  %5020 = vmatprep.subr.bf16.mxu0 %v5019_v47  ;;  %v5039_v46 = vpack.c.bf16 %v2419_v43, %v2418_v42  ;;  %v2451_v47 = vld [vmem:[#allocation10 + $0x188] sm:$0xff]  ;;  %v2442_v37 = vld [vmem:[#allocation10 + $0x140] sm:$0xff]  ;;  %v2429_v42 = vld [vmem:[#allocation10 + $0xd8] sm:$0xff] }
 0x52b   : > { %v5071_v50 = vpack.c.bf16 %v2451_v47, %v2450_v45  ;;  %v2460_v43 = vld [vmem:[#allocation10 + $0x1d0] sm:$0xff]  ;;  %v2461_v45 = vld [vmem:[#allocation10 + $0x1d8] sm:$0xff] }
 0x52d   : > { %4990 = vmatpush1.bf16.msra.mxu1 %v4989_v54  ;;  %5022 = vmatpush1.bf16.msra.mxu0 %v5021_v55  ;;  %v2420_v54 = vld [vmem:[#allocation10 + $0x90] sm:$0xff]  ;;  %v2421_v55 = vld [vmem:[#allocation10 + $0x98] sm:$0xff] }
 0x52e   : > { %4992 = vmatprep.subr.bf16.mxu1 %v4991_v59  ;;  %5024 = vmatprep.subr.bf16.mxu0 %v5023_v60  ;;  %v5043_v58 = vpack.c.bf16 %v2421_v55, %v2420_v54  ;;  %v2404_v59 = vld [vmem:[#allocation10 + $0x10] sm:$0xff]  ;;  %v2405_v60 = vld [vmem:[#allocation10 + $0x18] sm:$0xff]  ;;  %v2431_v54 = vld [vmem:[#allocation10 + $0xe8] sm:$0xff] }
 0x52f   : > { %v5045_v57 = vpack.c.bf16 %v2405_v60, %v2404_v59  ;;  %v2462_v55 = vld [vmem:[#allocation10 + $0x1e0] sm:$0xff] }
 0x530   : > { %v2414_v60 = vld [vmem:[#allocation10 + $0x60] sm:$0xff] }
 0x531   : > { %4994 = vmatpush1.bf16.msra.mxu1 %v4993_v3  ;;  %5026 = vmatpush1.bf16.msra.mxu0 %v5025_v4  ;;  %v2423_v3 = vld [vmem:[#allocation10 + $0xa8] sm:$0xff]  ;;  %v2454_v4 = vld [vmem:[#allocation10 + $0x1a0] sm:$0xff] }
 0x532   : > { %4996 = vmatprep.subr.bf16.mxu1 %v4995_v8  ;;  %5028 = vmatprep.subr.bf16.mxu0 %v5027_v9  ;;  %v5047_v7 = vpack.c.bf16 %v2423_v3, %v2422_v1  ;;  %v5079_v8 = vpack.c.bf16 %v2455_v5, %v2454_v4  ;;  %v2406_v9 = vld [vmem:[#allocation10 + $0x20] sm:$0xff]  ;;  %v2432_v3 = vld [vmem:[#allocation10 + $0xf0] sm:$0xff]  ;;  %v2433_v4 = vld [vmem:[#allocation10 + $0xf8] sm:$0xff] }
 0x533   : > { %v5049_v6 = vpack.c.bf16 %v2407_v10, %v2406_v9  ;;  %v2464_v5 = vld [vmem:[#allocation10 + $0x1f0] sm:$0xff]  ;;  %v2417_v10 = vld [vmem:[#allocation10 + $0x78] sm:$0xff] }
 0x534   : > { %v2416_v9 = vld [vmem:[#allocation10 + $0x70] sm:$0xff] }
 0x535   : > { %4998 = vmatpush1.bf16.msra.mxu1 %v4997_v16  ;;  %5030 = vmatpush1.bf16.msra.mxu0 %v5029_v17  ;;  %v5081_v16 = vpack.c.bf16 %v2439_v13, %v2438_v11  ;;  %v5051_v17 = vpack.c.bf16 %v2425_v15, %v2424_v14  ;;  %v2448_v13 = vld [vmem:[#allocation10 + $0x170] sm:$0xff]  ;;  %v2449_v14 = vld [vmem:[#allocation10 + $0x178] sm:$0xff] }
 0x536   : > { %5000 = vmatprep.subr.bf16.mxu1 %v4999_v20  ;;  %5032 = vmatprep.subr.bf16.mxu0 %v5031_v21  ;;  %v2408_v20 = vld [vmem:[#allocation10 + $0x30] sm:$0xff]  ;;  %v5083_v21 = vpack.c.bf16 %v2457_v19, %v2456_v18  ;;  %v5101_v15 = vpack.c.bf16 %v2449_v14, %v2448_v13  ;;  %v2514_v18 = vld [vmem:[#allocation10 + $0x380] sm:$0xff] }
 0x539   : > { %5002 = vmatpush1.bf16.msra.mxu1 %v5001_v29  ;;  %5034 = vmatpush1.bf16.msra.mxu0 %v5033_v30  ;;  %v5053_v29 = vpack.c.bf16 %v2409_v22, %v2408_v20  ;;  %v2459_v30 = vld [vmem:[#allocation10 + $0x1c8] sm:$0xff] }
 0x53a   : > { %5004 = vmatprep.subr.bf16.mxu1 %v5003_v32  ;;  %5036 = vmatprep.subr.bf16.mxu0 %v5035_v33  ;;  %v5055_v32 = vpack.c.bf16 %v2427_v27, %v2426_v26  ;;  %v2410_v33 = vld [vmem:[#allocation10 + $0x40] sm:$0xff]  ;;  %v5087_v39 = vpack.c.bf16 %v2459_v30, %v2458_v28  ;;  %v2515_v20 = vld [vmem:[#allocation10 + $0x388] sm:$0xff] }
 0x53d   : > { %5006 = vmatpush1.bf16.msra.mxu1 %v5005_v40  ;;  %5038 = vmatpush1.bf16.msra.mxu0 %v5037_v41  ;;  %v2443_v40 = vld [vmem:[#allocation10 + $0x148] sm:$0xff]  ;;  %v2428_v41 = vld [vmem:[#allocation10 + $0xd0] sm:$0xff] }
 0x53e   : > { %5040 = vmatprep.subr.bf16.mxu1 %v5039_v46  ;;  %5072 = vmatprep.subr.bf16.mxu0 %v5071_v50  ;;  %v5057_v46 = vpack.c.bf16 %v2411_v34, %v2410_v33  ;;  %v5089_v47 = vpack.c.bf16 %v2443_v40, %v2442_v37  ;;  %v5059_v48 = vpack.c.bf16 %v2429_v42, %v2428_v41  ;;  %v2413_v50 = vld [vmem:[#allocation10 + $0x58] sm:$0xff]  ;;  %v2466_v42 = vld [vmem:[#allocation10 + $0x200] sm:$0xff] }
 0x540   : > { %2297 = vmatmul.mubr.f32.vlgmr.msra.gmra.mrb[16].mxu1 %v7094_v12  ;;  %2374 = vmatmul.mubr.f32.vlgmr.msra.gmra.mrb[20].mxu0 %v7094_v12  ;;  %v5073_v12 = vpack.c.bf16 %v2435_v53, %v2434_v52  ;;  %v5091_v52 = vpack.c.bf16 %v2461_v45, %v2460_v43  ;;  %v2445_v53 = vld [vmem:[#allocation10 + $0x158] sm:$0xff]  ;;  %v2467_v43 = vld [vmem:[#allocation10 + $0x208] sm:$0xff]  ;;  %v2498_v45 = vld [vmem:[#allocation10 + $0x300] sm:$0xff] }
 0x541   : > { %2302 = vmatprep.mubr.f32.mxu1 %v6361_v0  ;;  %2379 = vmatprep.mubr.f32.mxu0 %v6361_v0 }
 0x542   : > { %5042 = vmatpush3.bf16.msra.mxu1 %v5041_v51  ;;  %5074 = vmatpush3.bf16.msra.mxu0 %v5073_v12  ;;  %v2444_v51 = vld [vmem:[#allocation10 + $0x150] sm:$0xff]  ;;  %v2430_v12 = vld [vmem:[#allocation10 + $0xe0] sm:$0xff] }
 0x543   : > { %5044 = vmatprep.subr.bf16.mxu1 %v5043_v58  ;;  %v5061_v58 = vpack.c.bf16 %v2413_v50, %v2412_v49  ;;  %v5063_v59 = vpack.c.bf16 %v2431_v54, %v2430_v12  ;;  %v2485_v50 = vld [vmem:[#allocation10 + $0x298] sm:$0xff] }
 0x544   : > { %2303 = vmatmul.mubr.f32.gmra.mrb[18].mxu1 %v7100_v25  ;;  %2380 = vmatmul.mubr.f32.gmra.mrb[22].mxu0 %v7100_v25  ;;  %v2453_v25 = vld [vmem:[#allocation10 + $0x198] sm:$0xff] }
 0x545   : > { %v5075_v61 = vpack.c.bf16 %v2453_v25, %v2452_v56  ;;  %v2463_v56 = vld [vmem:[#allocation10 + $0x1e8] sm:$0xff]  ;;  %v5093_v25 = vpack.c.bf16 %v2445_v53, %v2444_v51  ;;  %v2516_v51 = vld [vmem:[#allocation10 + $0x390] sm:$0xff] }
 0x546   : > { %5046 = vmatpush3.bf16.msra.mxu1 %v5045_v57  ;;  %v5095_v57 = vpack.c.bf16 %v2463_v56, %v2462_v55 }
 0x547   : > { %5076 = vmatprep.subr.bf16.mxu0 %v5075_v61  ;;  %5048 = vmatprep.subr.bf16.mxu1 %v5047_v7  ;;  %v2415_v61 = vld [vmem:[#allocation10 + $0x68] sm:$0xff]  ;;  %v5067_v7 = vpack.c.bf16 %v2433_v4, %v2432_v3 }
 0x548   : > { %5078 = vmatpush3.bf16.msra.mxu0 %v5077_v2  ;;  %v5065_v1 = vpack.c.bf16 %v2415_v61, %v2414_v60  ;;  %v5097_v2 = vpack.c.bf16 %v2447_v63, %v2446_v62  ;;  %v2468_v60 = vld [vmem:[#allocation10 + $0x210] sm:$0xff]  ;;  %v2469_v61 = vld [vmem:[#allocation10 + $0x218] sm:$0xff] }
 0x549   : > { %5080 = vmatprep.subr.bf16.mxu0 %v5079_v8  ;;  %v2465_v8 = vld [vmem:[#allocation10 + $0x1f8] sm:$0xff]  ;;  %v2500_v63 = vld [vmem:[#allocation10 + $0x310] sm:$0xff]  ;;  %v5109_v13 = vpack.c.bf16 %v2469_v61, %v2468_v60 }
 0x54a   : > { %5050 = vmatpush3.bf16.msra.mxu1 %v5049_v6  ;;  %v5099_v11 = vpack.c.bf16 %v2465_v8, %v2464_v5  ;;  %v5069_v6 = vpack.c.bf16 %v2417_v10, %v2416_v9  ;;  %v2487_v5 = vld [vmem:[#allocation10 + $0x2a8] sm:$0xff]  ;;  %v2493_v60 = vld [vmem:[#allocation10 + $0x2d8] sm:$0xff]  ;;  %v2524_v61 = vld [vmem:[#allocation10 + $0x3d0] sm:$0xff] }
 0x54b   : > { %5052 = vmatprep.subr.bf16.mxu1 %v5051_v17  ;;  %v2483_v17 = vld [vmem:[#allocation10 + $0x288] sm:$0xff] }
 0x54c   : > { %5082 = vmatpush3.bf16.msra.mxu0 %v5081_v16  ;;  %v2482_v16 = vld [vmem:[#allocation10 + $0x280] sm:$0xff]  ;;  %v2519_v8 = vld [vmem:[#allocation10 + $0x3a8] sm:$0xff] }
 0x54d   : > { %5084 = vmatprep.subr.bf16.mxu0 %v5083_v21  ;;  %v5103_v19 = vpack.c.bf16 %v2483_v17, %v2482_v16  ;;  %v5135_v21 = vpack.c.bf16 %v2515_v20, %v2514_v18  ;;  %v2470_v17 = vld [vmem:[#allocation10 + $0x220] sm:$0xff]  ;;  %v2471_v18 = vld [vmem:[#allocation10 + $0x228] sm:$0xff] }
 0x54e   : > { %5054 = vmatpush3.bf16.msra.mxu1 %v5053_v29 }
 0x54f   : > { %5056 = vmatprep.subr.bf16.mxu1 %v5055_v32 }
 0x550   : > { %5086 = vmatpush3.bf16.msra.mxu0 %v5085_v31 }
 0x551   : > { %5088 = vmatprep.subr.bf16.mxu0 %v5087_v39 }
 0x552   : > { %5058 = vmatpush3.bf16.msra.mxu1 %v5057_v46  ;;  %v2499_v46 = vld [vmem:[#allocation10 + $0x308] sm:$0xff] }
 0x553   : > { %5060 = vmatprep.subr.bf16.mxu1 %v5059_v48 }
 0x554   : > { %5090 = vmatpush3.bf16.msra.mxu0 %v5089_v47  ;;  %v2484_v47 = vld [vmem:[#allocation10 + $0x290] sm:$0xff] }
 0x555   : > { %5092 = vmatprep.subr.bf16.mxu0 %v5091_v52  ;;  %v2517_v52 = vld [vmem:[#allocation10 + $0x398] sm:$0xff] }
 0x556   : > { %5062 = vmatpush3.bf16.msra.mxu1 %v5061_v58  ;;  %v5139_v62 = vpack.c.bf16 %v2517_v52, %v2516_v51  ;;  %v2523_v51 = vld [vmem:[#allocation10 + $0x3c8] sm:$0xff] }
 0x557   : > { %5064 = vmatprep.subr.bf16.mxu1 %v5063_v59  ;;  %v5137_v59 = vpack.c.bf16 %v2499_v46, %v2498_v45  ;;  %v2504_v46 = vld [vmem:[#allocation10 + $0x330] sm:$0xff] }
 0x558   : > { %5094 = vmatpush3.bf16.msra.mxu0 %v5093_v25  ;;  %v5105_v25 = vpack.c.bf16 %v2467_v43, %v2466_v42  ;;  %v2473_v42 = vld [vmem:[#allocation10 + $0x238] sm:$0xff] }
 0x559   : > { %5096 = vmatprep.subr.bf16.mxu0 %v5095_v57  ;;  %v5107_v57 = vpack.c.bf16 %v2485_v50, %v2484_v47  ;;  %v2505_v47 = vld [vmem:[#allocation10 + $0x338] sm:$0xff]  ;;  %v2522_v50 = vld [vmem:[#allocation10 + $0x3c0] sm:$0xff] }
 0x55a   : > { %5066 = vmatpush3.bf16.msra.mxu1 %v5065_v1  ;;  %v2501_v1 = vld [vmem:[#allocation10 + $0x318] sm:$0xff] }
 0x55b   : > { %5068 = vmatprep.subr.bf16.mxu1 %v5067_v7  ;;  %v2518_v7 = vld [vmem:[#allocation10 + $0x3a0] sm:$0xff]  ;;  %v5141_v16 = vpack.c.bf16 %v2501_v1, %v2500_v63  ;;  %v2476_v1 = vld [vmem:[#allocation10 + $0x250] sm:$0xff] }
 0x55c   : > { %5098 = vmatpush3.bf16.msra.mxu0 %v5097_v2  ;;  %v2486_v2 = vld [vmem:[#allocation10 + $0x2a0] sm:$0xff]  ;;  %v5143_v20 = vpack.c.bf16 %v2519_v8, %v2518_v7  ;;  %v2509_v7 = vld [vmem:[#allocation10 + $0x358] sm:$0xff] }
 0x55d   : > { %5100 = vmatprep.subr.bf16.mxu0 %v5099_v11  ;;  %v2494_v8 = vld [vmem:[#allocation10 + $0x2e0] sm:$0xff] }
 0x55e   : > { %5070 = vmatpush3.bf16.msra.mxu1 %v5069_v6 }
 0x55f   : > { %5104 = vmatprep.subr.bf16.mxu1 %v5103_v19  ;;  %v5111_v19 = vpack.c.bf16 %v2487_v5, %v2486_v2  ;;  %v2477_v2 = vld [vmem:[#allocation10 + $0x258] sm:$0xff]  ;;  %v2508_v5 = vld [vmem:[#allocation10 + $0x350] sm:$0xff] }
 0x560   : > { %5102 = vmatpush3.bf16.msra.mxu0 %v5101_v15 }
 0x561   : > { %5136 = vmatprep.subr.bf16.mxu0 %v5135_v21  ;;  %v2502_v21 = vld [vmem:[#allocation10 + $0x320] sm:$0xff] }
 0x5b3   : > { %v1706_v22 = vpop.f32.mrb[4].mxu1  ;;  %v1783_v23 = vpop.f32.mrb[8].mxu0 }
 0x5b4   : > { %v1708_v24 = vpop.f32.mrb[5].mxu1  ;;  %v1785_v26 = vpop.f32.mrb[9].mxu0 }
 0x5b7   : > { %v1712_v27 = vpop.f32.mrb[6].mxu1  ;;  %v1789_v28 = vpop.f32.mrb[10].mxu0 }
 0x5b8   : > { %v1714_v29 = vpop.f32.mrb[7].mxu1  ;;  %v1791_v30 = vpop.f32.mrb[11].mxu0 }
 0x5d3   : > { %v7114_v31 = vpop.f32.mrb[8].mxu1  ;;  %v7116_v32 = vpop.f32.mrb[12].mxu0 }
 0x5d4   : > { %v7118_v33 = vpop.f32.mrb[9].mxu1  ;;  %v7120_v34 = vpop.f32.mrb[13].mxu0 }
 0x5d7   : > { %v7122_v37 = vpop.f32.mrb[10].mxu1  ;;  %v7124_v39 = vpop.f32.mrb[14].mxu0 }
 0x5d8   : > { %v7126_v40 = vpop.f32.mrb[11].mxu1  ;;  %v7128_v41 = vpop.f32.mrb[15].mxu0 }
 0x5f3   : > { %v2144_v48 = vpop.f32.mrb[12].mxu1  ;;  %v2221_v49 = vpop.f32.mrb[16].mxu0 }
 0x5f4   : > { %v2386_v53 = vmul.f32 %v2144_v48, %v1706_v22  ;;  %v2388_v12 = vmul.f32 %v2221_v49, %v1783_v23  ;;  %v2146_v54 = vpop.f32.mrb[13].mxu1  ;;  %v2223_v55 = vpop.f32.mrb[17].mxu0  ;;  %v2503_v22 = vld [vmem:[#allocation10 + $0x328] sm:$0xff]  ;;  %v2488_v23 = vld [vmem:[#allocation10 + $0x2b0] sm:$0xff]  ;;  %v2490_v48 = vld [vmem:[#allocation10 + $0x2c0] sm:$0xff] }
 0x5f5   : > { %v2387_v56 = vmul.f32 %v2146_v54, %v1708_v24  ;;  %v2389_v58 = vmul.f32 %v2223_v55, %v1785_v26  ;;  %v2489_v24 = vld [vmem:[#allocation10 + $0x2b8] sm:$0xff]  ;;  %v2520_v26 = vld [vmem:[#allocation10 + $0x3b0] sm:$0xff]  ;;  %v2491_v49 = vld [vmem:[#allocation10 + $0x2c8] sm:$0xff] }
 0x5f6   : > { %v5115_v43 = vpack.c.bf16 %v2489_v24, %v2488_v23  ;;  %v2475_v54 = vld [vmem:[#allocation10 + $0x248] sm:$0xff]  ;;  %v5119_v55 = vpack.c.bf16 %v2491_v49, %v2490_v48  ;;  %v2529_v23 = vld [vmem:[#allocation10 + $0x3f8] sm:$0xff] }
 0x5f7   : > { %v2150_v3 = vpop.f32.mrb[14].mxu1  ;;  %v2227_v4 = vpop.f32.mrb[18].mxu0  ;;  %2594 = vmatprep.mubr.f32.mxu1 %v2387_v56  ;;  %2669 = vmatprep.mubr.f32.mxu0 %v2389_v58  ;;  %v5151_v56 = vpack.c.bf16 %v2523_v51, %v2522_v50  ;;  %v2506_v58 = vld [vmem:[#allocation10 + $0x340] sm:$0xff] }
 0x5f8   : > { %v2394_v9 = vmul.f32 %v2150_v3, %v1712_v27  ;;  %v2396_v10 = vmul.f32 %v2227_v4, %v1789_v28  ;;  %v2152_v11 = vpop.f32.mrb[15].mxu1  ;;  %v2229_v6 = vpop.f32.mrb[19].mxu0  ;;  %2595 = vmatmul.mubr.f32.vlgmr.msra.gmra.mrb[20].mxu1 %v2386_v53  ;;  %2670 = vmatmul.mubr.f32.vlgmr.msra.gmra.mrb[24].mxu0 %v2388_v12  ;;  %v2521_v27 = vld [vmem:[#allocation10 + $0x3b8] sm:$0xff]  ;;  %v5113_v28 = vpack.c.bf16 %v2471_v18, %v2470_v17  ;;  %v2474_v12 = vld [vmem:[#allocation10 + $0x240] sm:$0xff] }
 0x5f9   : > { %v2395_v14 = vmul.f32 %v2152_v11, %v1714_v29  ;;  %v2397_v15 = vmul.f32 %v2229_v6, %v1791_v30  ;;  %5106 = vmatpush3.bf16.msra.mxu1 %v5105_v25  ;;  %5138 = vmatpush3.bf16.msra.mxu0 %v5137_v59  ;;  %v5145_v29 = vpack.c.bf16 %v2503_v22, %v2502_v21  ;;  %v2472_v30 = vld [vmem:[#allocation10 + $0x230] sm:$0xff]  ;;  %v2507_v25 = vld [vmem:[#allocation10 + $0x348] sm:$0xff]  ;;  %v2510_v18 = vld [vmem:[#allocation10 + $0x360] sm:$0xff] }
 0x5fa   : > { %5108 = vmatprep.subr.bf16.mxu1 %v5107_v57  ;;  %5140 = vmatprep.subr.bf16.mxu0 %v5139_v62  ;;  %v5147_v45 = vpack.c.bf16 %v2521_v27, %v2520_v26  ;;  %v5117_v52 = vpack.c.bf16 %v2473_v42, %v2472_v30  ;;  %v5149_v53 = vpack.c.bf16 %v2505_v47, %v2504_v46  ;;  %v2492_v59 = vld [vmem:[#allocation10 + $0x2d0] sm:$0xff]  ;;  %v2525_v57 = vld [vmem:[#allocation10 + $0x3d8] sm:$0xff]  ;;  %v2527_v11 = vld [vmem:[#allocation10 + $0x3e8] sm:$0xff] }
 0x5fb   : > { %2599 = vmatprep.mubr.f32.mxu1 %v2395_v14  ;;  %2674 = vmatprep.mubr.f32.mxu0 %v2397_v15  ;;  %v5121_v62 = vpack.c.bf16 %v2475_v54, %v2474_v12  ;;  %v5153_v63 = vpack.c.bf16 %v2507_v25, %v2506_v58  ;;  %v5123_v3 = vpack.c.bf16 %v2493_v60, %v2492_v59  ;;  %v2478_v14 = vld [vmem:[#allocation10 + $0x260] sm:$0xff]  ;;  %v2479_v15 = vld [vmem:[#allocation10 + $0x268] sm:$0xff]  ;;  %v2497_v21 = vld [vmem:[#allocation10 + $0x2f8] sm:$0xff] }
 0x5fc   : > { %2600 = vmatmul.mubr.f32.gmra.mrb[22].mxu1 %v2394_v9  ;;  %2675 = vmatmul.mubr.f32.gmra.mrb[26].mxu0 %v2396_v10  ;;  %v5155_v4 = vpack.c.bf16 %v2525_v57, %v2524_v61  ;;  %v2495_v9 = vld [vmem:[#allocation10 + $0x2e8] sm:$0xff]  ;;  %v2526_v10 = vld [vmem:[#allocation10 + $0x3e0] sm:$0xff]  ;;  %v5125_v6 = vpack.c.bf16 %v2477_v2, %v2476_v1  ;;  %v2528_v22 = vld [vmem:[#allocation10 + $0x3f0] sm:$0xff]  ;;  %v5129_v24 = vpack.c.bf16 %v2479_v15, %v2478_v14 }
 0x5fd   : > { %5110 = vmatpush3.bf16.msra.mxu1 %v5109_v13  ;;  %5142 = vmatpush3.bf16.msra.mxu0 %v5141_v16  ;;  %v5157_v13 = vpack.c.bf16 %v2509_v7, %v2508_v5  ;;  %v5127_v16 = vpack.c.bf16 %v2495_v9, %v2494_v8  ;;  %v5159_v17 = vpack.c.bf16 %v2527_v11, %v2526_v10  ;;  %v2480_v27 = vld [vmem:[#allocation10 + $0x270] sm:$0xff]  ;;  %v2481_v30 = vld [vmem:[#allocation10 + $0x278] sm:$0xff]  ;;  %v5574_v25 = vld [vmem:[%s7720_s17 + $0x20] sm:$0xff]  }
 0x5fe   : > { %5112 = vmatprep.subr.bf16.mxu1 %v5111_v19  ;;  %5144 = vmatprep.subr.bf16.mxu0 %v5143_v20  ;;  %v2511_v19 = vld [vmem:[#allocation10 + $0x368] sm:$0xff]  ;;  %v2496_v20 = vld [vmem:[#allocation10 + $0x2f0] sm:$0xff]  ;;  %v5577_v61 = vld [vmem:[%s7720_s17 + $0x38] sm:$0xff]  }
 0x5ff   : > { %v5161_v26 = vpack.c.bf16 %v2511_v19, %v2510_v18  ;;  %v2512_v42 = vld [vmem:[#allocation10 + $0x370] sm:$0xff]  ;;  %v5575_v59 = vld [vmem:[%s7720_s17 + $0x28] sm:$0xff]   ;;  %v5581_v1 = vld [vmem:[#allocation25 + $0x18] sm:$0xff]  }
 0x600   : > { %v5576_v60 = vld [vmem:[%s7720_s17 + $0x30] sm:$0xff]   ;;  %v5578_v57 = vld [vmem:[#allocation25] sm:$0xff]  }
 0x601   : > { %5114 = vmatpush3.bf16.msra.mxu1 %v5113_v28  ;;  %5146 = vmatpush3.bf16.msra.mxu0 %v5145_v29  ;;  %v5131_v28 = vpack.c.bf16 %v2497_v21, %v2496_v20  ;;  %v5163_v29 = vpack.c.bf16 %v2529_v23, %v2528_v22 }
 0x602   : > { %5116 = vmatprep.subr.bf16.mxu1 %v5115_v43  ;;  %5148 = vmatprep.subr.bf16.mxu0 %v5147_v45  ;;  %v2513_v43 = vld [vmem:[#allocation10 + $0x378] sm:$0xff]  ;;  %v5133_v45 = vpack.c.bf16 %v2481_v30, %v2480_v27 }
 0x603   : > { %v5165_v46 = vpack.c.bf16 %v2513_v43, %v2512_v42 }
 0x605   : > { %5118 = vmatpush3.bf16.msra.mxu1 %v5117_v52  ;;  %5150 = vmatpush3.bf16.msra.mxu0 %v5149_v53 }
 0x606   : > { %5120 = vmatprep.subr.bf16.mxu1 %v5119_v55  ;;  %5152 = vmatprep.subr.bf16.mxu0 %v5151_v56 }
 0x609   : > { %5122 = vmatpush3.bf16.msra.mxu1 %v5121_v62  ;;  %5154 = vmatpush3.bf16.msra.mxu0 %v5153_v63  ;;  %v5579_v62 = vld [vmem:[#allocation25 + $0x8] sm:$0xff]   ;;  %v5580_v63 = vld [vmem:[#allocation25 + $0x10] sm:$0xff]  }
 0x60a   : > { %5124 = vmatprep.subr.bf16.mxu1 %v5123_v3  ;;  %5156 = vmatprep.subr.bf16.mxu0 %v5155_v4 }
 0x60d   : > { %5126 = vmatpush3.bf16.msra.mxu1 %v5125_v6  ;;  %5158 = vmatpush3.bf16.msra.mxu0 %v5157_v13 }
 0x60e   : > { %5128 = vmatprep.subr.bf16.mxu1 %v5127_v16  ;;  %5160 = vmatprep.subr.bf16.mxu0 %v5159_v17 }
 0x611   : > { %5130 = vmatpush3.bf16.msra.mxu1 %v5129_v24  ;;  %5162 = vmatpush3.bf16.msra.mxu0 %v5161_v26 }
 0x612   : > { %5132 = vmatprep.subr.bf16.mxu1 %v5131_v28  ;;  %5164 = vmatprep.subr.bf16.mxu0 %v5163_v29 }
 0x613   : > { %v2298_v47 = vpop.f32.mrb[16].mxu1  ;;  %v2375_v48 = vpop.f32.mrb[20].mxu0 }
 0x614   : > { %v2390_v49 = vmul.f32 %v2298_v47, %v7114_v31  ;;  %v2392_v50 = vmul.f32 %v2375_v48, %v7116_v32  ;;  %v2300_v51 = vpop.f32.mrb[17].mxu1  ;;  %v2377_v52 = vpop.f32.mrb[21].mxu0  ;;  %v7184_v48 = vld [vmem:[%s7063_s11 + $0x8] sm:$0xff] }
 0x615   : > { %v2391_v53 = vmul.f32 %v2300_v51, %v7118_v33  ;;  %v2393_v12 = vmul.f32 %v2377_v52, %v7120_v34  ;;  %5134 = vmatpush3.bf16.msra.mxu1 %v5133_v45  ;;  %5166 = vmatpush3.bf16.msra.mxu0 %v5165_v46  ;;  %v7180_v46 = vld [vmem:[%s7063_s11] sm:$0xff]  ;;  %v5583_v52 = vld [vmem:[#allocation25 + $0x28] sm:$0xff]  }
 0x616   : > { %4603 = vmatprep.subr.bf16.mxu1 %v6361_v0  ;;  %4623 = vmatprep.subr.bf16.mxu0 %v6361_v0  ;;  %v5582_v51 = vld [vmem:[#allocation25 + $0x20] sm:$0xff]  }
 0x617   : > { %v2304_v54 = vpop.f32.mrb[18].mxu1  ;;  %v2381_v55 = vpop.f32.mrb[22].mxu0  ;;  %2744 = vmatprep.mubr.f32.mxu1 %v2391_v53  ;;  %2819 = vmatprep.mubr.f32.mxu0 %v2393_v12  ;;  %v5584_v53 = vld [vmem:[#allocation25 + $0x30] sm:$0xff]   ;;  %v3218_v12 = vld [vmem:[%s7721_s15] sm:$0xff] }
 0x618   : > { %v2398_v31 = vmul.f32 %v2304_v54, %v7122_v37  ;;  %v2400_v32 = vmul.f32 %v2381_v55, %v7124_v39  ;;  %v2306_v56 = vpop.f32.mrb[19].mxu1  ;;  %v2383_v58 = vpop.f32.mrb[23].mxu0  ;;  %2745 = vmatmul.mubr.f32.vlgmr.msra.gmra.mrb[24].mxu1 %v2390_v49  ;;  %2820 = vmatmul.mubr.f32.vlgmr.msra.gmra.mrb[28].mxu0 %v2392_v50  ;;  %v5570_v37 = vld [vmem:[%s7720_s17] sm:$0xff]   ;;  %v5571_v39 = vld [vmem:[%s7720_s17 + $0x8] sm:$0xff]  }
 0x619   : > { %v2399_v33 = vmul.f32 %v2306_v56, %v7126_v40  ;;  %v2401_v34 = vmul.f32 %v2383_v58, %v7128_v41  ;;  %4604 = vmatpush3.bf16.msra.mxu1 %v5570_v37  ;;  %v5572_v40 = vld [vmem:[%s7720_s17 + $0x10] sm:$0xff]   ;;  %v5573_v41 = vld [vmem:[%s7720_s17 + $0x18] sm:$0xff]   ;;  %4624 = vmatpush3.bf16.msra.mxu0 %v5578_v57  ;;  %v3219_v54 = vld [vmem:[%s7721_s15 + $0x8] sm:$0xff] }
 0x61a   : > { %4605 = vmatprep.subr.bf16.mxu1 %v6361_v0  ;;  %4625 = vmatprep.subr.bf16.mxu0 %v6361_v0  ;;  %v5585_v55 = vld [vmem:[#allocation25 + $0x38] sm:$0xff]  }
 0x61b   : > { %2749 = vmatprep.mubr.f32.mxu1 %v2399_v33  ;;  %2824 = vmatprep.mubr.f32.mxu0 %v2401_v34  ;;  %v5591_v56 = vld [vmem:[#allocation26 + $0x14] ss:$8 sps:$4 sm:$0xff]   ;;  %v5589_v58 = vld [vmem:[#allocation26 + $0x10] ss:$8 sps:$4 sm:$0xff]   ;;  %v5594_v33 = vld [vmem:[#allocation26 + $0x24] ss:$8 sps:$4 sm:$0xff]  }
 0x61c   : > { %2750 = vmatmul.mubr.f32.gmra.mrb[26].mxu1 %v2398_v31  ;;  %2825 = vmatmul.mubr.f32.gmra.mrb[30].mxu0 %v2400_v32  ;;  %v5586_v31 = vld [vmem:[#allocation26] ss:$8 sps:$4 sm:$0xff]   ;;  %v5588_v32 = vld [vmem:[#allocation26 + $0x4] ss:$8 sps:$4 sm:$0xff]   ;;  %v5597_v37 = vld [vmem:[#allocation26 + $0x34] ss:$8 sps:$4 sm:$0xff]  }
 0x61d   : > { %4619 = vmatprep.mubr.msk.bf16.mxu1 %vm6362_vm0, %v6361_v0  ;;  %4639 = vmatprep.mubr.msk.bf16.mxu0 %vm6362_vm0, %v6361_v0  ;;  %v5592_v34 = vld [vmem:[#allocation26 + $0x20] ss:$8 sps:$4 sm:$0xff]  }
 0x61e   : > { %4606 = vmatpush3.bf16.msra.mxu1 %v5571_v39  ;;  %4626 = vmatpush3.bf16.msra.mxu0 %v5579_v62  ;;  %v5595_v39 = vld [vmem:[#allocation26 + $0x30] ss:$8 sps:$4 sm:$0xff]  }
 0x61f   : > { %4607 = vmatprep.subr.bf16.mxu1 %v6361_v0  ;;  %4627 = vmatprep.subr.bf16.mxu0 %v6361_v0 }
 0x622   : > { %4608 = vmatpush3.bf16.msra.mxu1 %v5572_v40  ;;  %4628 = vmatpush3.bf16.msra.mxu0 %v5580_v63  ;;  %v5600_v40 = vld [vmem:[#allocation26 + $0x44] ss:$8 sps:$4 sm:$0xff]  }
 0x623   : > { %4609 = vmatprep.subr.bf16.mxu1 %v6361_v0  ;;  %4629 = vmatprep.subr.bf16.mxu0 %v6361_v0 }
 0x626   : > { %4610 = vmatpush3.bf16.msra.mxu1 %v5573_v41  ;;  %4630 = vmatpush3.bf16.msra.mxu0 %v5581_v1  ;;  %v5603_v41 = vld [vmem:[#allocation26 + $0x54] ss:$8 sps:$4 sm:$0xff]  }
 0x627   : > { %4611 = vmatprep.subr.bf16.mxu1 %v6361_v0  ;;  %4631 = vmatprep.subr.bf16.mxu0 %v6361_v0 }
 0x62a   : > { %4612 = vmatpush3.bf16.msra.mxu1 %v5574_v25  ;;  %4632 = vmatpush3.bf16.msra.mxu0 %v5582_v51  ;;  %v5601_v25 = vld [vmem:[#allocation26 + $0x50] ss:$8 sps:$4 sm:$0xff]  }
 0x62b   : > { %4613 = vmatprep.subr.bf16.mxu1 %v6361_v0  ;;  %4633 = vmatprep.subr.bf16.mxu0 %v6361_v0  ;;  %v3427_v51 = vld [vmem:[#allocation13 + $0x20] sm:$0xff] }
 0x62e   : > { %4614 = vmatpush3.bf16.msra.mxu1 %v5575_v59  ;;  %4634 = vmatpush3.bf16.msra.mxu0 %v5583_v52  ;;  %v4244_v59 = vld [vmem:[%s7722_s13] ss:$0 sm:$0xff]  ;;  %v3428_v52 = vld [vmem:[#allocation13 + $0x28] sm:$0xff]  ;;  %s3749_s13 = sshll.u32 %s7071_s18, 4  ;;  %s7354_s13 = int_to_ptr.vmem [resolvable:$true] %s3749_s13 }
 0x62f   : > { %4615 = vmatprep.subr.bf16.mxu1 %v6361_v0  ;;  %4635 = vmatprep.subr.bf16.mxu0 %v6361_v0 }
 0x632   : > { %4616 = vmatpush3.bf16.msra.mxu1 %v5576_v60  ;;  %4636 = vmatpush3.bf16.msra.mxu0 %v5584_v53  ;;  %v7250_v53 = vld [vmem:[%s7071_s18 + $0x8] sm:$0xff] }
 0x633   : > { %4617 = vmatprep.subr.bf16.mxu1 %v6361_v0  ;;  %4637 = vmatprep.subr.bf16.mxu0 %v6361_v0  ;;  %v5598_v0 = vld [vmem:[#allocation26 + $0x40] ss:$8 sps:$4 sm:$0xff]  }
 0x636   : > { %4618 = vmatpush3.bf16.msra.mxu1 %v5577_v61  ;;  %4638 = vmatpush3.bf16.msra.mxu0 %v5585_v55  ;;  %v3430_v55 = vld [vmem:[#allocation13 + $0x38] sm:$0xff] }
 0x637   : > { %3171 = vmatprep.subr.bf16.mxu1 %v5588_v32  ;;  %v3432_v32 = vld [vmem:[#allocation13 + $0x48] sm:$0xff] }
 0x6cb   : > { %v4353_v2 = vpop.f32.mrb[20].mxu1  ;;  %v4391_v3 = vpop.f32.mrb[24].mxu0 }
 0x6cc   : > { %v4354_v4 = vpop.f32.mrb[21].mxu1  ;;  %v4392_v5 = vpop.f32.mrb[25].mxu0 }
 0x6cd   : > { %v4355_v7 = vadd.f32 %v4354_v4, %v4353_v2  ;;  %v4393_v8 = vadd.f32 %v4392_v5, %v4391_v3  ;;  %v3220_v2 = vld [vmem:[%s7721_s15 + $0x10] sm:$0xff]  ;;  %v3221_v3 = vld [vmem:[%s7721_s15 + $0x18] sm:$0xff] }
 0x6cf   : > { %v2672_v9 = vadd.f32 %v4393_v8, %v4355_v7  ;;  %v4356_v10 = vpop.f32.mrb[22].mxu1  ;;  %v4394_v11 = vpop.f32.mrb[26].mxu0  ;;  %v5171_v8 = vpack.c.bf16 %v3221_v3, %v3220_v2  ;;  %v4253_v2 = vld [vmem:[%s7723_s0] ss:$0 sm:$0xff]  ;;  %s7726_s0 = sld [smem:[#allocation77_spill]] }
 0x6d0   : > { %v4357_v6 = vpop.f32.mrb[23].mxu1  ;;  %v4395_v13 = vpop.f32.mrb[27].mxu0 }
 0x6d1   : > { %v4358_v14 = vadd.f32 %v4357_v6, %v4356_v10  ;;  %v4396_v15 = vadd.f32 %v4395_v13, %v4394_v11  ;;  %v3223_v10 = vld [vmem:[%s7721_s15 + $0x28] sm:$0xff]  ;;  %v3224_v13 = vld [vmem:[%s7721_s15 + $0x30] sm:$0xff] }
 0x6d2   : > { %v7213_v11 = vld [vmem:[%s7071_s18] sm:$0xff] }
 0x6d3   : > { %v2677_v16 = vadd.f32 %v4396_v15, %v4358_v14  ;;  %v3225_v14 = vld [vmem:[%s7721_s15 + $0x38] sm:$0xff] }
 0x6d4   : > { %v5179_v15 = vpack.c.bf16 %v3225_v14, %v3224_v13 }
 0x6eb   : > { %v4429_v17 = vpop.f32.mrb[24].mxu1  ;;  %v4467_v18 = vpop.f32.mrb[28].mxu0 }
 0x6ec   : > { %v4430_v19 = vpop.f32.mrb[25].mxu1  ;;  %v4468_v20 = vpop.f32.mrb[29].mxu0 }
 0x6ed   : > { %v4431_v21 = vadd.f32 %v4430_v19, %v4429_v17  ;;  %v4469_v22 = vadd.f32 %v4468_v20, %v4467_v18  ;;  %v3227_v17 = vld [vmem:[%s7721_s15 + $0x48] sm:$0xff]  ;;  %v3228_v19 = vld [vmem:[%s7721_s15 + $0x50] sm:$0xff]  ;;  %v3229_v20 = vld [vmem:[%s7721_s15 + $0x58] sm:$0xff] }
 0x6ef   : > { %v2747_v23 = vadd.f32 %v4431_v21, %v2672_v9  ;;  %v4432_v24 = vpop.f32.mrb[26].mxu1  ;;  %v4470_v26 = vpop.f32.mrb[30].mxu0  ;;  %v3222_v9 = vld [vmem:[%s7721_s15 + $0x20] sm:$0xff]  ;;  %v5187_v21 = vpack.c.bf16 %v3229_v20, %v3228_v19  ;;  %v3315_v19 = vld [vmem:[#allocation11 + $0x30] sm:$0xff]  ;;  %v3316_v20 = vld [vmem:[#allocation11 + $0x38] sm:$0xff] }
 0x6f0   : > { %v4433_v27 = vpop.f32.mrb[27].mxu1  ;;  %v4471_v28 = vpop.f32.mrb[31].mxu0  ;;  %v5175_v6 = vpack.c.bf16 %v3223_v10, %v3222_v9  ;;  %v3311_v9 = vld [vmem:[#allocation11 + $0x10] sm:$0xff]  ;;  %v3312_v10 = vld [vmem:[#allocation11 + $0x18] sm:$0xff] }
 0x6f1   : > { %v2822_v29 = vadd.f32 %v4469_v22, %v2747_v23  ;;  %v4434_v30 = vadd.f32 %v4433_v27, %v4432_v24  ;;  %v4472_v42 = vadd.f32 %v4471_v28, %v4470_v26  ;;  %v3230_v22 = vld [vmem:[%s7721_s15 + $0x60] sm:$0xff]  ;;  %v3231_v23 = vld [vmem:[%s7721_s15 + $0x68] sm:$0xff]  ;;  %v3232_v26 = vld [vmem:[%s7721_s15 + $0x70] sm:$0xff] }
 0x6f2   : > { %v5191_v24 = vpack.c.bf16 %v3231_v23, %v3230_v22  ;;  %v3233_v27 = vld [vmem:[%s7721_s15 + $0x78] sm:$0xff]  ;;  %v3317_v22 = vld [vmem:[#allocation11 + $0x40] sm:$0xff]  ;;  %v3318_v23 = vld [vmem:[#allocation11 + $0x48] sm:$0xff] }
 0x6f3   : > { %v2752_v43 = vadd.f32 %v4434_v30, %v2677_v16  ;;  %v2830_v47 = vadd.f32 %v7180_v46, %v2822_v29  ;;  %v3226_v16 = vld [vmem:[%s7721_s15 + $0x40] sm:$0xff]  ;;  %v5195_v28 = vpack.c.bf16 %v3233_v27, %v3232_v26  ;;  %v3424_v30 = vld [vmem:[#allocation13 + $0x8] sm:$0xff]  ;;  %v3319_v26 = vld [vmem:[#allocation11 + $0x50] sm:$0xff] }
 0x6f4   : > { %v5183_v18 = vpack.c.bf16 %v3227_v17, %v3226_v16  ;;  %v3423_v29 = vld [vmem:[#allocation13] sm:$0xff]  ;;  %v3314_v17 = vld [vmem:[#allocation11 + $0x28] sm:$0xff]  ;;  %v3320_v27 = vld [vmem:[#allocation11 + $0x58] sm:$0xff] }
 0x6f5   : > { %v2827_v45 = vadd.f32 %v4472_v42, %v2752_v43  ;;  %v5231_v42 = vpack.c.bf16 %v3424_v30, %v3423_v29  ;;  %v3425_v43 = vld [vmem:[#allocation13 + $0x10] sm:$0xff]  ;;  %v3313_v16 = vld [vmem:[#allocation11 + $0x20] sm:$0xff]  ;;  %v3322_v30 = vld [vmem:[#allocation11 + $0x68] sm:$0xff] }
 0x6f6   : > { %v3321_v29 = vld [vmem:[#allocation11 + $0x60] sm:$0xff] }
 0x6f7   : > { %v2831_v49 = vadd.f32 %v7184_v48, %v2827_v45  ;;  %v3426_v45 = vld [vmem:[#allocation13 + $0x18] sm:$0xff] }
 0x6f9   : > { %v2832_v50 = vpack.c.bf16 %v2831_v49, %v2830_v47  ;;  %v4278_v47 = vld [vmem:[#allocation14] ss:$0 sm:$0xff]  ;;  %v5235_v49 = vpack.c.bf16 %v3426_v45, %v3425_v43  ;;  %v3323_v43 = vld [vmem:[#allocation11 + $0x70] sm:$0xff]  ;;  %v3324_v45 = vld [vmem:[#allocation11 + $0x78] sm:$0xff] }
 0x6fb   : > { %4620 = vmatmul.mubr.bf16.vlgmr.msra.gmra.mrb[28].mxu1 %v2832_v50  ;;  %v7247_v50 = vsub.f32 %v4278_v47, %v7180_v46 }
 0x6fc   : > { %3203 = vmatprep.mubr.bf16.mxu1 %v6363_v44  ;;  %v5167_v44 = vpack.c.bf16 %v3219_v54, %v3218_v12  ;;  %3172 = vmatpush1.bf16.msra.mxu1 %v5586_v31  ;;  %v5239_v12 = vpack.c.bf16 %v3428_v52, %v3427_v51  ;;  %v3429_v54 = vld [vmem:[#allocation13 + $0x30] sm:$0xff]  ;;  %v3431_v31 = vld [vmem:[#allocation13 + $0x40] sm:$0xff]  ;;  %v3528_v52 = vld [vmem:[%s7724_s19 + $0x8] sm:$0xff] }
 0x6fd   : > { %3173 = vmatprep.subr.bf16.mxu1 %v5591_v56  ;;  %v5247_v46 = vpack.c.bf16 %v3432_v32, %v3431_v31  ;;  %v3433_v56 = vld [vmem:[#allocation13 + $0x50] sm:$0xff]  ;;  %v3527_v51 = vld [vmem:[%s7724_s19] sm:$0xff] }
 0x6fe   : > { %5168 = vmatprep.subr.bf16.mxu0 %v5167_v44  ;;  %v3531_v32 = vld [vmem:[%s7724_s19 + $0x20] sm:$0xff] }
 0x700   : > { %3174 = vmatpush1.bf16.msra.mxu1 %v5589_v58  ;;  %v3434_v58 = vld [vmem:[#allocation13 + $0x58] sm:$0xff] }
 0x701   : > { %3175 = vmatprep.subr.bf16.mxu1 %v5594_v33  ;;  %v5251_v33 = vpack.c.bf16 %v3434_v58, %v3433_v56  ;;  %v3533_v58 = vld [vmem:[%s7724_s19 + $0x30] sm:$0xff] }
 0x704   : > { %3176 = vmatpush1.bf16.msra.mxu1 %v5592_v34  ;;  %v3435_v34 = vld [vmem:[#allocation13 + $0x60] sm:$0xff] }
 0x705   : > { %3177 = vmatprep.subr.bf16.mxu1 %v5597_v37  ;;  %v3436_v37 = vld [vmem:[#allocation13 + $0x68] sm:$0xff] }
 0x708   : > { %3178 = vmatpush1.bf16.msra.mxu1 %v5595_v39  ;;  %v5255_v39 = vpack.c.bf16 %v3436_v37, %v3435_v34  ;;  %v3535_v37 = vld [vmem:[%s7724_s19 + $0x40] sm:$0xff] }
 0x709   : > { %3179 = vmatprep.subr.bf16.mxu1 %v5600_v40  ;;  %v3437_v40 = vld [vmem:[#allocation13 + $0x70] sm:$0xff] }
 0x70c   : > { %3180 = vmatpush1.bf16.msra.mxu1 %v5598_v0  ;;  %v3438_v0 = vld [vmem:[#allocation13 + $0x78] sm:$0xff] }
 0x70d   : > { %3181 = vmatprep.subr.bf16.mxu1 %v5603_v41  ;;  %v5259_v41 = vpack.c.bf16 %v3438_v0, %v3437_v40  ;;  %v3537_v40 = vld [vmem:[%s7724_s19 + $0x50] sm:$0xff]  ;;  %v3538_v0 = vld [vmem:[%s7724_s19 + $0x58] sm:$0xff] }
 0x710   : > { %3182 = vmatpush1.bf16.msra.mxu1 %v5601_v25  ;;  %v7255_v25 = vsub.f32 %v4278_v47, %v7184_v48  ;;  %v5227_v47 = vpack.c.bf16 %v3324_v45, %v3323_v43 }
 0x7ce   : > { %v2938_v60 = vpop.f32.mrb[28].mxu1 }
 0x7cf   : > { %v2939_v61 = vadd.f32 %v4244_v59, %v2938_v60  ;;  %v4621_v57 = vpop.f32.mrb[29].mxu1  ;;  %v5604_v60 = vld [vmem:[#allocation26 + $0x60] ss:$8 sps:$4 sm:$0xff]  }
 0x7d0   : > { %v2941_v62 = vpop.f32.mrb[30].mxu1  ;;  %v5607_v57 = vld [vmem:[#allocation26 + $0x70] ss:$8 sps:$4 sm:$0xff]  }
 0x7d1   : > { %v2942_v63 = vadd.f32 %v4244_v59, %v2941_v62  ;;  %v4622_v1 = vpop.f32.mrb[31].mxu1  ;;  %5614 = vtanh.f32 %v2939_v61  ;;  %v5606_v59 = vld [vmem:[#allocation26 + $0x64] ss:$8 sps:$4 sm:$0xff]   ;;  %v5609_v61 = vld [vmem:[#allocation26 + $0x74] ss:$8 sps:$4 sm:$0xff]  }
 0x7d2   : > { %3183 = vmatprep.subr.bf16.mxu1 %v5606_v59  ;;  %v3309_v62 = vld [vmem:[#allocation11] sm:$0xff] }
 0x7d3   : > { %5616 = vtanh.f32 %v2942_v63  ;;  %3184 = vmatpush1.bf16.msra.mxu1 %v5604_v60  ;;  %v3310_v63 = vld [vmem:[#allocation11 + $0x8] sm:$0xff]  ;;  %v3539_v59 = vld [vmem:[%s7724_s19 + $0x60] sm:$0xff] }
 0x7d4   : > { %3185 = vmatprep.subr.bf16.mxu1 %v5609_v61  ;;  %v5199_v1 = vpack.c.bf16 %v3310_v63, %v3309_v62  ;;  %v3540_v60 = vld [vmem:[%s7724_s19 + $0x68] sm:$0xff]  ;;  %v3542_v62 = vld [vmem:[%s7724_s19 + $0x78] sm:$0xff] }
 0x7d5   : > { %v5287_v61 = vpack.c.bf16 %v3540_v60, %v3539_v59 }
 0x7d7   : > { %3186 = vmatpush1.bf16.msra.mxu1 %v5607_v57  ;;  %v3541_v57 = vld [vmem:[%s7724_s19 + $0x70] sm:$0xff] }
 0x7d8   : > { %5200 = vmatprep.subr.bf16.mxu1 %v5199_v1  ;;  %v5291_v63 = vpack.c.bf16 %v3542_v62, %v3541_v57 }
 0x7db   : > { %v5615_v4 = vpop.eup %5614 }
 0x7dd   : > { %v5617_v5 = vpop.eup %5616 }
 0x7de   : > { %v2947_v7 = vpack.c.bf16 %v5617_v5, %v5615_v4 }
 0x7e0   : > { %4640 = vmatmul.mubr.bf16.vlgmr.msra.gmra.mrb[32].mxu0 %v2947_v7 }
 0x7e1   : > { %5170 = vmatpush3.bf16.msra.mxu0 %v5167_v44  ;;  %4675 = vmatprep.mubr.f32.mxu0 %v7213_v11  ;;  %v5243_v44 = vpack.c.bf16 %v3430_v55, %v3429_v54  ;;  %v5263_v54 = vpack.c.bf16 %v3528_v52, %v3527_v51  ;;  %v3529_v55 = vld [vmem:[%s7724_s19 + $0x10] sm:$0xff] }
 0x7e2   : > { %5172 = vmatprep.subr.bf16.mxu0 %v5171_v8 }
 0x7e5   : > { %5174 = vmatpush3.bf16.msra.mxu0 %v5171_v8 }
 0x7e6   : > { %5176 = vmatprep.subr.bf16.mxu0 %v5175_v6 }
 0x7e9   : > { %5178 = vmatpush3.bf16.msra.mxu0 %v5175_v6 }
 0x7ea   : > { %5180 = vmatprep.subr.bf16.mxu0 %v5179_v15 }
 0x7ed   : > { %5182 = vmatpush3.bf16.msra.mxu0 %v5179_v15  ;;  %v5203_v15 = vpack.c.bf16 %v3312_v10, %v3311_v9 }
 0x7ee   : > { %5184 = vmatprep.subr.bf16.mxu0 %v5183_v18 }
 0x7f1   : > { %5186 = vmatpush3.bf16.msra.mxu0 %v5183_v18  ;;  %v5207_v18 = vpack.c.bf16 %v3314_v17, %v3313_v16  ;;  %v5630_v16 = vld [vmem:[%s6980_s5] sm:$0xff] }
 0x7f2   : > { %5188 = vmatprep.subr.bf16.mxu0 %v5187_v21 }
 0x7f5   : > { %5190 = vmatpush3.bf16.msra.mxu0 %v5187_v21  ;;  %v5211_v21 = vpack.c.bf16 %v3316_v20, %v3315_v19  ;;  %v5631_v19 = vld [vmem:[%s6980_s5 + $0x8] sm:$0xff]  ;;  %s7342_s5 = sshll.u32 %s6533_s28, 8 }
 0x7f6   : > { %5192 = vmatprep.subr.bf16.mxu0 %v5191_v24  ;;  %s7348_s2 = scalar_lea.hbm %s7726_s0, %s7342_s5 }
 0x7f9   : > { %5194 = vmatpush3.bf16.msra.mxu0 %v5191_v24  ;;  %v5215_v24 = vpack.c.bf16 %v3318_v23, %v3317_v22 }
 0x7fa   : > { %5196 = vmatprep.subr.bf16.mxu0 %v5195_v28 }
 0x7fd   : > { %5198 = vmatpush3.bf16.msra.mxu0 %v5195_v28  ;;  %v5219_v28 = vpack.c.bf16 %v3320_v27, %v3319_v26 }
 0x7fe   : > { %5232 = vmatprep.subr.bf16.mxu0 %v5231_v42 }
 0x800   : > { %4676 = vmatmul.mubr.f32.vlgmr.msra.gmra.mrb[36].mxu0 %v7250_v53 }
 0x801   : > { %5234 = vmatpush3.bf16.msra.mxu0 %v5231_v42  ;;  %4745 = vmatprep.mubr.f32.mxu0 %v7247_v50  ;;  %v5223_v42 = vpack.c.bf16 %v3322_v30, %v3321_v29 }
 0x802   : > { %5236 = vmatprep.subr.bf16.mxu0 %v5235_v49 }
 0x805   : > { %5238 = vmatpush3.bf16.msra.mxu0 %v5235_v49 }
 0x806   : > { %5240 = vmatprep.subr.bf16.mxu0 %v5239_v12 }
 0x809   : > { %5242 = vmatpush3.bf16.msra.mxu0 %v5239_v12 }
 0x80a   : > { %5244 = vmatprep.subr.bf16.mxu0 %v5243_v44 }
 0x80d   : > { %5246 = vmatpush3.bf16.msra.mxu0 %v5243_v44  ;;  %v3530_v44 = vld [vmem:[%s7724_s19 + $0x18] sm:$0xff] }
 0x80e   : > { %5248 = vmatprep.subr.bf16.mxu0 %v5247_v46  ;;  %v5267_v31 = vpack.c.bf16 %v3530_v44, %v3529_v55 }
 0x811   : > { %5250 = vmatpush3.bf16.msra.mxu0 %v5247_v46  ;;  %v3532_v46 = vld [vmem:[%s7724_s19 + $0x28] sm:$0xff] }
 0x812   : > { %5252 = vmatprep.subr.bf16.mxu0 %v5251_v33  ;;  %v5271_v56 = vpack.c.bf16 %v3532_v46, %v3531_v32 }
 0x815   : > { %5254 = vmatpush3.bf16.msra.mxu0 %v5251_v33  ;;  %v3534_v33 = vld [vmem:[%s7724_s19 + $0x38] sm:$0xff] }
 0x816   : > { %5256 = vmatprep.subr.bf16.mxu0 %v5255_v39  ;;  %v5275_v34 = vpack.c.bf16 %v3534_v33, %v3533_v58 }
 0x819   : > { %5258 = vmatpush3.bf16.msra.mxu0 %v5255_v39 }
 0x81a   : > { %5260 = vmatprep.subr.bf16.mxu0 %v5259_v41 }
 0x81d   : > { %5262 = vmatpush3.bf16.msra.mxu0 %v5259_v41  ;;  %v5283_v41 = vpack.c.bf16 %v3538_v0, %v3537_v40 }
 0x820   : > { %4746 = vmatmul.mubr.f32.vlgmr.msra.gmra.mrb[38].mxu0 %v7255_v25 }
 0x8b3   : > { %v3053_v48 = vpop.f32.mrb[32].mxu0 }
 0x8b4   : > { %v3054_v3 = vadd.f32 %v4253_v2, %v3053_v48  ;;  %v4641_v4 = vpop.f32.mrb[33].mxu0 }
 0x8b5   : > { %v3056_v5 = vpop.f32.mrb[34].mxu0 }
 0x8b6   : > { %v3057_v7 = vadd.f32 %v4253_v2, %v3056_v5  ;;  %v4642_v8 = vpop.f32.mrb[35].mxu0  ;;  %v3060_v6 = vmax.f32 %v3054_v3, 0.0  ;;  %v3079_v5 = vld [vmem:[%s7725_s20] sm:$0x3]  ;;  %s6084_s20 = scalar_lea.vmem %s7354_s13, 256 }
 0x8b7   : > { %p6085_p10 = scmp.ne.s32.totalorder %s7354_s13, %s6084_s20 }
 0x8b8   : > { %v3061_v13 = vmax.f32 %v3057_v7, 0.0  ;;  %v3084_v7 = vrot.slane %v3079_v5, %v1377_v36 }
 0x8b9   : > { %p6086_p11 = pnand %p6085_p10, %p7727_p1 }
 0x8ba   : > { %v3062_v14 = vpack.c.bf16 %v3061_v13, %v3060_v6 }
 0x8bb   : > { %p6087_p12 = pneg %p6086_p11 }
 0x8bc   : > { %3204 = vmatmul.mubr.bf16.vlgmr.msra.gmra.mrb[32].mxu1 %v3062_v14 }
 0x8bd   : > { %5202 = vmatpush3.bf16.msra.mxu1 %v5199_v1  ;;  %4710 = vmatprep.mubr.f32.mxu1 %v7213_v11 }
 0x8be   : > { %5204 = vmatprep.subr.bf16.mxu1 %v5203_v15 }
 0x8c1   : > { %5206 = vmatpush3.bf16.msra.mxu1 %v5203_v15 }
 0x8c2   : > { %5208 = vmatprep.subr.bf16.mxu1 %v5207_v18 }
 0x8c5   : > { %5210 = vmatpush3.bf16.msra.mxu1 %v5207_v18 }
 0x8c6   : > { %5212 = vmatprep.subr.bf16.mxu1 %v5211_v21 }
 0x8c9   : > { %5214 = vmatpush3.bf16.msra.mxu1 %v5211_v21 }
 0x8ca   : > { %5216 = vmatprep.subr.bf16.mxu1 %v5215_v24 }
 0x8cd   : > { %5218 = vmatpush3.bf16.msra.mxu1 %v5215_v24 }
 0x8ce   : > { %5220 = vmatprep.subr.bf16.mxu1 %v5219_v28 }
 0x8d1   : > { %5222 = vmatpush3.bf16.msra.mxu1 %v5219_v28 }
 0x8d2   : > { %5224 = vmatprep.subr.bf16.mxu1 %v5223_v42 }
 0x8d3   : > { %v7262_v49 = vpop.f32.mrb[36].mxu0 }
 0x8d4   : > { %v7270_v12 = vpop.f32.mrb[37].mxu0 }
 0x8d5   : > { %5226 = vmatpush3.bf16.msra.mxu1 %v5223_v42 }
 0x8d6   : > { %5228 = vmatprep.subr.bf16.mxu1 %v5227_v47 }
 0x8d9   : > { %5230 = vmatpush3.bf16.msra.mxu1 %v5227_v47 }
 0x8da   : > { %5264 = vmatprep.subr.bf16.mxu1 %v5263_v54 }
 0x8dc   : > { %4711 = vmatmul.mubr.f32.vlgmr.msra.gmra.mrb[36].mxu1 %v7250_v53 }
 0x8dd   : > { %5266 = vmatpush3.bf16.msra.mxu1 %v5263_v54  ;;  %4780 = vmatprep.mubr.f32.mxu1 %v7213_v11  ;;  %v3536_v11 = vld [vmem:[%s7724_s19 + $0x48] sm:$0xff] }
 0x8de   : > { %5268 = vmatprep.subr.bf16.mxu1 %v5267_v31  ;;  %v5279_v39 = vpack.c.bf16 %v3536_v11, %v3535_v37 }
 0x8e1   : > { %5270 = vmatpush3.bf16.msra.mxu1 %v5267_v31 }
 0x8e2   : > { %5272 = vmatprep.subr.bf16.mxu1 %v5271_v56 }
 0x8e5   : > { %5274 = vmatpush3.bf16.msra.mxu1 %v5271_v56 }
 0x8e6   : > { %5276 = vmatprep.subr.bf16.mxu1 %v5275_v34 }
 0x8e9   : > { %5278 = vmatpush3.bf16.msra.mxu1 %v5275_v34 }
 0x8ea   : > { %5280 = vmatprep.subr.bf16.mxu1 %v5279_v39 }
 0x8ed   : > { %5282 = vmatpush3.bf16.msra.mxu1 %v5279_v39 }
 0x8ee   : > { %5284 = vmatprep.subr.bf16.mxu1 %v5283_v41 }
 0x8f1   : > { %5286 = vmatpush3.bf16.msra.mxu1 %v5283_v41 }
 0x8f2   : > { %5288 = vmatprep.subr.bf16.mxu1 %v5287_v61 }
 0x8f3   : > { %v4747_v1 = vpop.f32.mrb[38].mxu0 }
 0x8f4   : > { %v3515_v2 = vmul.f32 %v4747_v1, %v7255_v25  ;;  %v3505_v48 = vpop.f32.mrb[39].mxu0  ;;  %v3088_v25 = vrot.slane %v3079_v5, %v1381_v38 }
 0x8f5   : > { %v3514_v3 = vmul.f32 %v3505_v48, %v7247_v50  ;;  %5290 = vmatpush3.bf16.msra.mxu1 %v5287_v61 }
 0x8f6   : > { %5292 = vmatprep.subr.bf16.mxu1 %v5291_v63 }
 0x8f7   : > { %v3516_v4 = vadd.f32 %v3515_v2, %v3514_v3 }
 0x8f9   : > { %5294 = vmatpush3.bf16.msra.mxu1 %v5291_v63 }
 0x8fc   : > { %4781 = vmatmul.mubr.f32.vlgmr.msra.gmra.mrb[38].mxu1 %v7250_v53 }
 0x98f   : > { %v3205_v8 = vpop.f32.mrb[32].mxu1 }
 0x990   : > { %v3206_v9 = vadd.f32 %v3205_v8, %v3084_v7  ;;  %v3207_v50 = vpop.f32.mrb[33].mxu1 }
 0x991   : > { %v3208_v10 = vadd.f32 %v3207_v50, %v3088_v25  ;;  %v3209_v6 = vpop.f32.mrb[34].mxu1 }
 0x992   : > { %3214 = vst [vmem:[%s7327_s29] sm:$0xff] %v3206_v9  ;;  %v3210_v53 = vadd.f32 %v3209_v6, %v3084_v7  ;;  %v3211_v13 = vpop.f32.mrb[35].mxu1  ;;  %v3642_v17 = vsub.f32 %v5630_v16, %v3206_v9 }
 0x993   : > { %3216 = vst [vmem:[%s7331_s9] sm:$0xff] %v3208_v10  ;;  %v3644_v35 = vsub.f32 0.0, %v3208_v10  ;;  %v3212_v36 = vadd.f32 %v3211_v13, %v3088_v25 }
 0x994   : > { %3215 = vst [vmem:[%s7327_s29 + $0x8] sm:$0xff] %v3210_v53  ;;  %v3643_v20 = vsub.f32 %v5631_v19, %v3210_v53  ;;  %s6364_s29 = smov [#allocation32]  }
 0x995   : > { %v3646_v38 = vmul.f32 1.442695, %v3644_v35  ;;  %3217 = vst [vmem:[%s7331_s9 + $0x8] sm:$0xff] %v3212_v36  ;;  %v3645_v14 = vsub.f32 0.0, %v3212_v36  ;;  %s6088_s12 = sshll.u32 %s6364_s29, 4  ;;  %s6089_s12 = int_to_ptr.vmem [resolvable:$false] %s6088_s12 }
 0x996   : > { %s6090_s22 = scalar_lea.vmem %s6089_s12, 512  ;;  %p6091_p2 = scmp.lt.s32.totalorder %s7354_s13, %s6089_s12 }
 0x997   : > { %5618 = vpow2.f32 %v3646_v38  ;;  %v3648_v15 = vmul.f32 1.442695, %v3645_v14  ;;  %p6092_p13 = scmp.lt.s32.totalorder %s6090_s22, %s6084_s20 }
 0x999   : > { %5620 = vpow2.f32 %v3648_v15  ;;  %p6093_p6 = por %p6092_p13, %p6091_p2 }
 0x99b   : > { %p6094_p9 = pnand %p6093_p6, %p6087_p12 }
 0x9a1   : > { %v5619_v18 = vpop.eup %5618 }
 0x9a2   : > { %v3650_v21 = vmul.f32 %v5619_v18, %v3642_v17 }
 0x9a3   : > { %v5621_v22 = vpop.eup %5620 }
 0x9a4   : > { %v3651_v23 = vmul.f32 %v5621_v22, %v3643_v20  ;;  %v3652_v24 = vmul.f32 %v3650_v21, %v3642_v17 }
 0x9a6   : > { %v3653_v26 = vmul.f32 %v3651_v23, %v3643_v20  ;;  %v3654_v27 = vadd.f32 %v3652_v24, %v3208_v10 }
 0x9a8   : > { %v3655_v28 = vadd.f32 %v3653_v26, %v3212_v36 }
 0x9aa   : > { %v3656_v29 = vadd.f32 %v3655_v28, %v3654_v27 }
 0x9af   : > { %v4712_v30 = vpop.f32.mrb[36].mxu1 }
 0x9b0   : > { %v3401_v42 = vmul.f32 %v4712_v30, %v7262_v49  ;;  %v3391_v43 = vpop.f32.mrb[37].mxu1 }
 0x9b1   : > { %v3400_v45 = vmul.f32 %v3391_v43, %v7270_v12 }
 0x9b3   : > { %v3402_v47 = vadd.f32 %v3401_v42, %v3400_v45 }
 0x9b5   : > { %3403 = vadd.xlane.f32.xlu0 %v3402_v47 }
 0x9b9   : > { %3517 = vadd.xlane.f32.xlu0 %v3516_v4 }
 0x9cf   : > { %v4782_v51 = vpop.f32.mrb[38].mxu1 }
 0x9d0   : > { %v3619_v52 = vand.u32 2147483647, %v4782_v51  ;;  %v3609_v54 = vpop.f32.mrb[39].mxu1 }
 0x9d1   : > { %v3618_v55 = vand.u32 2147483647, %v3609_v54 }
 0x9d2   : > { %5622 = vlog2.f32 %v3619_v52 }
 0x9d3   : > { %5624 = vlog2.f32 %v3618_v55 }
 0x9dc   : > { %v5623_v44 = vpop.eup %5622 }
 0x9dd   : > { %v5625_v49 = vpop.eup %5624  ;;  %v3623_v31 = vmul.f32 0.6931472, %v5623_v44 }
 0x9de   : > { %v3621_v32 = vmul.f32 0.6931472, %v5625_v49 }
 0x9df   : > { %v3626_v12 = vsel %vm3624_vm1, %v3623_v31, 0.0 }
 0x9e0   : > { %v3625_v46 = vsel %vm3624_vm1, %v3621_v32, 0.0 }
 0x9e1   : > { %v3627_v56 = vadd.f32 %v3626_v12, %v3625_v46 }
 0x9e3   : > { %3628 = vadd.xlane.f32.xlu1 %v3627_v56 }
 0x9e7   : > { %3657 = vadd.xlane.f32.xlu1 %v3656_v29 }
 0x9e8   : > { %6097 = shalt.err (!%p6094_p9)
}
 0x9e9   : > { %s6098_s18 = scalar_lea.hbm %s7348_s2, 256  ;;  %s6102_s29 = scalar_lea.hbm %s7726_s0, 512 }
 0x9ea   : > { %p6099_p0 = scmp.ne.s32.totalorder %s7348_s2, %s6098_s18  ;;  %p6103_p8 = scmp.lt.u32.totalorder %s7348_s2, %s7726_s0 }
 0x9eb   : > { %p6104_p4 = scmp.lt.u32.totalorder %s6102_s29, %s6098_s18  ;;  %p6106_p10 = scmp.lt.u32.totalorder %s6098_s18, %s7348_s2 }
 0x9ec   : > { %p6100_p5 = pnand %p6099_p0, %p7727_p1 }
 0x9ed   : > { %p6105_p3 = por %p6104_p4, %p6103_p8 }
 0x9ee   : > { %p6101_p7 = pneg %p6100_p5 }
 0x9ef   : > { %p6107_p11 = por %p6106_p10, %p6105_p3 }
 0x9f1   : > { %p6108_p12 = pnand %p6107_p11, %p6101_p7 }
 0x9f3   : > { %6111 = shalt.err (!%p6108_p12)
}
 0x9f4   : > { %s7640_s20 = smov 128   ;;  %s7641_s6 = smov 8  }
 0x9f5   : > { %s7728_s1 = scalar_lea.sflag [#allocation33], %s6987_s26  ;;  %s7729_s22 = sshll.u32 %s7331_s9, 4  ;;  %s7385_s22 = int_to_ptr.vmem [resolvable:$true] %s7729_s22 }
 0x9f6   : > { %5366 = dma.vmem_to_hbm [thread:$0]  (%p7727_p1), %s7354_s13, 256, %s7348_s2, %s7728_s1, %s7640_s20, %s7640_s20, %s7641_s6  }
 0x9f7   : > { %s7730_s29 = sld [smem:[#allocation78_spill]]  ;;  %s6112_s0 = scalar_lea.vmem %s7350_s3, 256 }
 0x9f8   : > { %p6113_p2 = scmp.ne.s32.totalorder %s7350_s3, %s6112_s0  ;;  %s6367_s15 = smov [#allocation34]  }
 0x9f9   : > { %s6116_s16 = sshll.u32 %s6367_s15, 4  ;;  %s6117_s16 = int_to_ptr.vmem [resolvable:$false] %s6116_s16 }
 0x9fa   : > { %p6114_p13 = pnand %p6113_p2, %p7727_p1  ;;  %s6118_s17 = scalar_lea.vmem %s6117_s16, 512 }
 0x9fb   : > { %p6119_p9 = scmp.lt.s32.totalorder %s7350_s3, %s6117_s16  ;;  %p6120_p0 = scmp.lt.s32.totalorder %s6118_s17, %s6112_s0 }
 0x9fc   : > { %p6115_p6 = pneg %p6114_p13 }
 0x9fd   : > { %s7391_s12 = scalar_lea.hbm %s7730_s29, %s7342_s5  ;;  %p6121_p5 = por %p6120_p0, %p6119_p9 }
 0x9ff   : > { %p6122_p7 = pnand %p6121_p5, %p6115_p6 }
 0xa01   : > { %6125 = shalt.err (!%p6122_p7)
}
 0xa02   : > { %s6126_s9 = scalar_lea.hbm %s7391_s12, 256  ;;  %s6130_s15 = scalar_lea.hbm %s7730_s29, 512 }
 0xa03   : > { %p6127_p8 = scmp.ne.s32.totalorder %s7391_s12, %s6126_s9  ;;  %p6131_p10 = scmp.lt.u32.totalorder %s7391_s12, %s7730_s29 }
 0xa04   : > { %p6132_p11 = scmp.lt.u32.totalorder %s6130_s15, %s6126_s9  ;;  %p6134_p2 = scmp.lt.u32.totalorder %s6126_s9, %s7391_s12 }
 0xa05   : > { %p6128_p4 = pnand %p6127_p8, %p7727_p1 }
 0xa06   : > { %p6133_p12 = por %p6132_p11, %p6131_p10 }
 0xa07   : > { %p6129_p3 = pneg %p6128_p4 }
 0xa08   : > { %p6135_p13 = por %p6134_p2, %p6133_p12 }
 0xa0a   : > { %p6136_p6 = pnand %p6135_p13, %p6129_p3 }
 0xa0c   : > { %6139 = shalt.err (!%p6136_p6)
}
 0xa0d   : > { %s7731_s17 = scalar_lea.sflag [#allocation33], %s6987_s26  ;;  %s7732_s14 = sld [smem:[#allocation79_spill]] }
 0xa0e   : > { %5367 = dma.vmem_to_hbm [thread:$0]  (%p7727_p1), %s7350_s3, 256, %s7391_s12, %s7731_s17, %s7640_s20, %s7640_s20, %s7641_s6  }
 0xa0f   : > { %s3694_s2 = scalar_lea.sflag [#allocation36], %s6973_s24  ;;  %s6140_s13 = scalar_lea.vmem %s7385_s22, 256 }
 0xa10   : > { %p6141_p9 = scmp.ne.s32.totalorder %s7385_s22, %s6140_s13  ;;  %s6368_s15 = smov [#allocation35]  }
 0xa11   : > { %s6144_s1 = sshll.u32 %s6368_s15, 4  ;;  %s6145_s1 = int_to_ptr.vmem [resolvable:$false] %s6144_s1 }
 0xa12   : > { %p6142_p0 = pnand %p6141_p9, %p7727_p1  ;;  %s6146_s16 = scalar_lea.vmem %s6145_s1, 512 }
 0xa13   : > { %s7423_s9 = scalar_lea.hbm %s7732_s14, %s7342_s5  ;;  %p6147_p7 = scmp.lt.s32.totalorder %s7385_s22, %s6145_s1 }
 0xa14   : > { %p6143_p5 = pneg %p6142_p0  ;;  %p6148_p8 = scmp.lt.s32.totalorder %s6146_s16, %s6140_s13 }
 0xa16   : > { %p6149_p4 = por %p6148_p8, %p6147_p7 }
 0xa18   : > { %p6150_p3 = pnand %p6149_p4, %p6143_p5 }
 0xa1a   : > { %6153 = shalt.err (!%p6150_p3)
}
 0xa1b   : > { %s6154_s3 = scalar_lea.hbm %s7423_s9, 256  ;;  %s6158_s0 = scalar_lea.hbm %s7732_s14, 512 }
 0xa1c   : > { %p6155_p10 = scmp.ne.s32.totalorder %s7423_s9, %s6154_s3  ;;  %p6159_p2 = scmp.lt.u32.totalorder %s7423_s9, %s7732_s14 }
 0xa1d   : > { %p6160_p13 = scmp.lt.u32.totalorder %s6158_s0, %s6154_s3  ;;  %p6162_p9 = scmp.lt.u32.totalorder %s6154_s3, %s7423_s9 }
 0xa1e   : > { %p6156_p11 = pnand %p6155_p10, %p7727_p1 }
 0xa1f   : > { %p6161_p6 = por %p6160_p13, %p6159_p2 }
 0xa20   : > { %p6157_p12 = pneg %p6156_p11 }
 0xa21   : > { %p6163_p0 = por %p6162_p9, %p6161_p6 }
 0xa23   : > { %p6164_p5 = pnand %p6163_p0, %p6157_p12 }
 0xa25   : > { %6167 = shalt.err (!%p6164_p5)
}
 0xa26   : > { %5368 = dma.vmem_to_hbm [thread:$0]  (%p7727_p1), %s7385_s22, 256, %s7423_s9, %s3694_s2, %s7640_s20, %s7640_s20, %s7641_s6  }
 0xa27   : > { %s4204_s22 = sshll.u32 %s6973_s24, 3  ;;  %s4285_s3 = sshll.u32 %s6533_s28, 7 }
 0xa28   : > { %s1088_s13 = scalar_lea.vmem [#allocation29], %s4204_s22  ;;  %s3733_s12 = sshll.u32 %s7063_s11, 4  ;;  %s7469_s12 = int_to_ptr.vmem [resolvable:$true] %s3733_s12 }
 0xa29   : > { %s3720_s1 = sshll.u32 %s1088_s13, 4  ;;  %s1081_s17 = scalar_lea.vmem [#allocation28], %s4204_s22  ;;  %s7455_s1 = int_to_ptr.vmem [resolvable:$true] %s3720_s1 }
 0xa2a   : > { %s3707_s0 = sshll.u32 %s1081_s17, 4  ;;  %s7734_s20 = sld [smem:[#allocation74_spill]]  ;;  %s7467_s0 = int_to_ptr.vmem [resolvable:$true] %s3707_s0 }
 0xa2b   : > { %s7735_s18 = sld [smem:[#allocation76_spill]]  ;;  %s3674_s19 = scalar_lea.sflag [#allocation30], %s6987_s26 }
 0xa2c   : > { %s6168_s27 = scalar_lea.vmem %s7455_s1, 128 }
 0xa2d   : > { %p6169_p7 = scmp.ne.s32.totalorder %s7455_s1, %s6168_s27 }
 0xa2f   : > { %p6170_p8 = pnand %p6169_p7, %p7727_p1 }
 0xa30   : > { %s7465_s6 = scalar_lea.hbm %s7734_s20, %s4285_s3 }
 0xa31   : > { %s7475_s15 = scalar_lea.hbm %s7735_s18, %s7342_s5  ;;  %p6171_p4 = pneg %p6170_p8 }
 0xa42   : > { %v3404_v58 = vpop.xlane.xlu0 %3403 }
 0xa43   : > { %v3405_v33 = vrot.slane %v3404_v58, 4 }
 0xa45   : > { %v3406_v34 = vadd.f32 %v3405_v33, %v3404_v58 }
 0xa46   : > { %v3518_v37 = vpop.xlane.xlu0 %3517 }
 0xa47   : > { %v3407_v11 = vrot.slane %v3406_v34, 2  ;;  %v3519_v39 = vrot.slane %v3518_v37, 4 }
 0xa49   : > { %v3520_v40 = vadd.f32 %v3519_v39, %v3518_v37  ;;  %v3408_v0 = vadd.f32 %v3407_v11, %v3406_v34 }
 0xa4b   : > { %v3521_v41 = vrot.slane %v3520_v40, 2  ;;  %v3409_v59 = vrot.slane %v3408_v0, 1 }
 0xa4d   : > { %v3522_v60 = vadd.f32 %v3521_v41, %v3520_v40  ;;  %v3410_v61 = vadd.f32 %v3409_v59, %v3408_v0 }
 0xa4f   : > { %5295 = vpush %v3410_v61  ;;  %v3523_v57 = vrot.slane %v3522_v60, 1 }
 0xa51   : > { %v3524_v62 = vadd.f32 %v3523_v57, %v3522_v60 }
 0xa53   : > { %5297 = vpush %v3524_v62 }
 0xa70   : > { %v3629_v63 = vpop.xlane.xlu1 %3628 }
 0xa71   : > { %v3630_v1 = vrot.slane %v3629_v63, 4 }
 0xa73   : > { %v3631_v2 = vadd.f32 %v3630_v1, %v3629_v63 }
 0xa74   : > { %v3658_v48 = vpop.xlane.xlu1 %3657 }
 0xa75   : > { %v3632_v3 = vrot.slane %v3631_v2, 2  ;;  %v3659_v4 = vrot.slane %v3658_v48, 4 }
 0xa77   : > { %v3660_v5 = vadd.f32 %v3659_v4, %v3658_v48  ;;  %v3633_v7 = vadd.f32 %v3632_v3, %v3631_v2 }
 0xa79   : > { %v3661_v25 = vrot.slane %v3660_v5, 2  ;;  %v3634_v8 = vrot.slane %v3633_v7, 1 }
 0xa7b   : > { %v3662_v9 = vadd.f32 %v3661_v25, %v3660_v5  ;;  %v3635_v50 = vadd.f32 %v3634_v8, %v3633_v7 }
 0xa7d   : > { %5299 = vpush %v3635_v50  ;;  %v3663_v10 = vrot.slane %v3662_v9, 1 }
 0xa7f   : > { %v3664_v6 = vadd.f32 %v3663_v10, %v3662_v9 }
 0xa80   : > { %s5296_s9 = spop %5295 }
 0xa81   : > { %5301 = vpush %v3664_v6  ;;  %v3412_v53 = vstv %s5296_s9  ;;  %s7733_s9 = sld [smem:[#allocation75_spill]] }
 0xa82   : > { %v3413_v35 = vmul.f32 4.0, %v3412_v53 }
 0xa84   : > { %s5298_s2 = spop %5297 }
 0xa85   : > { %v3526_v13 = vstv %s5298_s2 }
 0xa86   : > { %v3639_v38 = vadd.f32 %v3526_v13, %v3413_v35 }
 0xa87   : > { %s7460_s2 = scalar_lea.hbm %s7733_s9, %s4285_s3 }
 0xaae   : > { %s5300_s16 = spop %5299 }
 0xaaf   : > { %v3637_v36 = vstv %s5300_s16 }
 0xab0   : > { %v3638_v14 = vmul.f32 8.0, %v3637_v36 }
 0xab2   : > { %v3640_v15 = vsub.f32 %v3639_v38, %v3638_v14  ;;  %s5302_s28 = spop %5301 }
 0xab3   : > { %v3666_v16 = vstv %s5302_s28  ;;  %s6369_s28 = smov [#allocation29]  }
 0xab4   : > { %3667 = vst [vmem:[%s1088_s13] sm:$0xff] %v3666_v16  ;;  %3641 = vst [vmem:[%s1081_s17] sm:$0xff] %v3640_v15  ;;  %s6172_s3 = sshll.u32 %s6369_s28, 4  ;;  %s6173_s3 = int_to_ptr.vmem [resolvable:$false] %s6172_s3 }
 0xab5   : > { %s6174_s11 = scalar_lea.vmem %s6173_s3, 256  ;;  %p6175_p3 = scmp.lt.s32.totalorder %s7455_s1, %s6173_s3 }
 0xab6   : > { %p6176_p10 = scmp.lt.s32.totalorder %s6174_s11, %s6168_s27 }
 0xab8   : > { %p6177_p11 = por %p6176_p10, %p6175_p3 }
 0xaba   : > { %p6178_p12 = pnand %p6177_p11, %p6171_p4 }
 0xabc   : > { %6181 = shalt.err (!%p6178_p12)
}
 0xabd   : > { %s6182_s5 = scalar_lea.hbm %s7460_s2, 128  ;;  %s6186_s17 = scalar_lea.hbm %s7733_s9, 256 }
 0xabe   : > { %p6183_p2 = scmp.ne.s32.totalorder %s7460_s2, %s6182_s5  ;;  %p6187_p9 = scmp.lt.u32.totalorder %s7460_s2, %s7733_s9 }
 0xabf   : > { %p6188_p0 = scmp.lt.u32.totalorder %s6186_s17, %s6182_s5  ;;  %p6190_p7 = scmp.lt.u32.totalorder %s6182_s5, %s7460_s2 }
 0xac0   : > { %p6184_p13 = pnand %p6183_p2, %p7727_p1 }
 0xac1   : > { %p6189_p5 = por %p6188_p0, %p6187_p9 }
 0xac2   : > { %p6185_p6 = pneg %p6184_p13 }
 0xac3   : > { %p6191_p8 = por %p6190_p7, %p6189_p5 }
 0xac5   : > { %p6192_p4 = pnand %p6191_p8, %p6185_p6 }
 0xac7   : > { %6195 = shalt.err (!%p6192_p4)
}
 0xac8   : > { %5364 = dma.vmem_to_hbm [thread:$0]  (%p7727_p1), %s7455_s1, 128, %s7460_s2, %s3674_s19  }
 0xac9   : > { %s3669_s27 = scalar_lea.sflag [#allocation4], %s6973_s24  ;;  %s6196_s28 = scalar_lea.vmem %s7467_s0, 128 }
 0xaca   : > { %p6197_p3 = scmp.ne.s32.totalorder %s7467_s0, %s6196_s28  ;;  %s6370_s3 = smov [#allocation28]  }
 0xacb   : > { %s6200_s11 = sshll.u32 %s6370_s3, 4  ;;  %s6201_s11 = int_to_ptr.vmem [resolvable:$false] %s6200_s11 }
 0xacc   : > { %p6198_p10 = pnand %p6197_p3, %p7727_p1  ;;  %s6202_s5 = scalar_lea.vmem %s6201_s11, 256 }
 0xacd   : > { %p6203_p12 = scmp.lt.s32.totalorder %s7467_s0, %s6201_s11  ;;  %p6204_p2 = scmp.lt.s32.totalorder %s6202_s5, %s6196_s28 }
 0xace   : > { %p6199_p11 = pneg %p6198_p10 }
 0xacf   : > { %p6205_p13 = por %p6204_p2, %p6203_p12 }
 0xad1   : > { %p6206_p6 = pnand %p6205_p13, %p6199_p11 }
 0xad3   : > { %6209 = shalt.err (!%p6206_p6)
}
 0xad4   : > { %s6210_s24 = scalar_lea.hbm %s7465_s6, 128  ;;  %s6214_s14 = scalar_lea.hbm %s7734_s20, 256 }
 0xad5   : > { %p6211_p9 = scmp.ne.s32.totalorder %s7465_s6, %s6210_s24  ;;  %p6215_p7 = scmp.lt.u32.totalorder %s7465_s6, %s7734_s20 }
 0xad6   : > { %p6216_p8 = scmp.lt.u32.totalorder %s6214_s14, %s6210_s24  ;;  %p6218_p3 = scmp.lt.u32.totalorder %s6210_s24, %s7465_s6 }
 0xad7   : > { %p6212_p0 = pnand %p6211_p9, %p7727_p1 }
 0xad8   : > { %p6217_p4 = por %p6216_p8, %p6215_p7 }
 0xad9   : > { %p6213_p5 = pneg %p6212_p0 }
 0xada   : > { %p6219_p10 = por %p6218_p3, %p6217_p4 }
 0xadc   : > { %p6220_p11 = pnand %p6219_p10, %p6213_p5 }
 0xade   : > { %6223 = shalt.err (!%p6220_p11)
}
 0xadf   : > { %5363 = dma.vmem_to_hbm [thread:$0]  (%p7727_p1), %s7467_s0, 128, %s7465_s6, %s3669_s27  }
 0xae0   : > { %s6224_s16 = scalar_lea.vmem %s7469_s12, 256  ;;  %s6371_s22 = smov [#allocation31]  }
 0xae1   : > { %p6225_p12 = scmp.ne.s32.totalorder %s7469_s12, %s6224_s16  ;;  %s6228_s28 = sshll.u32 %s6371_s22, 4  ;;  %s6229_s28 = int_to_ptr.vmem [resolvable:$false] %s6228_s28 }
 0xae2   : > { %s6230_s3 = scalar_lea.vmem %s6229_s28, 512  ;;  %p6231_p6 = scmp.lt.s32.totalorder %s7469_s12, %s6229_s28 }
 0xae3   : > { %p6226_p2 = pnand %p6225_p12, %p7727_p1  ;;  %p6232_p9 = scmp.lt.s32.totalorder %s6230_s3, %s6224_s16 }
 0xae5   : > { %p6227_p13 = pneg %p6226_p2  ;;  %p6233_p0 = por %p6232_p9, %p6231_p6 }
 0xae7   : > { %p6234_p5 = pnand %p6233_p0, %p6227_p13 }
 0xae9   : > { %6237 = shalt.err (!%p6234_p5)
}
 0xaea   : > { %s6238_s6 = scalar_lea.hbm %s7475_s15, 256  ;;  %s6242_s11 = scalar_lea.hbm %s7735_s18, 512 }
 0xaeb   : > { %p6239_p7 = scmp.ne.s32.totalorder %s7475_s15, %s6238_s6  ;;  %p6243_p3 = scmp.lt.u32.totalorder %s7475_s15, %s7735_s18 }
 0xaec   : > { %p6244_p10 = scmp.lt.u32.totalorder %s6242_s11, %s6238_s6  ;;  %p6246_p12 = scmp.lt.u32.totalorder %s6238_s6, %s7475_s15 }
 0xaed   : > { %p6240_p8 = pnand %p6239_p7, %p7727_p1 }
 0xaee   : > { %p6245_p11 = por %p6244_p10, %p6243_p3 }
 0xaef   : > { %p6241_p4 = pneg %p6240_p8 }
 0xaf0   : > { %p6247_p2 = por %p6246_p12, %p6245_p11 }
 0xaf2   : > { %p6248_p13 = pnand %p6247_p2, %p6241_p4 }
 0xaf4   : > { %6251 = shalt.err (!%p6248_p13)
}
 0xaf5   : > { %s7736_s1 = smov 8   ;;  %s7737_s2 = smov 128  }
 0xaf6   : > { %5365 = dma.vmem_to_hbm [thread:$0]  (%p7727_p1), %s7469_s12, 256, %s7475_s15, %s3674_s19, %s7737_s2, %s7737_s2, %s7736_s1  }
 0xaf7 PF: > { %s3796_s14 = sand.u32 1, %s6326_s7   ;;  %p7738_p6 = scmp.ne.s32.totalorder %s7698_s21, 0 }
 0xaf8   : > { %p7739_p9 = scmp.ge.s32.totalorder %s6338_s30, 2  ;;  %s3797_s13 = scalar_lea.sflag [#allocation4], %s3796_s14 }
 0xafa   : > { %p5426_p0 = pnand %p7739_p9, %p7738_p6 }
 0xafc   : > { %6309 = dma.done.wait (!%p5426_p0), %s3797_s13, 128  }
 0xafd   : > { %6311 = vsyncadd (!%p5426_p0), %s3797_s13, 4294967168  ;;  %s7740_s25 = sadd.s32 4294967294, %s6338_s30  }
 0xafe   : > { %s3805_s17 = sand.u32 1, %s7740_s25  }
 0xaff   : > { %s3806_s16 = scalar_lea.sflag [#allocation30], %s3805_s17 }
 0xb00   : > { %6313 = dma.done.wait (!%p5426_p0), %s3806_s16, 384  }
 0xb01   : > { %6315 = vsyncadd (!%p5426_p0), %s3806_s16, 4294966912  ;;  %s3824_s26 = scalar_lea.sflag [#allocation33], %s3805_s17 }
 0xb02   : > { %6317 = dma.done.wait (!%p5426_p0), %s3824_s26, 512  }
 0xb03   : > { %6319 = vsyncadd (!%p5426_p0), %s3824_s26, 4294966784  ;;  %s3842_s19 = scalar_lea.sflag [#allocation36], %s3796_s14 }
 0xb04   : > { %6321 = dma.done.wait (!%p5426_p0), %s3842_s19, 256  }
 0xb05   : > { %6323 = vsyncadd (!%p5426_p0), %s3842_s19, 4294967040  ;;  %p60_p1 = scmp.ge.s32.totalorder %s6854_s10, 4   ;;  %s7741_s7 = smov %s6330_s4 }
 0xb06   : > { %s7742_s4 = smov %s6334_s8  ;;  %s7743_s8 = smov %s6866_s23 }
 0xb07   : > { %s7744_s30 = smov %s6854_s10  ;;  %62 = sbr.rel (!%p60_p1) target bundleno = 49 (0x31), region = 303 }
 0xb0e   :  { %3847 = vsyncpa [#allocation3], 1 }
 0xb0f   :  { %3849 = vsyncpa [#allocation3 + $0x1], 1 }
 0xb10   :  { %3850 = vsyncpa [#allocation6], 1 }
 0xb11   :  { %3852 = vsyncpa [#allocation6 + $0x1], 1 }
 0xb12   :  { %3853 = vsyncpa [#allocation9], 1 }
 0xb13   :  { %3854 = vsyncpa [#allocation12], 1 }
 0xb14   :  { %3855 = vsyncpa [#allocation15], 1 }
 0xb15   :  { %3856 = vsyncpa [#allocation18], 1 }
 0xb16   :  { %3857 = vsyncpa [#allocation21], 1 }
 0xb17   :  { %3858 = vsyncpa [#allocation24], 1 }
 0xb18   :  { %3859 = vsyncpa [#allocation27], 1 }
 0xb19   :  { %3860 = vsyncpa [#allocation4], 1 }
 0xb1a   :  { %3862 = vsyncpa [#allocation4 + $0x1], 1 }
 0xb1b   :  { %3863 = vsyncpa [#allocation30], 1 }
 0xb1c   :  { %3865 = vsyncpa [#allocation30 + $0x1], 1 }
 0xb1d   :  { %3866 = vsyncpa [#allocation33], 1 }
 0xb1e   :  { %3868 = vsyncpa [#allocation33 + $0x1], 1 }
 0xb1f   :  { %3869 = vsyncpa [#allocation36], 1 }
 0xb20   :  { %3871 = vsyncpa [#allocation36 + $0x1], 1 }

</bundles_post_ra>
